<compile_context>
chip_gen: v7x
topology: tpu7x:2x2x1
jax: 0.10.0
libtpu: 0.0.40
codegen_flags: <defaults>
</compile_context>

<pallas_src>
import functools

import jax
import jax.numpy as jnp
from jax import lax
from jax.experimental import pallas as pl
from jax.experimental.pallas import tpu as pltpu


# ---------------------------------------------------------------------------
# helpers
# ---------------------------------------------------------------------------
def _rup128(c):
    return ((int(c) + 127) // 128) * 128


def _pick_row_tile(n):
    # Largest row tile <= 2048 that divides N and leaves >= 2 grid steps.
    # (2048 rows x 128 ch x 4 B x 4 operands x 2 buffers ~= 8 MiB << vmem limit.)
    for tm in (2048, 1024, 512, 256, 128, 64, 32, 16, 8):
        if n % tm == 0 and n // tm >= 2:
            return tm
    return n


def _pad2(a, shape):
    out = jnp.zeros(shape, jnp.float32)
    return out.at[: a.shape[0], : a.shape[1]].set(a.astype(jnp.float32))


def _nchw_to_padded_rows(x, cpad):
    b, c, h, w = x.shape
    rows = jnp.transpose(x, (0, 2, 3, 1)).reshape(b * h * w, c).astype(jnp.float32)
    if cpad == c:
        return rows
    return jnp.pad(rows, ((0, 0), (0, cpad - c)))


# ---------------------------------------------------------------------------
# Kernel 1: surrogate PMnet forward  +  fused RMSE/NMSE partial sums
#   feats = relu(x @ W1 + b1) ;  out = feats @ W2 + b2      (1x1 convs)
#   per-tile: sum((out - target)^2), sum(target^2)
# ---------------------------------------------------------------------------
def _model_kernel(x_ref, t_ref, w1_ref, b1_ref, w2_ref, b2_ref,
                  feat_ref, out_ref, loss_ref):
    x = x_ref[...]                                                   # [TM, CinP]
    h = jnp.dot(x, w1_ref[...], preferred_element_type=jnp.float32)
    h = jnp.maximum(h + b1_ref[...], 0.0)                            # [TM, FP]
    feat_ref[...] = h
    o = jnp.dot(h, w2_ref[...], preferred_element_type=jnp.float32) + b2_ref[...]
    out_ref[...] = o                                                 # [TM, CoutP]

    # Fused loss partials.  Padded channels of o and t are exactly zero, so the
    # full-width reductions equal reductions over the real Cout channels.
    t = t_ref[...]
    d = o - t
    ssd = jnp.sum(d * d)
    sst = jnp.sum(t * t)
    sub = lax.broadcasted_iota(jnp.int32, (1, 8, 128), 1)
    lane = lax.broadcasted_iota(jnp.int32, (1, 8, 128), 2)
    loss_ref[...] = jnp.where((sub == 0) & (lane == 0), ssd,
                              jnp.where((sub == 0) & (lane == 1), sst, 0.0))


def model_forward(x_rows_p, t_rows_p, w1p, b1p, w2p, b2p):
    n, cin_p = x_rows_p.shape
    fp = w1p.shape[1]
    cout_p = w2p.shape[1]
    tm = _pick_row_tile(n)
    g = n // tm
    return pl.pallas_call(
        _model_kernel,
        out_shape=(jax.ShapeDtypeStruct((n, fp), jnp.float32),       # feats (padded)
                   jax.ShapeDtypeStruct((n, cout_p), jnp.float32),   # outputs (padded)
                   jax.ShapeDtypeStruct((g, 8, 128), jnp.float32)),  # per-tile loss partials
        grid=(g,),
        in_specs=[pl.BlockSpec((tm, cin_p), lambda i: (i, 0)),
                  pl.BlockSpec((tm, cout_p), lambda i: (i, 0)),
                  pl.BlockSpec((cin_p, fp), lambda i: (0, 0)),       # weights stay VMEM-resident
                  pl.BlockSpec((1, fp), lambda i: (0, 0)),
                  pl.BlockSpec((fp, cout_p), lambda i: (0, 0)),
                  pl.BlockSpec((1, cout_p), lambda i: (0, 0))],
        out_specs=(pl.BlockSpec((tm, fp), lambda i: (i, 0)),
                   pl.BlockSpec((tm, cout_p), lambda i: (i, 0)),
                   pl.BlockSpec((1, 8, 128), lambda i: (i, 0, 0))),
        compiler_params=pltpu.CompilerParams(
            dimension_semantics=("parallel",),
            vmem_limit_bytes=32 * 1024 * 1024),
    )(x_rows_p, t_rows_p, w1p, b1p, w2p, b2p)


# ---------------------------------------------------------------------------
# Kernel 2: MemoryBank keys-mean + retrieve similarity (fused)
#   keys = mean over valid bank rows ; sims[b] = cos(keys, q[b])
#   (unused bank rows are zero, so sum over all K rows / count == mean of valid)
# ---------------------------------------------------------------------------
def _bank_sims_kernel(count_ref, mem_ref, q_ref, o_ref):
    cnt = jnp.maximum(count_ref[0], 1).astype(jnp.float32)
    keys = jnp.sum(mem_ref[...], axis=0, keepdims=True) / cnt        # [1, Fq]
    q = q_ref[...]                                                   # [B, Fq]
    eps = jnp.float32(1e-8)
    dots = jnp.sum(keys * q, axis=1, keepdims=True)                  # [B, 1]
    nk = jnp.sqrt(jnp.sum(keys * keys))
    nq = jnp.sqrt(jnp.sum(q * q, axis=1, keepdims=True))
    o_ref[...] = dots / (jnp.maximum(nk, eps) * jnp.maximum(nq, eps))


def bank_sims(count, memory, q):
    # Whole bank fits VMEM at these shapes (K=100, Fq=HW*feat_dim); tile over Fq
    # with partial-sum accumulation if Fq grows beyond a few MiB.
    b = q.shape[0]
    return pl.pallas_call(
        _bank_sims_kernel,
        out_shape=jax.ShapeDtypeStruct((b, 1), jnp.float32),
        in_specs=[pl.BlockSpec(memory_space=pltpu.MemorySpace.SMEM),
                  pl.BlockSpec(memory_space=pltpu.MemorySpace.VMEM),
                  pl.BlockSpec(memory_space=pltpu.MemorySpace.VMEM)],
        out_specs=pl.BlockSpec(memory_space=pltpu.MemorySpace.VMEM),
    )(count, memory, q)


# ---------------------------------------------------------------------------
# Kernel 3: learning-rate reweighting
#   weight = exp(-(1 - cos(normalize(feats).mean(0), normalize(centers))) * tau)
#   feats_bhwp [B, HW, FP] padded, centers_p [HW, FP] padded (zeros in padding
#   so all norms / dots equal the unpadded ones).
# ---------------------------------------------------------------------------
def _adapt_kernel(feats_ref, centers_ref, o_ref):
    f = feats_ref[...]                                               # [B, HW, FP]
    pnorm = jnp.sqrt(jnp.sum(f * f, axis=2, keepdims=True))          # per-pixel channel norm
    fn = f / jnp.maximum(pnorm, 1e-12)                               # F.normalize(feats, dim=1)
    a = jnp.mean(fn, axis=0)                                         # .mean(0) -> [HW, FP]

    c = centers_ref[...]                                             # [HW, FP]
    cn = c / jnp.maximum(jnp.sqrt(jnp.sum(c * c)), 1e-12)            # F.normalize([1,Fq]) == whole-vector norm

    dot = jnp.sum(a * cn)
    na = jnp.sqrt(jnp.sum(a * a))
    cos = dot / jnp.maximum(na, jnp.float32(1e-8))                   # ||cn|| == 1 (redundant norm dropped)
    dist = 1.0 - cos
    o_ref[0] = jnp.exp(-dist * jnp.float32(0.05))                    # tau = 0.05


def adapt_weight(feats_bhwp, centers_p):
    return pl.pallas_call(
        _adapt_kernel,
        out_shape=jax.ShapeDtypeStruct((1,), jnp.float32),
        in_specs=[pl.BlockSpec(memory_space=pltpu.MemorySpace.VMEM),
                  pl.BlockSpec(memory_space=pltpu.MemorySpace.VMEM)],
        out_specs=pl.BlockSpec(memory_space=pltpu.MemorySpace.SMEM),
    )(feats_bhwp, centers_p)


# ---------------------------------------------------------------------------
# One fully-jitted forward_and_adapt step (no host syncs, no retraces).
# ---------------------------------------------------------------------------
@functools.partial(jax.jit,
                   static_argnames=("bhw", "feat_dim", "cout", "base_lr",
                                    "retrieval_size"))
def _tta_step(params_p, memory, cursor, count, x_rows_p, t_rows_p, *,
              bhw, feat_dim, cout, base_lr, retrieval_size):
    B, H, W = bhw
    HW = H * W
    N = B * HW
    K = memory.shape[0]
    w1p, b1p, w2p, b2p = params_p
    FP = w1p.shape[1]

    # --- model forward + fused loss partials (hot path, Pallas) ---
    feats_p, out_p, loss_part = model_forward(x_rows_p, t_rows_p, w1p, b1p, w2p, b2p)

    denom = jnp.float32(N * cout)
    mse = jnp.sum(loss_part[:, 0, 0]) / denom
    mse_ref = jnp.sum(loss_part[:, 0, 1]) / denom
    rmse_loss = jnp.sqrt(mse)
    mse_ref = jnp.where(mse_ref < 1e-08, jnp.float32(1e-08), mse_ref)
    nmse_loss = mse / mse_ref
    # loss = (rmse_loss + nmse_loss) / 1
    # TODO(synk): loss.backward() + optimizer.step() (parameter update) not implemented.

    # --- per-sample flattened features ((h,w,c) order, consistent everywhere) ---
    feats_flat = feats_p.reshape(B, HW, FP)[:, :, :feat_dim].reshape(B, HW * feat_dim)

    # --- MemoryBank.add (circular buffer, conditional on finiteness, on-device) ---
    finite = jnp.all(jnp.isfinite(feats_p)) & jnp.all(jnp.isfinite(out_p))
    widx = (cursor + jnp.arange(B, dtype=jnp.int32)) % K
    # Gate only the B scattered rows (cheap gather) instead of a full-bank select.
    rows_new = jnp.where(finite, feats_flat, memory[widx])
    memory_new = memory.at[widx].set(rows_new)
    cursor_new = jnp.where(finite, (cursor + B) % K, cursor)
    count_new = jnp.where(finite, jnp.minimum(count + B, K), count)

    # --- MemoryBank.retrieve (fused keys-mean + cosine kernel) ---
    sims = bank_sims(count_new.reshape(1), memory_new, feats_flat)[:, 0]   # [B]
    D = min(retrieval_size, B)
    _, top_idx = lax.top_k(-sims, D)                      # D smallest sims (indices in [0,B))
    start = jnp.mod(cursor_new - count_new, K)            # deque index 0 -> physical slot
    phys = jnp.mod(start + top_idx, K)                    # deque[idx] as in the reference
    support = jnp.take(memory_new, phys, axis=0)          # [D, Fq]
    centers = jnp.mean(support, axis=0).reshape(HW, feat_dim)
    centers_p = jnp.zeros((HW, FP), jnp.float32).at[:, :feat_dim].set(centers)

    # --- learning-rate reweighting (Pallas) ---
    weight_lr = adapt_weight(feats_p.reshape(B, HW, FP), centers_p)[0]
    adjusted_lr = jnp.where(count_new > 0,
                            jnp.float32(base_lr) * weight_lr,
                            jnp.float32(base_lr))
    # TODO(synk): optimizer param_group lr update + gradient step affect future calls only;
    #             returned outputs are the pre-update forward values (as in the reference).

    out_rows = out_p[:, :cout]                            # drop channel padding
    return (out_rows, adjusted_lr, rmse_loss, nmse_loss,
            memory_new, cursor_new, count_new)


# ---------------------------------------------------------------------------
# pmnettta wrapper (host-side state holder)
# ---------------------------------------------------------------------------
class PMNetTTA:
    def __init__(self, params, base_lr=2e-05, bank_size=100, retrieval_size=7):
        w1, b1, w2, b2 = params
        self.cin, self.feat_dim = w1.shape
        self.cout = w2.shape[1]
        cin_p, f_p, cout_p = _rup128(self.cin), _rup128(self.feat_dim), _rup128(self.cout)
        # Zero-pad parameters once so every kernel operates on lane-dense 128-wide blocks.
        self.params_p = (_pad2(w1, (cin_p, f_p)),
                         _pad2(b1.reshape(1, -1), (1, f_p)),
                         _pad2(w2, (f_p, cout_p)),
                         _pad2(b2.reshape(1, -1), (1, cout_p)))
        self.base_lr = float(base_lr)
        self.K = bank_size
        self.retrieval_size = retrieval_size
        self.steps = 1
        self._memory = None
        self._cursor = jnp.int32(0)
        self._count = jnp.int32(0)

    def forward(self, inputs_nchw, target_nchw):
        B, _, H, W = inputs_nchw.shape
        HW = H * W
        if self._memory is None:
            self._memory = jnp.zeros((self.K, HW * self.feat_dim), jnp.float32)

        # Hoisted out of the steps loop: NCHW -> padded (pixels x channels) rows.
        x_rows_p = _nchw_to_padded_rows(inputs_nchw, _rup128(self.cin))
        t_rows_p = _nchw_to_padded_rows(target_nchw, _rup128(self.cout))

        out_rows = None
        for _ in range(self.steps):
            (out_rows, adjusted_lr, rmse_loss, nmse_loss,
             self._memory, self._cursor, self._count) = _tta_step(
                self.params_p, self._memory, self._cursor, self._count,
                x_rows_p, t_rows_p,
                bhw=(B, H, W), feat_dim=self.feat_dim, cout=self.cout,
                base_lr=self.base_lr, retrieval_size=self.retrieval_size)

        self.adjusted_lr = adjusted_lr
        self.rmse_loss = rmse_loss      # reference prints these; kept on-device to avoid syncs
        self.nmse_loss = nmse_loss
        # rows ((b,h,w) x Cout)  ->  NCHW
        return jnp.transpose(out_rows.reshape(B, H, W, self.cout), (0, 3, 1, 2))


# ---------------------------------------------------------------------------
def make_params(key, cin, f, cout):
    k1, k2, k3, k4 = jax.random.split(key, 4)
    w1 = jax.random.normal(k1, (cin, f), jnp.float32) * 0.1
    b1 = jax.random.normal(k2, (1, f), jnp.float32) * 0.01
    w2 = jax.random.normal(k3, (f, cout), jnp.float32) * 0.1
    b2 = jax.random.normal(k4, (1, cout), jnp.float32) * 0.01
    return (w1, b1, w2, b2)


if __name__ == "__main__":
    B, Cin, H, W = 2, 4, 16, 16
    Fch, Cout = 8, 1

    key = jax.random.PRNGKey(0)
    k_in, k_tgt, k_par = jax.random.split(key, 3)
    inputs = jax.random.normal(k_in, (B, Cin, H, W), jnp.float32)
    target = jax.random.normal(k_tgt, (B, Cout, H, W), jnp.float32)

    params = make_params(k_par, Cin, Fch, Cout)
    tta = PMNetTTA(params, base_lr=2e-05)

    outputs = tta.forward(inputs, target)
    jax.block_until_ready(outputs)
    jax.block_until_ready(tta.adjusted_lr)

    assert outputs.shape == (B, Cout, H, W)
    assert bool(jnp.all(jnp.isfinite(outputs)))
    print("KERNEL_OK")
</pallas_src>

<mosaic_0001>
module attributes {stable_mosaic.version = 11 : i64} {
  func.func @_model_kernel(%arg0: i32, %arg1: memref<256x128xf32, #tpu.memory_space<vmem>>, %arg2: memref<256x128xf32, #tpu.memory_space<vmem>>, %arg3: memref<128x128xf32, #tpu.memory_space<vmem>>, %arg4: memref<1x128xf32, #tpu.memory_space<vmem>>, %arg5: memref<128x128xf32, #tpu.memory_space<vmem>>, %arg6: memref<1x128xf32, #tpu.memory_space<vmem>>, %arg7: memref<256x128xf32, #tpu.memory_space<vmem>>, %arg8: memref<256x128xf32, #tpu.memory_space<vmem>>, %arg9: memref<1x8x128xf32, #tpu.memory_space<vmem>>) attributes {dimension_semantics = [#tpu.dimension_semantics<parallel>], iteration_bounds = array<i64: 2>, scalar_prefetch = 0 : i64, scratch_operands = 0 : i64, tpu.core_type = #tpu.core_type<tc>, window_params = [{transform_indices = @transform_0, window_bounds = array<i64: 256, 128>}, {transform_indices = @transform_1, window_bounds = array<i64: 256, 128>}, {pipeline_mode = #tpu.pipeline_mode<synchronous>, transform_indices = @transform_2, window_bounds = array<i64: 128, 128>}, {pipeline_mode = #tpu.pipeline_mode<synchronous>, transform_indices = @transform_3, window_bounds = array<i64: 1, 128>}, {pipeline_mode = #tpu.pipeline_mode<synchronous>, transform_indices = @transform_4, window_bounds = array<i64: 128, 128>}, {pipeline_mode = #tpu.pipeline_mode<synchronous>, transform_indices = @transform_5, window_bounds = array<i64: 1, 128>}, {transform_indices = @transform_6, window_bounds = array<i64: 256, 128>}, {transform_indices = @transform_7, window_bounds = array<i64: 256, 128>}, {transform_indices = @transform_8, window_bounds = array<i64: 1, 8, 128>}]} {
    %c0 = arith.constant 0 : index
    %c0_0 = arith.constant 0 : index
    %0 = vector.load %arg1[%c0, %c0_0] : memref<256x128xf32, #tpu.memory_space<vmem>>, vector<256x128xf32>
    %c0_1 = arith.constant 0 : index
    %c0_2 = arith.constant 0 : index
    %1 = vector.load %arg3[%c0_1, %c0_2] : memref<128x128xf32, #tpu.memory_space<vmem>>, vector<128x128xf32>
    %cst = arith.constant dense<0.000000e+00> : vector<256x128xf32>
    %2 = tpu.matmul %0, %1, %cst {dimension_numbers = #tpu.dot_dimension_numbers<[1], [0], [0], [1], [0, 0, 1, 1], [], []>} : vector<256x128xf32>, vector<128x128xf32>, vector<256x128xf32> -> vector<256x128xf32>
    %c0_3 = arith.constant 0 : index
    %c0_4 = arith.constant 0 : index
    %3 = vector.load %arg4[%c0_3, %c0_4] : memref<1x128xf32, #tpu.memory_space<vmem>>, vector<1x128xf32>
    %4 = vector.broadcast %3 : vector<1x128xf32> to vector<256x128xf32>
    %5 = arith.addf %2, %4 : vector<256x128xf32>
    %cst_5 = arith.constant 0.000000e+00 : f32
    %6 = vector.broadcast %cst_5 : f32 to vector<256x128xf32>
    %7 = arith.maximumf %5, %6 : vector<256x128xf32>
    %c0_6 = arith.constant 0 : index
    %c0_7 = arith.constant 0 : index
    %8 = vector.load %arg7[%c0_6, %c0_7] : memref<256x128xf32, #tpu.memory_space<vmem>>, vector<256x128xf32>
    tpu.vector_store %arg7[%c0_6, %c0_7], %7 {strides = array<i32>} : memref<256x128xf32, #tpu.memory_space<vmem>>, vector<256x128xf32>,
    %c0_8 = arith.constant 0 : index
    %c0_9 = arith.constant 0 : index
    %9 = vector.load %arg5[%c0_8, %c0_9] : memref<128x128xf32, #tpu.memory_space<vmem>>, vector<128x128xf32>
    %cst_10 = arith.constant dense<0.000000e+00> : vector<256x128xf32>
    %10 = tpu.matmul %7, %9, %cst_10 {dimension_numbers = #tpu.dot_dimension_numbers<[1], [0], [0], [1], [0, 0, 1, 1], [], []>} : vector<256x128xf32>, vector<128x128xf32>, vector<256x128xf32> -> vector<256x128xf32>
    %c0_11 = arith.constant 0 : index
    %c0_12 = arith.constant 0 : index
    %11 = vector.load %arg6[%c0_11, %c0_12] : memref<1x128xf32, #tpu.memory_space<vmem>>, vector<1x128xf32>
    %12 = vector.broadcast %11 : vector<1x128xf32> to vector<256x128xf32>
    %13 = arith.addf %10, %12 : vector<256x128xf32>
    %c0_13 = arith.constant 0 : index
    %c0_14 = arith.constant 0 : index
    %14 = vector.load %arg8[%c0_13, %c0_14] : memref<256x128xf32, #tpu.memory_space<vmem>>, vector<256x128xf32>
    tpu.vector_store %arg8[%c0_13, %c0_14], %13 {strides = array<i32>} : memref<256x128xf32, #tpu.memory_space<vmem>>, vector<256x128xf32>,
    %c0_15 = arith.constant 0 : index
    %c0_16 = arith.constant 0 : index
    %15 = vector.load %arg2[%c0_15, %c0_16] : memref<256x128xf32, #tpu.memory_space<vmem>>, vector<256x128xf32>
    %16 = arith.subf %13, %15 : vector<256x128xf32>
    %17 = arith.mulf %16, %16 : vector<256x128xf32>
    %18 = vector.shape_cast %17 : vector<256x128xf32> to vector<1x256x128xf32>
    %cst_17 = arith.constant dense<0.000000e+00> : vector<1xf32>
    %19 = vector.multi_reduction <add>, %18, %cst_17 [1, 2] : vector<1x256x128xf32> to vector<1xf32>
    %20 = vector.shape_cast %19 : vector<1xf32> to vector<1x1x1xf32>
    %21 = vector.extract %20[0, 0, 0] : f32 from vector<1x1x1xf32>
    %22 = arith.mulf %15, %15 : vector<256x128xf32>
    %23 = vector.shape_cast %22 : vector<256x128xf32> to vector<1x256x128xf32>
    %cst_18 = arith.constant dense<0.000000e+00> : vector<1xf32>
    %24 = vector.multi_reduction <add>, %23, %cst_18 [1, 2] : vector<1x256x128xf32> to vector<1xf32>
    %25 = vector.shape_cast %24 : vector<1xf32> to vector<1x1x1xf32>
    %26 = vector.extract %25[0, 0, 0] : f32 from vector<1x1x1xf32>
    %27 = tpu.iota {dimensions = array<i32: 1>} : vector<1x8x128xi32>
    %28 = tpu.iota {dimensions = array<i32: 2>} : vector<1x8x128xi32>
    %c0_i32 = arith.constant 0 : i32
    %29 = vector.broadcast %c0_i32 : i32 to vector<1x8x128xi32>
    %30 = arith.cmpi eq, %27, %29 : vector<1x8x128xi32>
    %c0_i32_19 = arith.constant 0 : i32
    %31 = vector.broadcast %c0_i32_19 : i32 to vector<1x8x128xi32>
    %32 = arith.cmpi eq, %28, %31 : vector<1x8x128xi32>
    %33 = arith.andi %30, %32 : vector<1x8x128xi1>
    %c0_i32_20 = arith.constant 0 : i32
    %34 = vector.broadcast %c0_i32_20 : i32 to vector<1x8x128xi32>
    %35 = arith.cmpi eq, %27, %34 : vector<1x8x128xi32>
    %c1_i32 = arith.constant 1 : i32
    %36 = vector.broadcast %c1_i32 : i32 to vector<1x8x128xi32>
    %37 = arith.cmpi eq, %28, %36 : vector<1x8x128xi32>
    %38 = arith.andi %35, %37 : vector<1x8x128xi1>
    %cst_21 = arith.constant 0.000000e+00 : f32
    %39 = vector.broadcast %26 : f32 to vector<1x8x128xf32>
    %40 = vector.broadcast %cst_21 : f32 to vector<1x8x128xf32>
    %41 = arith.select %38, %39, %40 : vector<1x8x128xi1>, vector<1x8x128xf32>
    %42 = vector.broadcast %21 : f32 to vector<1x8x128xf32>
    %43 = arith.select %33, %42, %41 : vector<1x8x128xi1>, vector<1x8x128xf32>
    %c0_22 = arith.constant 0 : index
    %c0_23 = arith.constant 0 : index
    %c0_24 = arith.constant 0 : index
    %44 = vector.load %arg9[%c0_22, %c0_23, %c0_24] : memref<1x8x128xf32, #tpu.memory_space<vmem>>, vector<1x8x128xf32>
    tpu.vector_store %arg9[%c0_22, %c0_23, %c0_24], %43 {strides = array<i32>} : memref<1x8x128xf32, #tpu.memory_space<vmem>>, vector<1x8x128xf32>,
    return
  }
  func.func @transform_0(%arg0: i32) -> (i32, i32) {
    %c0_i32 = arith.constant 0 : i32
    %c0_i32_0 = arith.constant 0 : i32
    return %arg0, %c0_i32 : i32, i32
  }
  func.func @transform_1(%arg0: i32) -> (i32, i32) {
    %c0_i32 = arith.constant 0 : i32
    %c0_i32_0 = arith.constant 0 : i32
    return %arg0, %c0_i32 : i32, i32
  }
  func.func @transform_2(%arg0: i32) -> (i32, i32) {
    %c0_i32 = arith.constant 0 : i32
    %c0_i32_0 = arith.constant 0 : i32
    %c0_i32_1 = arith.constant 0 : i32
    return %c0_i32, %c0_i32_0 : i32, i32
  }
  func.func @transform_3(%arg0: i32) -> (i32, i32) {
    %c0_i32 = arith.constant 0 : i32
    %c0_i32_0 = arith.constant 0 : i32
    %c0_i32_1 = arith.constant 0 : i32
    return %c0_i32, %c0_i32_0 : i32, i32
  }
  func.func @transform_4(%arg0: i32) -> (i32, i32) {
    %c0_i32 = arith.constant 0 : i32
    %c0_i32_0 = arith.constant 0 : i32
    %c0_i32_1 = arith.constant 0 : i32
    return %c0_i32, %c0_i32_0 : i32, i32
  }
  func.func @transform_5(%arg0: i32) -> (i32, i32) {
    %c0_i32 = arith.constant 0 : i32
    %c0_i32_0 = arith.constant 0 : i32
    %c0_i32_1 = arith.constant 0 : i32
    return %c0_i32, %c0_i32_0 : i32, i32
  }
  func.func @transform_6(%arg0: i32) -> (i32, i32) {
    %c0_i32 = arith.constant 0 : i32
    %c0_i32_0 = arith.constant 0 : i32
    return %arg0, %c0_i32 : i32, i32
  }
  func.func @transform_7(%arg0: i32) -> (i32, i32) {
    %c0_i32 = arith.constant 0 : i32
    %c0_i32_0 = arith.constant 0 : i32
    return %arg0, %c0_i32 : i32, i32
  }
  func.func @transform_8(%arg0: i32) -> (i32, i32, i32) {
    %c0_i32 = arith.constant 0 : i32
    %c0_i32_0 = arith.constant 0 : i32
    %c0_i32_1 = arith.constant 0 : i32
    return %arg0, %c0_i32, %c0_i32_0 : i32, i32, i32
  }
}

module attributes {stable_mosaic.version = 11 : i64} {
  func.func @_adapt_kernel(%arg0: memref<2x256x128xf32, #tpu.memory_space<vmem>>, %arg1: memref<256x128xf32, #tpu.memory_space<vmem>>, %arg2: memref<1xf32, #tpu.memory_space<smem>>) attributes {dimension_semantics = [], scalar_prefetch = 0 : i64, scratch_operands = 0 : i64, tpu.core_type = #tpu.core_type<tc>} {
    %c0 = arith.constant 0 : index
    %c0_0 = arith.constant 0 : index
    %c0_1 = arith.constant 0 : index
    %0 = vector.load %arg0[%c0, %c0_0, %c0_1] : memref<2x256x128xf32, #tpu.memory_space<vmem>>, vector<2x256x128xf32>
    %1 = arith.mulf %0, %0 : vector<2x256x128xf32>
    %cst = arith.constant dense<0.000000e+00> : vector<2x256xf32>
    %2 = vector.multi_reduction <add>, %1, %cst [2] : vector<2x256x128xf32> to vector<2x256xf32>
    %3 = vector.shape_cast %2 : vector<2x256xf32> to vector<2x256x1xf32>
    %4 = math.sqrt %3 : vector<2x256x1xf32>
    %cst_2 = arith.constant 9.99999996E-13 : f32
    %5 = vector.broadcast %cst_2 : f32 to vector<2x256x1xf32>
    %6 = arith.maximumf %4, %5 : vector<2x256x1xf32>
    %7 = vector.broadcast %6 : vector<2x256x1xf32> to vector<2x256x128xf32>
    %8 = arith.divf %0, %7 : vector<2x256x128xf32>
    %cst_3 = arith.constant dense<0.000000e+00> : vector<256x128xf32>
    %9 = vector.multi_reduction <add>, %8, %cst_3 [0] : vector<2x256x128xf32> to vector<256x128xf32>
    %cst_4 = arith.constant 2.000000e+00 : f32
    %10 = vector.broadcast %cst_4 : f32 to vector<256x128xf32>
    %11 = arith.divf %9, %10 : vector<256x128xf32>
    %c0_5 = arith.constant 0 : index
    %c0_6 = arith.constant 0 : index
    %12 = vector.load %arg1[%c0_5, %c0_6] : memref<256x128xf32, #tpu.memory_space<vmem>>, vector<256x128xf32>
    %13 = arith.mulf %12, %12 : vector<256x128xf32>
    %14 = vector.shape_cast %13 : vector<256x128xf32> to vector<1x256x128xf32>
    %cst_7 = arith.constant dense<0.000000e+00> : vector<1xf32>
    %15 = vector.multi_reduction <add>, %14, %cst_7 [1, 2] : vector<1x256x128xf32> to vector<1xf32>
    %16 = vector.shape_cast %15 : vector<1xf32> to vector<1x1x1xf32>
    %17 = vector.extract %16[0, 0, 0] : f32 from vector<1x1x1xf32>
    %18 = math.sqrt %17 : f32
    %cst_8 = arith.constant 9.99999996E-13 : f32
    %19 = arith.maximumf %18, %cst_8 : f32
    %20 = vector.broadcast %19 : f32 to vector<256x128xf32>
    %21 = arith.divf %12, %20 : vector<256x128xf32>
    %22 = arith.mulf %11, %21 : vector<256x128xf32>
    %23 = vector.shape_cast %22 : vector<256x128xf32> to vector<1x256x128xf32>
    %cst_9 = arith.constant dense<0.000000e+00> : vector<1xf32>
    %24 = vector.multi_reduction <add>, %23, %cst_9 [1, 2] : vector<1x256x128xf32> to vector<1xf32>
    %25 = vector.shape_cast %24 : vector<1xf32> to vector<1x1x1xf32>
    %26 = vector.extract %25[0, 0, 0] : f32 from vector<1x1x1xf32>
    %27 = arith.mulf %11, %11 : vector<256x128xf32>
    %28 = vector.shape_cast %27 : vector<256x128xf32> to vector<1x256x128xf32>
    %cst_10 = arith.constant dense<0.000000e+00> : vector<1xf32>
    %29 = vector.multi_reduction <add>, %28, %cst_10 [1, 2] : vector<1x256x128xf32> to vector<1xf32>
    %30 = vector.shape_cast %29 : vector<1xf32> to vector<1x1x1xf32>
    %31 = vector.extract %30[0, 0, 0] : f32 from vector<1x1x1xf32>
    %32 = math.sqrt %31 : f32
    %cst_11 = arith.constant 9.99999993E-9 : f32
    %33 = arith.maximumf %32, %cst_11 : f32
    %34 = arith.divf %26, %33 : f32
    %cst_12 = arith.constant 1.000000e+00 : f32
    %35 = arith.subf %cst_12, %34 : f32
    %cst_13 = arith.constant 0.000000e+00 : f32
    %36 = arith.subf %cst_13, %35 : f32
    %cst_14 = arith.constant 5.000000e-02 : f32
    %37 = arith.mulf %36, %cst_14 : f32
    %38 = math.exp %37 : f32
    %c0_15 = arith.constant 0 : index
    %39 = memref.load %arg2[%c0_15] : memref<1xf32, #tpu.memory_space<smem>>
    memref.store %38, %arg2[%c0_15] : memref<1xf32, #tpu.memory_space<smem>>
    return
  }
}

module attributes {stable_mosaic.version = 11 : i64} {
  func.func @_bank_sims_kernel(%arg0: memref<1xi32, #tpu.memory_space<smem>>, %arg1: memref<100x2048xf32, #tpu.memory_space<vmem>>, %arg2: memref<2x2048xf32, #tpu.memory_space<vmem>>, %arg3: memref<2x1xf32, #tpu.memory_space<vmem>>) attributes {dimension_semantics = [], scalar_prefetch = 0 : i64, scratch_operands = 0 : i64, tpu.core_type = #tpu.core_type<tc>} {
    %c0 = arith.constant 0 : index
    %0 = memref.load %arg0[%c0] : memref<1xi32, #tpu.memory_space<smem>>
    %c1_i32 = arith.constant 1 : i32
    %1 = arith.maxsi %0, %c1_i32 : i32
    %2 = arith.sitofp %1 : i32 to f32
    %c0_0 = arith.constant 0 : index
    %c0_1 = arith.constant 0 : index
    %3 = vector.load %arg1[%c0_0, %c0_1] : memref<100x2048xf32, #tpu.memory_space<vmem>>, vector<100x2048xf32>
    %cst = arith.constant dense<0.000000e+00> : vector<2048xf32>
    %4 = vector.multi_reduction <add>, %3, %cst [0] : vector<100x2048xf32> to vector<2048xf32>
    %5 = vector.shape_cast %4 : vector<2048xf32> to vector<1x2048xf32>
    %6 = vector.broadcast %2 : f32 to vector<1x2048xf32>
    %7 = arith.divf %5, %6 : vector<1x2048xf32>
    %c0_2 = arith.constant 0 : index
    %c0_3 = arith.constant 0 : index
    %8 = vector.load %arg2[%c0_2, %c0_3] : memref<2x2048xf32, #tpu.memory_space<vmem>>, vector<2x2048xf32>
    %9 = vector.broadcast %7 : vector<1x2048xf32> to vector<2x2048xf32>
    %10 = arith.mulf %9, %8 : vector<2x2048xf32>
    %cst_4 = arith.constant dense<0.000000e+00> : vector<2xf32>
    %11 = vector.multi_reduction <add>, %10, %cst_4 [1] : vector<2x2048xf32> to vector<2xf32>
    %12 = vector.shape_cast %11 : vector<2xf32> to vector<2x1xf32>
    %13 = arith.mulf %7, %7 : vector<1x2048xf32>
    %14 = vector.shape_cast %13 : vector<1x2048xf32> to vector<1x1x2048xf32>
    %cst_5 = arith.constant dense<0.000000e+00> : vector<1xf32>
    %15 = vector.multi_reduction <add>, %14, %cst_5 [1, 2] : vector<1x1x2048xf32> to vector<1xf32>
    %16 = vector.shape_cast %15 : vector<1xf32> to vector<1x1x1xf32>
    %17 = vector.extract %16[0, 0, 0] : f32 from vector<1x1x1xf32>
    %18 = math.sqrt %17 : f32
    %19 = arith.mulf %8, %8 : vector<2x2048xf32>
    %cst_6 = arith.constant dense<0.000000e+00> : vector<2xf32>
    %20 = vector.multi_reduction <add>, %19, %cst_6 [1] : vector<2x2048xf32> to vector<2xf32>
    %21 = vector.shape_cast %20 : vector<2xf32> to vector<2x1xf32>
    %22 = math.sqrt %21 : vector<2x1xf32>
    %cst_7 = arith.constant 9.99999993E-9 : f32
    %23 = arith.maximumf %18, %cst_7 : f32
    %cst_8 = arith.constant 9.99999993E-9 : f32
    %24 = vector.broadcast %cst_8 : f32 to vector<2x1xf32>
    %25 = arith.maximumf %22, %24 : vector<2x1xf32>
    %26 = vector.broadcast %23 : f32 to vector<2x1xf32>
    %27 = arith.mulf %26, %25 : vector<2x1xf32>
    %28 = arith.divf %12, %27 : vector<2x1xf32>
    %c0_9 = arith.constant 0 : index
    %c0_10 = arith.constant 0 : index
    %29 = vector.load %arg3[%c0_9, %c0_10] : memref<2x1xf32, #tpu.memory_space<vmem>>, vector<2x1xf32>
    tpu.vector_store %arg3[%c0_9, %c0_10], %28 {strides = array<i32>} : memref<2x1xf32, #tpu.memory_space<vmem>>, vector<2x1xf32>,
    return
  }
}

</mosaic_0001>

<bundles_post_ra>
// kernel: _tta_step.5
= control target key start
LH: loop header
LB: loop body
LE: loop exit
PB: predicated region body
PF: predicated region fallthrough
CT: control target
= control target key end

     0   :  { %s3351_s0 = inlined_call_operand.vmem [shape: f32[2,256,128], index: 0, kind: input, shape index: {}]   ;;  %s3352_s1 = inlined_call_operand.vmem [shape: f32[256,128], index: 1, kind: input, shape index: {}]   ;;  %s3353_s2 = inlined_call_operand.hbm [shape: f32[1], index: 2, kind: output, shape index: {}]  }
   0x1   :  { %v973_v0 = vld [vmem:[%s3352_s1] sm:$0xff]  ;;  %v974_v1 = vld [vmem:[%s3352_s1 + $0x8] sm:$0xff]  ;;  %v975_v2 = vld [vmem:[%s3352_s1 + $0x10] sm:$0xff] }
   0x2   :  { %v976_v3 = vld [vmem:[%s3352_s1 + $0x18] sm:$0xff]  ;;  %v1005_v4 = vmul.f32 %v973_v0, %v973_v0  ;;  %v1006_v5 = vmul.f32 %v974_v1, %v974_v1  ;;  %v1007_v6 = vmul.f32 %v975_v2, %v975_v2  ;;  %v977_v7 = vld [vmem:[%s3352_s1 + $0x20] sm:$0xff]  ;;  %v978_v10 = vld [vmem:[%s3352_s1 + $0x28] sm:$0xff] }
   0x3   :  { %v1008_v8 = vmul.f32 %v976_v3, %v976_v3  ;;  %v1009_v11 = vmul.f32 %v977_v7, %v977_v7  ;;  %v979_v13 = vld [vmem:[%s3352_s1 + $0x30] sm:$0xff]  ;;  %v1010_v14 = vmul.f32 %v978_v10, %v978_v10  ;;  %v980_v16 = vld [vmem:[%s3352_s1 + $0x38] sm:$0xff]  ;;  %v981_v19 = vld [vmem:[%s3352_s1 + $0x40] sm:$0xff] }
   0x4   :  { %v1037_v9 = vadd.f32 %v1006_v5, %v1005_v4  ;;  %v1011_v17 = vmul.f32 %v979_v13, %v979_v13  ;;  %v1725_v20 = vld [vmem:[%s3351_s0 + $0x8] sm:$0xff]  ;;  %v1012_v21 = vmul.f32 %v980_v16, %v980_v16  ;;  %v1732_v24 = vld [vmem:[%s3351_s0 + $0x100] sm:$0xff]  ;;  %v1013_v26 = vmul.f32 %v981_v19, %v981_v19  ;;  %v983_v29 = vld [vmem:[%s3352_s1 + $0x50] sm:$0xff] }
   0x5   :  { %v77_v23 = vmul.f32 %v1725_v20, %v1725_v20  ;;  %v982_v25 = vld [vmem:[%s3352_s1 + $0x48] sm:$0xff]  ;;  %v108_v28 = vmul.f32 %v1732_v24, %v1732_v24  ;;  %v1745_v30 = vld [vmem:[%s3351_s0 + $0x10] sm:$0xff]  ;;  %v984_v33 = vld [vmem:[%s3352_s1 + $0x58] sm:$0xff]  ;;  %v1015_v34 = vmul.f32 %v983_v29, %v983_v29 }
   0x6   :  { %v1038_v12 = vadd.f32 %v1037_v9, %v1007_v6  ;;  %v1014_v31 = vmul.f32 %v982_v25, %v982_v25  ;;  %v78_v36 = vmul.f32 %v1745_v30, %v1745_v30  ;;  %v985_v37 = vld [vmem:[%s3352_s1 + $0x60] sm:$0xff]  ;;  %v1758_v38 = vld [vmem:[%s3351_s0 + $0x18] sm:$0xff]  ;;  %v1016_v39 = vmul.f32 %v984_v33, %v984_v33  ;;  %v986_v41 = vld [vmem:[%s3352_s1 + $0x68] sm:$0xff] }
   0x7   :  { %142 = vadd.xlane.f32.xlu1 %v77_v23  ;;  %v1017_v42 = vmul.f32 %v985_v37, %v985_v37  ;;  %v79_v44 = vmul.f32 %v1758_v38, %v1758_v38  ;;  %v987_v45 = vld [vmem:[%s3352_s1 + $0x70] sm:$0xff]  ;;  %v1771_v46 = vld [vmem:[%s3351_s0 + $0x20] sm:$0xff]  ;;  %v1018_v47 = vmul.f32 %v986_v41, %v986_v41  ;;  %v988_v49 = vld [vmem:[%s3352_s1 + $0x78] sm:$0xff] }
   0x8   :  { %v1039_v15 = vadd.f32 %v1038_v12, %v1008_v8  ;;  %v1019_v50 = vmul.f32 %v987_v45, %v987_v45  ;;  %v80_v52 = vmul.f32 %v1771_v46, %v1771_v46  ;;  %v989_v53 = vld [vmem:[%s3352_s1 + $0x80] sm:$0xff]  ;;  %v1784_v54 = vld [vmem:[%s3351_s0 + $0x28] sm:$0xff] }
   0xa   :  { %v1040_v18 = vadd.f32 %v1039_v15, %v1009_v11 }
   0xb   :  { %204 = vadd.xlane.f32.xlu1 %v108_v28 }
   0xc   :  { %v1041_v22 = vadd.f32 %v1040_v18, %v1010_v14 }
   0xe   :  { %v1042_v27 = vadd.f32 %v1041_v22, %v1011_v17 }
   0xf   :  { %144 = vadd.xlane.f32.xlu1 %v78_v36 }
  0x10   :  { %v1043_v32 = vadd.f32 %v1042_v27, %v1012_v21 }
  0x12   :  { %v1044_v35 = vadd.f32 %v1043_v32, %v1013_v26 }
  0x13   :  { %146 = vadd.xlane.f32.xlu1 %v79_v44 }
  0x14   :  { %v1045_v40 = vadd.f32 %v1044_v35, %v1014_v31 }
  0x16   :  { %v1046_v43 = vadd.f32 %v1045_v40, %v1015_v34 }
  0x18   :  { %v1047_v48 = vadd.f32 %v1046_v43, %v1016_v39 }
  0x1a   :  { %v1048_v51 = vadd.f32 %v1047_v48, %v1017_v42 }
  0x1b   :  { %7 = vsyncpa [#allocation3], 0  ;;  %v1020_v55 = vmul.f32 %v988_v49, %v988_v49  ;;  %v990_v57 = vld [vmem:[%s3352_s1 + $0x88] sm:$0xff]  ;;  %v1021_v58 = vmul.f32 %v989_v53, %v989_v53  ;;  %148 = vadd.xlane.f32.xlu1 %v80_v52  ;;  %v81_v60 = vmul.f32 %v1784_v54, %v1784_v54  ;;  %v991_v61 = vld [vmem:[%s3352_s1 + $0x90] sm:$0xff]  ;;  %s1677_s5 = smov 1e-12  }
  0x1c   :  { %v1049_v56 = vadd.f32 %v1048_v51, %v1018_v47  ;;  %v1797_v62 = vld [vmem:[%s3351_s0 + $0x30] sm:$0xff]  ;;  %v1022_v63 = vmul.f32 %v990_v57, %v990_v57  ;;  %v992_v1 = vld [vmem:[%s3352_s1 + $0x98] sm:$0xff]  ;;  %v1023_v2 = vmul.f32 %v991_v61, %v991_v61  ;;  %v993_v5 = vld [vmem:[%s3352_s1 + $0xa0] sm:$0xff]  ;;  %s1678_s3 = smov 1e-08   ;;  %s1665_s13 = scalar_lea.hbm %s3353_s2, 16 }
  0x1d   :  { %v82_v4 = vmul.f32 %v1797_v62, %v1797_v62  ;;  %v1810_v6 = vld [vmem:[%s3351_s0 + $0x38] sm:$0xff]  ;;  %v1024_v7 = vmul.f32 %v992_v1, %v992_v1  ;;  %v994_v9 = vld [vmem:[%s3352_s1 + $0xa8] sm:$0xff]  ;;  %v1025_v10 = vmul.f32 %v993_v5, %v993_v5  ;;  %v995_v13 = vld [vmem:[%s3352_s1 + $0xb0] sm:$0xff]  ;;  %p1666_p0 = scmp.ne.s32.totalorder %s3353_s2, %s1665_s13  ;;  %p1669_p1 = scmp.lt.u32.totalorder %s1665_s13, %s3353_s2 }
  0x1e   :  { %v1050_v59 = vadd.f32 %v1049_v56, %v1019_v50  ;;  %v83_v12 = vmul.f32 %v1810_v6, %v1810_v6  ;;  %v20_v14 = vld [vmem:[%s3351_s0 + $0x40] sm:$0xff]  ;;  %v1026_v15 = vmul.f32 %v994_v9, %v994_v9  ;;  %v996_v17 = vld [vmem:[%s3352_s1 + $0xb8] sm:$0xff]  ;;  %v1027_v18 = vmul.f32 %v995_v13, %v995_v13  ;;  %v21_v23 = vld [vmem:[%s3351_s0 + $0x48] sm:$0xff] }
  0x1f   :  { %150 = vadd.xlane.f32.xlu1 %v81_v60  ;;  %v84_v21 = vmul.f32 %v20_v14, %v20_v14  ;;  %v997_v22 = vld [vmem:[%s3352_s1 + $0xc0] sm:$0xff]  ;;  %v1028_v25 = vmul.f32 %v996_v17, %v996_v17  ;;  %v998_v27 = vld [vmem:[%s3352_s1 + $0xc8] sm:$0xff]  ;;  %v85_v31 = vmul.f32 %v21_v23, %v21_v23  ;;  %v999_v32 = vld [vmem:[%s3352_s1 + $0xd0] sm:$0xff]  ;;  %p1671_p2 = pnand %p1669_p1, %p1666_p0 }
  0x20   :  { %v1051_v0 = vadd.f32 %v1050_v59, %v1020_v55  ;;  %v1029_v28 = vmul.f32 %v997_v22, %v997_v22  ;;  %v22_v33 = vld [vmem:[%s3351_s0 + $0x50] sm:$0xff]  ;;  %v1030_v34 = vmul.f32 %v998_v27, %v998_v27  ;;  %v1000_v36 = vld [vmem:[%s3352_s1 + $0xd8] sm:$0xff]  ;;  %v1031_v37 = vmul.f32 %v999_v32, %v999_v32  ;;  %v1001_v41 = vld [vmem:[%s3352_s1 + $0xe0] sm:$0xff] }
  0x21   :  { %v86_v40 = vmul.f32 %v22_v33, %v22_v33  ;;  %v23_v42 = vld [vmem:[%s3351_s0 + $0x58] sm:$0xff]  ;;  %v1032_v43 = vmul.f32 %v1000_v36, %v1000_v36  ;;  %v1002_v45 = vld [vmem:[%s3352_s1 + $0xe8] sm:$0xff]  ;;  %v1033_v47 = vmul.f32 %v1001_v41, %v1001_v41  ;;  %v1003_v50 = vld [vmem:[%s3352_s1 + $0xf0] sm:$0xff] }
  0x22   :  { %v1052_v3 = vadd.f32 %v1051_v0, %v1021_v58  ;;  %v87_v49 = vmul.f32 %v23_v42, %v23_v42  ;;  %v24_v51 = vld [vmem:[%s3351_s0 + $0x60] sm:$0xff]  ;;  %v1034_v52 = vmul.f32 %v1002_v45, %v1002_v45  ;;  %v1004_v55 = vld [vmem:[%s3352_s1 + $0xf8] sm:$0xff]  ;;  %v1035_v56 = vmul.f32 %v1003_v50, %v1003_v50  ;;  %v25_v59 = vld [vmem:[%s3351_s0 + $0x68] sm:$0xff] }
  0x23   :  { %152 = vadd.xlane.f32.xlu1 %v82_v4  ;;  %v88_v58 = vmul.f32 %v24_v51, %v24_v51  ;;  %v1036_v60 = vmul.f32 %v1004_v55, %v1004_v55  ;;  %v89_v0 = vmul.f32 %v25_v59, %v25_v59  ;;  %v1868_v1 = vld [vmem:[%s3351_s0] sm:$0xff] }
  0x24   :  { %v1053_v8 = vadd.f32 %v1052_v3, %v1022_v63  ;;  %v76_v4 = vmul.f32 %v1868_v1, %v1868_v1 }
  0x26   :  { %v1054_v11 = vadd.f32 %v1053_v8, %v1023_v2  ;;  %v26_v2 = vld [vmem:[%s3351_s0 + $0x70] sm:$0xff]  ;;  %v27_v8 = vld [vmem:[%s3351_s0 + $0x78] sm:$0xff] }
  0x27   :  { %154 = vadd.xlane.f32.xlu1 %v83_v12  ;;  %v90_v5 = vmul.f32 %v26_v2, %v26_v2  ;;  %v28_v12 = vld [vmem:[%s3351_s0 + $0x80] sm:$0xff] }
  0x28   :  { %v1055_v16 = vadd.f32 %v1054_v11, %v1024_v7  ;;  %v1878_v7 = vld [vmem:[%s3351_s0 + $0x108] sm:$0xff]  ;;  %v1888_v11 = vld [vmem:[%s3351_s0 + $0x110] sm:$0xff]  ;;  %v92_v14 = vmul.f32 %v28_v12, %v28_v12 }
  0x29   :  { %v109_v9 = vmul.f32 %v1878_v7, %v1878_v7  ;;  %v110_v13 = vmul.f32 %v1888_v11, %v1888_v11 }
  0x2a   :  { %v1056_v19 = vadd.f32 %v1055_v16, %v1025_v10  ;;  %v91_v10 = vmul.f32 %v27_v8, %v27_v8  ;;  %v29_v16 = vld [vmem:[%s3351_s0 + $0x88] sm:$0xff] }
  0x2b   :  { %156 = vadd.xlane.f32.xlu1 %v84_v21  ;;  %v30_v21 = vld [vmem:[%s3351_s0 + $0x90] sm:$0xff] }
  0x2c   :  { %v1057_v26 = vadd.f32 %v1056_v19, %v1026_v15  ;;  %v1898_v15 = vld [vmem:[%s3351_s0 + $0x118] sm:$0xff]  ;;  %v1908_v19 = vld [vmem:[%s3351_s0 + $0x120] sm:$0xff]  ;;  %v94_v23 = vmul.f32 %v30_v21, %v30_v21  ;;  %v61_v21 = vld [vmem:[%s3351_s0 + $0x188] sm:$0xff] }
  0x2d   :  { %v111_v17 = vmul.f32 %v1898_v15, %v1898_v15  ;;  %v112_v22 = vmul.f32 %v1908_v19, %v1908_v19 }
  0x2e   :  { %v1058_v29 = vadd.f32 %v1057_v26, %v1027_v18  ;;  %v93_v18 = vmul.f32 %v29_v16, %v29_v16  ;;  %v31_v26 = vld [vmem:[%s3351_s0 + $0x98] sm:$0xff]  ;;  %v42_v16 = vld [vmem:[%s3351_s0 + $0xf0] sm:$0xff] }
  0x2f   :  { %158 = vadd.xlane.f32.xlu1 %v85_v31  ;;  %v32_v31 = vld [vmem:[%s3351_s0 + $0xa0] sm:$0xff] }
  0x30   :  { %v1059_v35 = vadd.f32 %v1058_v29, %v1028_v25  ;;  %v1918_v25 = vld [vmem:[%s3351_s0 + $0x128] sm:$0xff]  ;;  %v1928_v29 = vld [vmem:[%s3351_s0 + $0x130] sm:$0xff]  ;;  %v96_v33 = vmul.f32 %v32_v31, %v32_v31  ;;  %v63_v31 = vld [vmem:[%s3351_s0 + $0x198] sm:$0xff] }
  0x31   :  { %v113_v27 = vmul.f32 %v1918_v25, %v1918_v25  ;;  %v114_v32 = vmul.f32 %v1928_v29, %v1928_v29 }
  0x32   :  { %v1060_v39 = vadd.f32 %v1059_v35, %v1029_v28  ;;  %v95_v28 = vmul.f32 %v31_v26, %v31_v26  ;;  %v33_v35 = vld [vmem:[%s3351_s0 + $0xa8] sm:$0xff] }
  0x33   :  { %160 = vadd.xlane.f32.xlu1 %v86_v40  ;;  %v34_v40 = vld [vmem:[%s3351_s0 + $0xb0] sm:$0xff] }
  0x34   :  { %v1061_v44 = vadd.f32 %v1060_v39, %v1030_v34  ;;  %v51_v34 = vld [vmem:[%s3351_s0 + $0x138] sm:$0xff]  ;;  %v52_v39 = vld [vmem:[%s3351_s0 + $0x140] sm:$0xff]  ;;  %v98_v42 = vmul.f32 %v34_v40, %v34_v40 }
  0x35   :  { %v115_v36 = vmul.f32 %v51_v34, %v51_v34  ;;  %v116_v41 = vmul.f32 %v52_v39, %v52_v39  ;;  %v67_v40 = vld [vmem:[%s3351_s0 + $0x1b8] sm:$0xff] }
  0x36   :  { %v1062_v48 = vadd.f32 %v1061_v44, %v1031_v37  ;;  %v97_v37 = vmul.f32 %v33_v35, %v33_v35  ;;  %v35_v44 = vld [vmem:[%s3351_s0 + $0xb8] sm:$0xff]  ;;  %v65_v35 = vld [vmem:[%s3351_s0 + $0x1a8] sm:$0xff] }
  0x37   :  { %162 = vadd.xlane.f32.xlu1 %v87_v49  ;;  %v36_v49 = vld [vmem:[%s3351_s0 + $0xc0] sm:$0xff] }
  0x38   :  { %v1063_v53 = vadd.f32 %v1062_v48, %v1032_v43  ;;  %v53_v43 = vld [vmem:[%s3351_s0 + $0x148] sm:$0xff]  ;;  %v54_v48 = vld [vmem:[%s3351_s0 + $0x150] sm:$0xff]  ;;  %v100_v51 = vmul.f32 %v36_v49, %v36_v49 }
  0x39   :  { %v117_v45 = vmul.f32 %v53_v43, %v53_v43  ;;  %v118_v50 = vmul.f32 %v54_v48, %v54_v48  ;;  %v68_v43 = vld [vmem:[%s3351_s0 + $0x1c0] sm:$0xff]  ;;  %v70_v49 = vld [vmem:[%s3351_s0 + $0x1d0] sm:$0xff] }
  0x3a   :  { %v1064_v57 = vadd.f32 %v1063_v53, %v1033_v47  ;;  %v99_v47 = vmul.f32 %v35_v44, %v35_v44  ;;  %v37_v53 = vld [vmem:[%s3351_s0 + $0xc8] sm:$0xff]  ;;  %v132_v44 = vmul.f32 %v68_v43, %v68_v43 }
  0x3b   :  { %164 = vadd.xlane.f32.xlu1 %v88_v58  ;;  %v38_v58 = vld [vmem:[%s3351_s0 + $0xd0] sm:$0xff] }
  0x3c   :  { %v1065_v61 = vadd.f32 %v1064_v57, %v1034_v52  ;;  %v55_v52 = vld [vmem:[%s3351_s0 + $0x158] sm:$0xff]  ;;  %v56_v57 = vld [vmem:[%s3351_s0 + $0x160] sm:$0xff] }
  0x3d   :  { %v119_v55 = vmul.f32 %v55_v52, %v55_v52  ;;  %v120_v59 = vmul.f32 %v56_v57, %v56_v57  ;;  %v71_v52 = vld [vmem:[%s3351_s0 + $0x1d8] sm:$0xff] }
  0x3e   :  { %v1066_v63 = vadd.f32 %v1065_v61, %v1035_v56  ;;  %v101_v56 = vmul.f32 %v37_v53, %v37_v53  ;;  %v57_v61 = vld [vmem:[%s3351_s0 + $0x168] sm:$0xff]  ;;  %v135_v53 = vmul.f32 %v71_v52, %v71_v52 }
  0x3f   :  { %166 = vadd.xlane.f32.xlu1 %v89_v0  ;;  %v121_v0 = vmul.f32 %v57_v61, %v57_v61  ;;  %v74_v61 = vld [vmem:[%s3351_s0 + $0x1f0] sm:$0xff] }
  0x40   :  { %v1067_v3 = vadd.f32 %v1066_v63, %v1036_v60  ;;  %v102_v60 = vmul.f32 %v38_v58, %v38_v58  ;;  %v39_v63 = vld [vmem:[%s3351_s0 + $0xd8] sm:$0xff]  ;;  %v73_v58 = vld [vmem:[%s3351_s0 + $0x1e8] sm:$0xff] }
  0x41   :  { %v103_v2 = vmul.f32 %v39_v63, %v39_v63  ;;  %v138_v63 = vmul.f32 %v74_v61, %v74_v61 }
  0x42   :  { %1068 = vadd.xlane.f32.xlu0 %v1067_v3  ;;  %v58_v3 = vld [vmem:[%s3351_s0 + $0x170] sm:$0xff] }
  0x43   :  { %168 = vadd.xlane.f32.xlu1 %v90_v5  ;;  %v122_v5 = vmul.f32 %v58_v3, %v58_v3 }
  0x46   :  { %140 = vadd.xlane.f32.xlu0 %v76_v4  ;;  %v40_v4 = vld [vmem:[%s3351_s0 + $0xe0] sm:$0xff] }
  0x47   :  { %170 = vadd.xlane.f32.xlu1 %v91_v10  ;;  %v104_v8 = vmul.f32 %v40_v4, %v40_v4  ;;  %v41_v10 = vld [vmem:[%s3351_s0 + $0xe8] sm:$0xff] }
  0x4a   :  { %206 = vadd.xlane.f32.xlu0 %v109_v9  ;;  %v59_v9 = vld [vmem:[%s3351_s0 + $0x178] sm:$0xff] }
  0x4b   :  { %172 = vadd.xlane.f32.xlu1 %v92_v14  ;;  %v123_v12 = vmul.f32 %v59_v9, %v59_v9  ;;  %v60_v14 = vld [vmem:[%s3351_s0 + $0x180] sm:$0xff] }
  0x4e   :  { %208 = vadd.xlane.f32.xlu0 %v110_v13  ;;  %v105_v13 = vmul.f32 %v41_v10, %v41_v10 }
  0x4f   :  { %174 = vadd.xlane.f32.xlu1 %v93_v18  ;;  %v106_v18 = vmul.f32 %v42_v16, %v42_v16 }
  0x52   :  { %210 = vadd.xlane.f32.xlu0 %v111_v17  ;;  %v124_v17 = vmul.f32 %v60_v14, %v60_v14 }
  0x53   :  { %176 = vadd.xlane.f32.xlu1 %v94_v23  ;;  %v125_v23 = vmul.f32 %v61_v21, %v61_v21 }
  0x56   :  { %212 = vadd.xlane.f32.xlu0 %v112_v22  ;;  %v43_v22 = vld [vmem:[%s3351_s0 + $0xf8] sm:$0xff] }
  0x57   :  { %178 = vadd.xlane.f32.xlu1 %v95_v28  ;;  %v107_v26 = vmul.f32 %v43_v22, %v43_v22 }
  0x5a   :  { %214 = vadd.xlane.f32.xlu0 %v113_v27  ;;  %v62_v27 = vld [vmem:[%s3351_s0 + $0x190] sm:$0xff] }
  0x5b   :  { %180 = vadd.xlane.f32.xlu1 %v96_v33  ;;  %v126_v28 = vmul.f32 %v62_v27, %v62_v27  ;;  %v64_v33 = vld [vmem:[%s3351_s0 + $0x1a0] sm:$0xff] }
  0x5c   :  { %v128_v34 = vmul.f32 %v64_v33, %v64_v33 }
  0x5e   :  { %216 = vadd.xlane.f32.xlu0 %v114_v32  ;;  %v127_v32 = vmul.f32 %v63_v31, %v63_v31 }
  0x5f   :  { %182 = vadd.xlane.f32.xlu1 %v97_v37  ;;  %v66_v37 = vld [vmem:[%s3351_s0 + $0x1b0] sm:$0xff] }
  0x60   :  { %v130_v39 = vmul.f32 %v66_v37, %v66_v37 }
  0x62   :  { %218 = vadd.xlane.f32.xlu0 %v115_v36  ;;  %v129_v36 = vmul.f32 %v65_v35, %v65_v35 }
  0x63   :  { %184 = vadd.xlane.f32.xlu1 %v98_v42  ;;  %v131_v42 = vmul.f32 %v67_v40, %v67_v40 }
  0x66   :  { %220 = vadd.xlane.f32.xlu0 %v116_v41 }
  0x67   :  { %186 = vadd.xlane.f32.xlu1 %v99_v47  ;;  %v69_v47 = vld [vmem:[%s3351_s0 + $0x1c8] sm:$0xff] }
  0x68   :  { %v133_v48 = vmul.f32 %v69_v47, %v69_v47 }
  0x6a   :  { %222 = vadd.xlane.f32.xlu0 %v117_v45 }
  0x6b   :  { %188 = vadd.xlane.f32.xlu1 %v100_v51  ;;  %v134_v51 = vmul.f32 %v70_v49, %v70_v49 }
  0x6e   :  { %224 = vadd.xlane.f32.xlu0 %v118_v50 }
  0x6f   :  { %190 = vadd.xlane.f32.xlu1 %v101_v56  ;;  %v72_v56 = vld [vmem:[%s3351_s0 + $0x1e0] sm:$0xff] }
  0x70   :  { %v136_v57 = vmul.f32 %v72_v56, %v72_v56 }
  0x72   :  { %226 = vadd.xlane.f32.xlu0 %v119_v55 }
  0x73   :  { %192 = vadd.xlane.f32.xlu1 %v102_v60  ;;  %v137_v60 = vmul.f32 %v73_v58, %v73_v58 }
  0x76   :  { %228 = vadd.xlane.f32.xlu0 %v120_v59 }
  0x77   :  { %194 = vadd.xlane.f32.xlu1 %v103_v2  ;;  %v75_v2 = vld [vmem:[%s3351_s0 + $0x1f8] sm:$0xff] }
  0x78   :  { %v139_v3 = vmul.f32 %v75_v2, %v75_v2 }
  0x7a   :  { %230 = vadd.xlane.f32.xlu0 %v121_v0 }
  0x7b   :  { %196 = vadd.xlane.f32.xlu1 %v104_v8 }
  0x7e   :  { %232 = vadd.xlane.f32.xlu0 %v122_v5 }
  0x7f   :  { %198 = vadd.xlane.f32.xlu1 %v105_v13 }
  0x82   :  { %234 = vadd.xlane.f32.xlu0 %v123_v12 }
  0x83   :  { %200 = vadd.xlane.f32.xlu1 %v106_v18 }
  0x86   :  { %236 = vadd.xlane.f32.xlu0 %v124_v17 }
  0x87   :  { %202 = vadd.xlane.f32.xlu1 %v107_v26 }
  0x8a   :  { %238 = vadd.xlane.f32.xlu0 %v125_v23 }
  0x8e   :  { %240 = vadd.xlane.f32.xlu0 %v126_v28 }
  0x92   :  { %242 = vadd.xlane.f32.xlu0 %v127_v32 }
  0x94   :  { %v143_v41 = vpop.xlane.xlu1 %142 }
  0x95   :  { %1318 = vrsqrt.f32 %v143_v41  ;;  %vm277_vm0 = vcmp.eq.f32.partialorder %v143_v41, inf  ;;  %v280_v12 = vand.u32 2147483648, %v143_v41  ;;  %vm279_vm1 = vcmp.eq.f32.partialorder %v143_v41, 0.0 }
  0x96   :  { %244 = vadd.xlane.f32.xlu0 %v128_v34 }
  0x98   :  { %v2022_v45 = vpop.xlane.xlu1 %204 }
  0x99   :  { %1320 = vrsqrt.f32 %v2022_v45  ;;  %vm494_vm2 = vcmp.eq.f32.partialorder %v2022_v45, inf  ;;  %v497_v21 = vand.u32 2147483648, %v2022_v45  ;;  %vm496_vm3 = vcmp.eq.f32.partialorder %v2022_v45, 0.0 }
  0x9a   :  { %246 = vadd.xlane.f32.xlu0 %v129_v36 }
  0x9c   :  { %v2030_v50 = vpop.xlane.xlu1 %144 }
  0x9d   :  { %1322 = vrsqrt.f32 %v2030_v50  ;;  %vm284_vm4 = vcmp.eq.f32.partialorder %v2030_v50, inf  ;;  %vm286_vm5 = vcmp.eq.f32.partialorder %v2030_v50, 0.0  ;;  %v287_v32 = vand.u32 2147483648, %v2030_v50 }
  0x9e   :  { %248 = vadd.xlane.f32.xlu0 %v130_v39 }
  0x9f   :  { %v1319_v5 = vpop.eup %1318 }
  0xa0   :  { %v2035_v55 = vpop.xlane.xlu1 %146  ;;  %v276_v9 = vmul.f32 %v1319_v5, %v143_v41 }
  0xa1   :  { %1324 = vrsqrt.f32 %v2035_v55  ;;  %vm291_vm6 = vcmp.eq.f32.partialorder %v2035_v55, inf  ;;  %vm293_vm7 = vcmp.eq.f32.partialorder %v2035_v55, 0.0  ;;  %v294_v37 = vand.u32 2147483648, %v2035_v55 }
  0xa2   :  { %250 = vadd.xlane.f32.xlu0 %v131_v42  ;;  %v278_v16 = vsel %vm277_vm0, %v143_v41, %v276_v9 }
  0xa3   :  { %v1321_v8 = vpop.eup %1320  ;;  %v281_v22 = vsel %vm279_vm1, %v280_v12, %v278_v16 }
  0xa4   :  { %v493_v13 = vmul.f32 %v1321_v8, %v2022_v45  ;;  %v717_v35 = vmax.f32 %v281_v22, 1e-12 }
  0xa6   :  { %252 = vadd.xlane.f32.xlu0 %v132_v44  ;;  %v495_v23 = vsel %vm494_vm2, %v2022_v45, %v493_v13 }
  0xa7   :  { %v1323_v14 = vpop.eup %1322  ;;  %v498_v36 = vsel %vm496_vm3, %v497_v21, %v495_v23 }
  0xa8   :  { %v2043_v59 = vpop.xlane.xlu1 %148  ;;  %v283_v26 = vmul.f32 %v1323_v14, %v2030_v50  ;;  %v748_v47 = vmax.f32 %v498_v36, 1e-12 }
  0xa9   :  { %1326 = vrsqrt.f32 %v2043_v59  ;;  %vm298_vm8 = vcmp.eq.f32.partialorder %v2043_v59, inf  ;;  %vm300_vm9 = vcmp.eq.f32.partialorder %v2043_v59, 0.0  ;;  %v301_v44 = vand.u32 2147483648, %v2043_v59 }
  0xaa   :  { %254 = vadd.xlane.f32.xlu0 %v133_v48  ;;  %v285_v40 = vsel %vm284_vm4, %v2030_v50, %v283_v26 }
  0xab   :  { %v1325_v17 = vpop.eup %1324  ;;  %v288_v52 = vsel %vm286_vm5, %v287_v32, %v285_v40 }
  0xac   :  { %v2049_v0 = vpop.xlane.xlu1 %150  ;;  %v290_v28 = vmul.f32 %v1325_v17, %v2035_v55 }
  0xad   :  { %1328 = vrsqrt.f32 %v2049_v0  ;;  %vm305_vm10 = vcmp.eq.f32.partialorder %v2049_v0, inf  ;;  %vm307_vm11 = vcmp.eq.f32.partialorder %v2049_v0, 0.0 }
  0xae   :  { %256 = vadd.xlane.f32.xlu0 %v134_v51  ;;  %v292_v43 = vsel %vm291_vm6, %v2035_v55, %v290_v28 }
  0xaf   :  { %v295_v58 = vsel %vm293_vm7, %v294_v37, %v292_v43 }
  0xb0   :  { %v2057_v4 = vpop.xlane.xlu1 %152  ;;  %v719_v8 = vmax.f32 %v295_v58, 1e-12 }
  0xb1   :  { %1330 = vrsqrt.f32 %v2057_v4  ;;  %vm312_vm12 = vcmp.eq.f32.partialorder %v2057_v4, inf  ;;  %v315_v61 = vand.u32 2147483648, %v2057_v4  ;;  %vm314_vm13 = vcmp.eq.f32.partialorder %v2057_v4, 0.0 }
  0xb2   :  { %258 = vadd.xlane.f32.xlu0 %v135_v53  ;;  %v308_v53 = vand.u32 2147483648, %v2049_v0 }
  0xb3   :  { %v1327_v18 = vpop.eup %1326 }
  0xb4   :  { %v2061_v10 = vpop.xlane.xlu1 %154  ;;  %v297_v33 = vmul.f32 %v1327_v18, %v2043_v59 }
  0xb5   :  { %1332 = vrsqrt.f32 %v2061_v10  ;;  %vm319_vm14 = vcmp.eq.f32.partialorder %v2061_v10, inf  ;;  %v322_v13 = vand.u32 2147483648, %v2061_v10  ;;  %vm321_vm15 = vcmp.eq.f32.partialorder %v2061_v10, 0.0 }
  0xb6   :  { %260 = vadd.xlane.f32.xlu0 %v136_v57  ;;  %v299_v48 = vsel %vm298_vm8, %v2043_v59, %v297_v33 }
  0xb7   :  { %v1329_v27 = vpop.eup %1328  ;;  %v302_v50 = vsel %vm300_vm9, %v301_v44, %v299_v48 }
  0xb8   :  { %v2073_v31 = vpop.xlane.xlu1 %156  ;;  %v304_v41 = vmul.f32 %v1329_v27, %v2049_v0  ;;  %v720_v59 = vmax.f32 %v302_v50, 1e-12 }
  0xb9   :  { %1334 = vrsqrt.f32 %v2073_v31  ;;  %vm326_vm0 = vcmp.eq.f32.partialorder %v2073_v31, inf  ;;  %v329_v36 = vand.u32 2147483648, %v2073_v31  ;;  %vm328_vm3 = vcmp.eq.f32.partialorder %v2073_v31, 0.0 }
  0xba   :  { %262 = vadd.xlane.f32.xlu0 %v137_v60  ;;  %v306_v60 = vsel %vm305_vm10, %v2049_v0, %v304_v41 }
  0xbb   :  { %v1331_v34 = vpop.eup %1330  ;;  %v309_v9 = vsel %vm307_vm11, %v308_v53, %v306_v60 }
  0xbc   :  { %v311_v49 = vmul.f32 %v1331_v34, %v2057_v4  ;;  %v2095_v56 = vpop.xlane.xlu1 %158  ;;  %v721_v18 = vmax.f32 %v309_v9, 1e-12 }
  0xbd   :  { %1336 = vrsqrt.f32 %v2095_v56  ;;  %vm333_vm4 = vcmp.eq.f32.partialorder %v2095_v56, inf  ;;  %v336_v58 = vand.u32 2147483648, %v2095_v56  ;;  %vm335_vm7 = vcmp.eq.f32.partialorder %v2095_v56, 0.0 }
  0xbe   :  { %264 = vadd.xlane.f32.xlu0 %v138_v63  ;;  %v313_v5 = vsel %vm312_vm12, %v2057_v4, %v311_v49 }
  0xbf   :  { %v1333_v45 = vpop.eup %1332  ;;  %v316_v14 = vsel %vm314_vm13, %v315_v61, %v313_v5 }
  0xc0   :  { %v318_v2 = vmul.f32 %v1333_v45, %v2061_v10  ;;  %v2119_v21 = vpop.xlane.xlu1 %160  ;;  %v722_v23 = vmax.f32 %v316_v14, 1e-12 }
  0xc1   :  { %vm340_vm12 = vcmp.eq.f32.partialorder %v2119_v21, inf  ;;  %vm342_vm13 = vcmp.eq.f32.partialorder %v2119_v21, 0.0 }
  0xc2   :  { %266 = vadd.xlane.f32.xlu0 %v139_v3  ;;  %v718_v3 = vmax.f32 %v288_v52, 1e-12  ;;  %v320_v16 = vsel %vm319_vm14, %v2061_v10, %v318_v2 }
  0xc3   :  { %v1335_v4 = vpop.eup %1334  ;;  %v323_v26 = vsel %vm321_vm15, %v322_v13, %v320_v16 }
  0xc4   :  { %v325_v27 = vmul.f32 %v1335_v4, %v2073_v31  ;;  %v723_v33 = vmax.f32 %v323_v26, 1e-12  ;;  %v2134_v37 = vpop.xlane.xlu1 %162 }
  0xc6   :  { %v327_v40 = vsel %vm326_vm0, %v2073_v31, %v325_v27  ;;  %vm347_vm0 = vcmp.eq.f32.partialorder %v2134_v37, inf }
  0xc7   :  { %v1337_v28 = vpop.eup %1336  ;;  %v330_v53 = vsel %vm328_vm3, %v329_v36, %v327_v40 }
  0xc8   :  { %v332_v43 = vmul.f32 %v1337_v28, %v2095_v56  ;;  %v2158_v50 = vpop.xlane.xlu1 %164  ;;  %v724_v5 = vmax.f32 %v330_v53, 1e-12 }
  0xcf   :  { %v1069_v39 = vpop.xlane.xlu0 %1068 }
  0xd0   :  { %v1070_v42 = vrot.slane %v1069_v39, 4 }
  0xd2   :  { %v1071_v51 = vadd.f32 %v1070_v42, %v1069_v39 }
  0xd3   :  { %v2097_v57 = vpop.xlane.xlu0 %140 }
  0xd4   :  { %v1072_v63 = vrot.slane %v1071_v51, 2  ;;  %1338 = vrsqrt.f32 %v2097_v57  ;;  %vm270_vm1 = vcmp.eq.f32.partialorder %v2097_v57, inf  ;;  %v273_v32 = vand.u32 2147483648, %v2097_v57 }
  0xd5   :  { %1340 = vrcp.f32 %v717_v35  ;;  %vm272_vm2 = vcmp.eq.f32.partialorder %v2097_v57, 0.0 }
  0xd6   :  { %v1073_v55 = vadd.f32 %v1072_v63, %v1071_v51  ;;  %1342 = vrcp.f32 %v748_v47  ;;  %v334_v63 = vsel %vm333_vm4, %v2095_v56, %v332_v43  ;;  %vm354_vm4 = vcmp.eq.f32.partialorder %v2158_v50, inf }
  0xd7   :  { %v2113_v12 = vpop.xlane.xlu0 %206  ;;  %v337_v16 = vsel %vm335_vm7, %v336_v58, %v334_v63 }
  0xd8   :  { %1344 = vrsqrt.f32 %v2113_v12  ;;  %v1074_v17 = vrot.slane %v1073_v55, 1  ;;  %vm501_vm5 = vcmp.eq.f32.partialorder %v2113_v12, inf  ;;  %v504_v47 = vand.u32 2147483648, %v2113_v12 }
  0xd9   :  { %1346 = vrcp.f32 %v718_v3  ;;  %vm503_vm6 = vcmp.eq.f32.partialorder %v2113_v12, 0.0  ;;  %v725_v28 = vmax.f32 %v337_v16, 1e-12 }
  0xda   :  { %1348 = vrcp.f32 %v719_v8  ;;  %v1075_v22 = vadd.f32 %v1074_v17, %v1073_v55 }
  0xdb   :  { %v2121_v0 = vpop.xlane.xlu0 %208  ;;  %1350 = vrcp.f32 %v720_v59 }
  0xdc   :  { %1352 = vrsqrt.f32 %v2121_v0  ;;  %1301 = vpush %v1075_v22  ;;  %vm508_vm8 = vcmp.eq.f32.partialorder %v2121_v0, inf  ;;  %v511_v3 = vand.u32 2147483648, %v2121_v0  ;;  %vm510_vm9 = vcmp.eq.f32.partialorder %v2121_v0, 0.0 }
  0xdd   :  { %1354 = vrcp.f32 %v721_v18 }
  0xde   :  { %v1339_v10 = vpop.eup %1338  ;;  %1356 = vrsqrt.f32 %v2119_v21 }
  0xdf   :  { %v269_v34 = vmul.f32 %v1339_v10, %v2097_v57  ;;  %v2131_v35 = vpop.xlane.xlu0 %210  ;;  %1358 = vrcp.f32 %v722_v23  ;;  %v1341_v39 = vpop.eup %1340  ;;  %v343_v10 = vand.u32 2147483648, %v2119_v21 }
  0xe0   :  { %1360 = vrsqrt.f32 %v2131_v35  ;;  %v1343_v41 = vpop.eup %1342  ;;  %v2170_v13 = vmul.f32 %v1341_v39, %v1725_v20  ;;  %vm515_vm10 = vcmp.eq.f32.partialorder %v2131_v35, inf  ;;  %v518_v56 = vand.u32 2147483648, %v2131_v35 }
  0xe1   :  { %v271_v42 = vsel %vm270_vm1, %v2097_v57, %v269_v34  ;;  %1362 = vrsqrt.f32 %v2134_v37  ;;  %v845_v14 = vmul.f32 %v1343_v41, %v1732_v24  ;;  %vm517_vm11 = vcmp.eq.f32.partialorder %v2131_v35, 0.0 }
  0xe2   :  { %v1345_v44 = vpop.eup %1344  ;;  %v274_v45 = vsel %vm272_vm2, %v273_v32, %v271_v42  ;;  %1364 = vrcp.f32 %v723_v33  ;;  %vm349_vm1 = vcmp.eq.f32.partialorder %v2134_v37, 0.0 }
  0xe3   :  { %v1347_v48 = vpop.eup %1346  ;;  %v716_v49 = vmax.f32 %v274_v45, 1e-12  ;;  %v500_v51 = vmul.f32 %v1345_v44, %v2113_v12  ;;  %v2147_v52 = vpop.xlane.xlu0 %212 }
  0xe4   :  { %v1349_v57 = vpop.eup %1348  ;;  %1366 = vrsqrt.f32 %v2147_v52  ;;  %v2179_v17 = vmul.f32 %v1347_v48, %v1745_v30  ;;  %vm522_vm14 = vcmp.eq.f32.partialorder %v2147_v52, inf  ;;  %v525_v40 = vand.u32 2147483648, %v2147_v52 }
  0xe5   :  { %v1351_v60 = vpop.eup %1350  ;;  %1368 = vrcp.f32 %v716_v49  ;;  %v502_v61 = vsel %vm501_vm5, %v2113_v12, %v500_v51  ;;  %v2185_v20 = vmul.f32 %v1349_v57, %v1758_v38  ;;  %vm524_vm15 = vcmp.eq.f32.partialorder %v2147_v52, 0.0 }
  0xe6   :  { %v1353_v2 = vpop.eup %1352  ;;  %v505_v31 = vsel %vm503_vm6, %v504_v47, %v502_v61  ;;  %1370 = vrsqrt.f32 %v2158_v50  ;;  %v2205_v33 = vmul.f32 %v1351_v60, %v1771_v46  ;;  %v350_v48 = vand.u32 2147483648, %v2134_v37 }
  0xe7   :  { %v2162_v55 = vpop.eup %1354  ;;  %v749_v8 = vmax.f32 %v505_v31, 1e-12  ;;  %v507_v9 = vmul.f32 %v1353_v2, %v2121_v0  ;;  %v2166_v12 = vpop.xlane.xlu0 %214  ;;  %vm356_vm6 = vcmp.eq.f32.partialorder %v2158_v50, 0.0 }
  0xe8   :  { %v1357_v59 = vpop.eup %1356  ;;  %1372 = vrsqrt.f32 %v2166_v12  ;;  %vm529_vm2 = vcmp.eq.f32.partialorder %v2166_v12, inf  ;;  %vm531_vm3 = vcmp.eq.f32.partialorder %v2166_v12, 0.0 }
  0xe9   :  { %v2176_v4 = vpop.eup %1358  ;;  %1374 = vrcp.f32 %v749_v8  ;;  %v509_v18 = vsel %vm508_vm8, %v2121_v0, %v507_v9  ;;  %v2193_v0 = vpop.xlane.xlu1 %166  ;;  %v339_v34 = vmul.f32 %v1357_v59, %v2119_v21  ;;  %v357_v9 = vand.u32 2147483648, %v2158_v50 }
  0xea   :  { %v1361_v22 = vpop.eup %1360  ;;  %v512_v24 = vsel %vm510_vm9, %v511_v3, %v509_v18  ;;  %1376 = vrcp.f32 %v724_v5  ;;  %v2238_v3 = vmul.f32 %v2162_v55, %v1784_v54  ;;  %vm361_vm7 = vcmp.eq.f32.partialorder %v2193_v0, inf }
  0xeb   :  { %v1363_v23 = vpop.eup %1362  ;;  %v750_v26 = vmax.f32 %v512_v24, 1e-12  ;;  %v514_v27 = vmul.f32 %v1361_v22, %v2131_v35  ;;  %v2191_v30 = vpop.xlane.xlu0 %216 }
  0xec   :  { %v2195_v38 = vpop.eup %1364  ;;  %1378 = vrsqrt.f32 %v2191_v30  ;;  %v346_v47 = vmul.f32 %v1363_v23, %v2134_v37  ;;  %vm536_vm5 = vcmp.eq.f32.partialorder %v2191_v30, inf  ;;  %vm538_vm8 = vcmp.eq.f32.partialorder %v2191_v30, 0.0 }
  0xed   :  { %1380 = vrcp.f32 %v750_v26  ;;  %v516_v32 = vsel %vm515_vm10, %v2131_v35, %v514_v27  ;;  %v2241_v5 = vpop.xlane.xlu1 %168  ;;  %v2268_v26 = vmul.f32 %v2176_v4, %v1797_v62  ;;  %vm363_vm10 = vcmp.eq.f32.partialorder %v2193_v0, 0.0 }
  0xee   :  { %v1367_v36 = vpop.eup %1366  ;;  %v519_v39 = vsel %vm517_vm11, %v518_v56, %v516_v32  ;;  %1382 = vrsqrt.f32 %v2193_v0  ;;  %v348_v54 = vsel %vm347_vm0, %v2134_v37, %v346_v47  ;;  %vm368_vm11 = vcmp.eq.f32.partialorder %v2241_v5, inf }
  0xef   :  { %v1369_v41 = vpop.eup %1368  ;;  %v751_v42 = vmax.f32 %v519_v39, 1e-12  ;;  %v521_v43 = vmul.f32 %v1367_v36, %v2147_v52  ;;  %v2213_v35 = vpop.xlane.xlu0 %218  ;;  %1384 = vrcp.f32 %v725_v28  ;;  %v364_v28 = vand.u32 2147483648, %v2193_v0 }
  0xf0   :  { %v781_v46 = vmul.f32 %v1369_v41, %v1868_v1  ;;  %1386 = vrsqrt.f32 %v2213_v35  ;;  %v1371_v44 = vpop.eup %1370  ;;  %v532_v1 = vand.u32 2147483648, %v2166_v12  ;;  %v2277_v36 = vsel %vm349_vm1, %v350_v48, %v348_v54 }
  0xf1   :  { %1388 = vrcp.f32 %v751_v42  ;;  %v523_v45 = vsel %vm522_vm14, %v2147_v52, %v521_v43  ;;  %v341_v52 = vsel %vm340_vm12, %v2119_v21, %v339_v34  ;;  %v539_v34 = vand.u32 2147483648, %v2191_v30  ;;  %v2280_v39 = vpop.xlane.xlu1 %170 }
  0xf2   :  { %v1373_v49 = vpop.eup %1372  ;;  %v908_v51 = vadd.f32 %v845_v14, %v781_v46  ;;  %v526_v53 = vsel %vm524_vm15, %v525_v40, %v523_v45  ;;  %v353_v41 = vmul.f32 %v1371_v44, %v2158_v50  ;;  %vm543_vm9 = vcmp.eq.f32.partialorder %v2213_v35, inf }
  0xf3   :  { %v1375_v57 = vpop.eup %1374  ;;  %v752_v58 = vmax.f32 %v526_v53, 1e-12  ;;  %v528_v60 = vmul.f32 %v1373_v49, %v2166_v12  ;;  %v2226_v61 = vpop.xlane.xlu0 %220  ;;  %v2296_v46 = vmul.f32 %v2195_v38, %v1810_v6  ;;  %v546_v45 = vand.u32 2147483648, %v2213_v35 }
  0xf4   :  { %v2231_v63 = vpop.eup %1376  ;;  %v2233_v2 = vmul.f32 0.5, %v908_v51  ;;  %v847_v31 = vmul.f32 %v1375_v57, %v1878_v7  ;;  %1390 = vrsqrt.f32 %v2226_v61  ;;  %v344_v7 = vsel %vm342_vm13, %v343_v10, %v341_v52 }
  0xf5   :  { %1392 = vrcp.f32 %v752_v58  ;;  %v530_v8 = vsel %vm529_vm2, %v2166_v12, %v528_v60  ;;  %v726_v27 = vmax.f32 %v344_v7, 1e-12  ;;  %vm545_vm12 = vcmp.eq.f32.partialorder %v2213_v35, 0.0  ;;  %v2318_v58 = vpop.xlane.xlu1 %172 }
  0xf6   :  { %v1379_v59 = vpop.eup %1378  ;;  %v909_v14 = vadd.f32 %v847_v31, %v2170_v13  ;;  %v533_v16 = vsel %vm531_vm3, %v532_v1, %v530_v8  ;;  %1394 = vrsqrt.f32 %v2241_v5  ;;  %v1193_v13 = vmul.f32 %v2233_v2, %v2233_v2 }
  0xf7   :  { %v1381_v55 = vpop.eup %1380  ;;  %v753_v18 = vmax.f32 %v533_v16, 1e-12  ;;  %v535_v22 = vmul.f32 %v1379_v59, %v2191_v30  ;;  %v2254_v12 = vpop.xlane.xlu0 %222  ;;  %v355_v51 = vsel %vm354_vm4, %v2158_v50, %v353_v41  ;;  %vm550_vm13 = vcmp.eq.f32.partialorder %v2226_v61, inf }
  0xf8   :  { %v1383_v24 = vpop.eup %1382  ;;  %v2259_v21 = vmul.f32 0.5, %v909_v14  ;;  %v849_v56 = vmul.f32 %v1381_v55, %v1888_v11  ;;  %1396 = vrsqrt.f32 %v2254_v12  ;;  %vm370_vm14 = vcmp.eq.f32.partialorder %v2241_v5, 0.0 }
  0xf9   :  { %v2264_v23 = vpop.eup %1384  ;;  %1398 = vrcp.f32 %v753_v18  ;;  %v537_v4 = vsel %vm536_vm5, %v2191_v30, %v535_v22  ;;  %v727_v30 = vmax.f32 %v2277_v36, 1e-12  ;;  %v360_v31 = vmul.f32 %v1383_v24, %v2193_v0 }
  0xfa   :  { %v1387_v10 = vpop.eup %1386  ;;  %v1194_v32 = vmul.f32 %v2259_v21, %v2259_v21  ;;  %v910_v11 = vadd.f32 %v849_v56, %v2179_v17  ;;  %1400 = vrcp.f32 %v726_v27  ;;  %v540_v49 = vsel %vm538_vm8, %v539_v34, %v537_v4 }
  0xfb   :  { %v1389_v62 = vpop.eup %1388  ;;  %v542_v40 = vmul.f32 %v1387_v10, %v2213_v35  ;;  %v2287_v17 = vpop.xlane.xlu0 %224  ;;  %v754_v52 = vmax.f32 %v540_v49, 1e-12  ;;  %v371_v16 = vand.u32 2147483648, %v2241_v5  ;;  %vm552_vm15 = vcmp.eq.f32.partialorder %v2226_v61, 0.0 }
  0xfc   :  { %v1225_v37 = vadd.f32 %v1194_v32, %v1193_v13  ;;  %v2290_v42 = vmul.f32 0.5, %v910_v11  ;;  %v851_v43 = vmul.f32 %v1389_v62, %v1898_v15  ;;  %1402 = vrsqrt.f32 %v2287_v17  ;;  %v1584_v32 = vld [vmem:[%s3351_s0 + $0x40] sm:$0xff] }
  0xfd   :  { %v544_v15 = vsel %vm543_vm9, %v2213_v35, %v542_v40  ;;  %1404 = vrsqrt.f32 %v2280_v39  ;;  %v553_v54 = vand.u32 2147483648, %v2226_v61  ;;  %v358_v55 = vsel %vm356_vm6, %v357_v9, %v355_v51 }
  0xfe   :  { %v1391_v47 = vpop.eup %1390  ;;  %v1195_v44 = vmul.f32 %v2290_v42, %v2290_v42  ;;  %v911_v48 = vadd.f32 %v851_v43, %v2185_v20  ;;  %v362_v50 = vsel %vm361_vm7, %v2193_v0, %v360_v31  ;;  %v2360_v11 = vmul.f32 %v1584_v32, %v2231_v63  ;;  %v2379_v43 = vpop.xlane.xlu1 %174 }
  0xff   :  { %v1393_v6 = vpop.eup %1392  ;;  %v2308_v38 = vpop.xlane.xlu0 %226  ;;  %v549_v57 = vmul.f32 %v1391_v47, %v2226_v61  ;;  %vm557_vm0 = vcmp.eq.f32.partialorder %v2254_v12, inf  ;;  %v728_v40 = vmax.f32 %v358_v55, 1e-12  ;;  %vm375_vm1 = vcmp.eq.f32.partialorder %v2280_v39, inf }
 0x100   :  { %v1226_v20 = vadd.f32 %v1225_v37, %v1195_v44  ;;  %v2314_v53 = vmul.f32 0.5, %v911_v48  ;;  %v853_v1 = vmul.f32 %v1393_v6, %v1908_v19  ;;  %v1395_v60 = vpop.eup %1394  ;;  %1406 = vrsqrt.f32 %v2308_v38 }
 0x101   :  { %v547_v19 = vsel %vm545_vm12, %v546_v45, %v544_v15  ;;  %1408 = vrsqrt.f32 %v2318_v58  ;;  %v551_v24 = vsel %vm550_vm13, %v2226_v61, %v549_v57  ;;  %v367_v9 = vmul.f32 %v1395_v60, %v2241_v5 }
 0x102   :  { %v1397_v8 = vpop.eup %1396  ;;  %v1196_v59 = vmul.f32 %v2314_v53, %v2314_v53  ;;  %v912_v14 = vadd.f32 %v853_v1, %v2205_v33  ;;  %1410 = vrcp.f32 %v754_v52  ;;  %v755_v13 = vmax.f32 %v547_v19, 1e-12 }
 0x103   :  { %v1399_v7 = vpop.eup %1398  ;;  %v2336_v18 = vpop.xlane.xlu0 %228  ;;  %v556_v10 = vmul.f32 %v1397_v8, %v2254_v12  ;;  %v554_v34 = vsel %vm552_vm15, %v553_v54, %v551_v24  ;;  %vm559_vm2 = vcmp.eq.f32.partialorder %v2254_v12, 0.0  ;;  %v560_v63 = vand.u32 2147483648, %v2254_v12 }
 0x104   :  { %v1227_v33 = vadd.f32 %v1226_v20, %v1196_v59  ;;  %v2339_v35 = vmul.f32 0.5, %v912_v14  ;;  %v855_v22 = vmul.f32 %v1399_v7, %v1918_v25  ;;  %1412 = vrsqrt.f32 %v2336_v18  ;;  %v2354_v25 = vpop.eup %1400  ;;  %v2411_v8 = vpop.xlane.xlu1 %176  ;;  %v1585_v14 = vld [vmem:[%s3351_s0 + $0x48] sm:$0xff] }
 0x105   :  { %1414 = vrcp.f32 %v727_v30  ;;  %v365_v61 = vsel %vm363_vm10, %v364_v28, %v362_v50  ;;  %v369_v37 = vsel %vm368_vm11, %v2241_v5, %v367_v9  ;;  %v756_v30 = vmax.f32 %v554_v34, 1e-12 }
 0x106   :  { %v1197_v56 = vmul.f32 %v2339_v35, %v2339_v35  ;;  %v913_v27 = vadd.f32 %v855_v22, %v2238_v3  ;;  %v1403_v36 = vpop.eup %1402  ;;  %1416 = vrcp.f32 %v755_v13  ;;  %v558_v47 = vsel %vm557_vm0, %v2254_v12, %v556_v10 }
 0x107   :  { %v2365_v3 = vpop.xlane.xlu0 %230  ;;  %v1405_v41 = vpop.eup %1404  ;;  %v563_v48 = vmul.f32 %v1403_v36, %v2287_v17  ;;  %vm377_vm3 = vcmp.eq.f32.partialorder %v2280_v39, 0.0  ;;  %v378_v28 = vand.u32 2147483648, %v2280_v39  ;;  %vm564_vm4 = vcmp.eq.f32.partialorder %v2287_v17, inf }
 0x108   :  { %v1228_v62 = vadd.f32 %v1227_v33, %v1197_v56  ;;  %v2367_v4 = vmul.f32 0.5, %v913_v27  ;;  %1418 = vrsqrt.f32 %v2365_v3  ;;  %v729_v6 = vmax.f32 %v365_v61, 1e-12  ;;  %v2447_v36 = vpop.xlane.xlu1 %178 }
 0x109   :  { %1420 = vrcp.f32 %v728_v40  ;;  %v561_v51 = vsel %vm559_vm2, %v560_v63, %v558_v47  ;;  %v372_v20 = vsel %vm370_vm14, %v371_v16, %v369_v37  ;;  %v374_v1 = vmul.f32 %v1405_v41, %v2280_v39  ;;  %v1587_v40 = vld [vmem:[%s3351_s0 + $0x58] sm:$0xff] }
 0x10a   :  { %v1198_v45 = vmul.f32 %v2367_v4, %v2367_v4  ;;  %v1407_v44 = vpop.eup %1406  ;;  %1422 = vrsqrt.f32 %v2379_v43  ;;  %vm566_vm5 = vcmp.eq.f32.partialorder %v2287_v17, 0.0  ;;  %v567_v57 = vand.u32 2147483648, %v2287_v17 }
 0x10b   :  { %v2388_v0 = vpop.xlane.xlu0 %232  ;;  %v1409_v15 = vpop.eup %1408  ;;  %1424 = vrcp.f32 %v756_v30  ;;  %v570_v60 = vmul.f32 %v1407_v44, %v2308_v38  ;;  %v565_v31 = vsel %vm564_vm4, %v2287_v17, %v563_v48  ;;  %vm571_vm6 = vcmp.eq.f32.partialorder %v2308_v38, inf  ;;  %v1588_v44 = vld [vmem:[%s3351_s0 + $0x138] sm:$0xff] }
 0x10c   :  { %v2392_v49 = vadd.f32 %v1228_v62, %v1198_v45  ;;  %v1411_v52 = vpop.eup %1410  ;;  %1426 = vrsqrt.f32 %v2388_v0  ;;  %v2417_v19 = vmul.f32 %v1585_v14, %v2264_v23  ;;  %v757_v16 = vmax.f32 %v561_v51, 1e-12 }
 0x10d   :  { %s1302_s7 = spop %1301  ;;  %vm382_vm7 = vcmp.eq.f32.partialorder %v2318_v58, inf  ;;  %v574_v54 = vand.u32 2147483648, %v2308_v38  ;;  %v730_v55 = vmax.f32 %v372_v20, 1e-12  ;;  %vm384_vm8 = vcmp.eq.f32.partialorder %v2318_v58, 0.0 }
 0x10e   :  { %v2407_v5 = vstv %s1302_s7  ;;  %v1413_v59 = vpop.eup %1412  ;;  %v568_v33 = vsel %vm566_vm5, %v567_v57, %v565_v31  ;;  %v572_v23 = vsel %vm571_vm6, %v2308_v38, %v570_v60  ;;  %vm573_vm9 = vcmp.eq.f32.partialorder %v2308_v38, 0.0  ;;  %v1586_v38 = vld [vmem:[%s3351_s0 + $0x50] sm:$0xff] }
 0x10f   :  { %v2409_v12 = vpop.xlane.xlu0 %234  ;;  %1428 = vrsqrt.f32 %v2407_v5  ;;  %v1415_v7 = vpop.eup %1414  ;;  %v857_v22 = vmul.f32 %v1411_v52, %v1928_v29  ;;  %v577_v24 = vmul.f32 %v1413_v59, %v2336_v18  ;;  %v376_v13 = vsel %vm375_vm1, %v2280_v39, %v374_v1 }
 0x110   :  { %1430 = vrcp.f32 %v729_v6  ;;  %v381_v50 = vmul.f32 %v1409_v15, %v2318_v58  ;;  %v1417_v9 = vpop.eup %1416  ;;  %v2442_v56 = vmul.f32 %v1586_v38, %v2354_v25  ;;  %vm578_vm10 = vcmp.eq.f32.partialorder %v2336_v18, inf }
 0x111   :  { %1432 = vrsqrt.f32 %v2411_v8  ;;  %v385_v29 = vand.u32 2147483648, %v2318_v58  ;;  %v758_v10 = vmax.f32 %v568_v33, 1e-12  ;;  %v575_v32 = vsel %vm573_vm9, %v574_v54, %v572_v23 }
 0x112   :  { %1434 = vrcp.f32 %v757_v16  ;;  %v1419_v27 = vpop.eup %1418  ;;  %v392_v34 = vand.u32 2147483648, %v2379_v43  ;;  %v2454_v25 = vmul.f32 %v1587_v40, %v1415_v7  ;;  %v581_v41 = vand.u32 2147483648, %v2336_v18  ;;  %v1589_v16 = vld [vmem:[%s3351_s0 + $0x140] sm:$0xff]  ;;  %v1590_v40 = vld [vmem:[%s3351_s0 + $0x148] sm:$0xff] }
 0x113   :  { %v2436_v17 = vpop.xlane.xlu0 %236  ;;  %1436 = vrcp.f32 %v730_v55  ;;  %v2449_v62 = vpop.eup %1420  ;;  %v2459_v63 = vsel %vm377_vm3, %v378_v28, %v376_v13  ;;  %v914_v37 = vadd.f32 %v857_v22, %v2268_v26  ;;  %v579_v45 = vsel %vm578_vm10, %v2336_v18, %v577_v24 }
 0x114   :  { %1438 = vrsqrt.f32 %v2409_v12  ;;  %v1423_v61 = vpop.eup %1422  ;;  %vm580_vm11 = vcmp.eq.f32.partialorder %v2336_v18, 0.0  ;;  %v383_v30 = vsel %vm382_vm7, %v2318_v58, %v381_v50  ;;  %v859_v48 = vmul.f32 %v1588_v44, %v1417_v9 }
 0x115   :  { %v1425_v39 = vpop.eup %1424  ;;  %v759_v28 = vmax.f32 %v575_v32, 1e-12  ;;  %v584_v26 = vmul.f32 %v1419_v27, %v2365_v3  ;;  %vm389_vm12 = vcmp.eq.f32.partialorder %v2379_v43, inf  ;;  %1440 = vrsqrt.f32 %v2447_v36 }
 0x116   :  { %v1427_v6 = vpop.eup %1426  ;;  %1442 = vrcp.f32 %v758_v10  ;;  %vm585_vm13 = vcmp.eq.f32.partialorder %v2365_v3, inf  ;;  %v731_v15 = vmax.f32 %v2459_v63, 1e-12  ;;  %vm396_vm14 = vcmp.eq.f32.partialorder %v2411_v8, inf }
 0x117   :  { %v2470_v47 = vpop.xlane.xlu0 %238  ;;  %v582_v20 = vsel %vm580_vm11, %v581_v41, %v579_v45  ;;  %v386_v1 = vsel %vm384_vm8, %v385_v29, %v383_v30  ;;  %1444 = vrsqrt.f32 %v2436_v17  ;;  %v388_v57 = vmul.f32 %v1423_v61, %v2379_v43  ;;  %v2530_v61 = vpop.xlane.xlu1 %180  ;;  %v1591_v45 = vld [vmem:[%s3351_s0 + $0x60] sm:$0xff] }
 0x118   :  { %v2487_v52 = vmul.f32 0.5, %v914_v37  ;;  %vm587_vm15 = vcmp.eq.f32.partialorder %v2365_v3, 0.0  ;;  %v588_v31 = vand.u32 2147483648, %v2365_v3  ;;  %vm391_vm0 = vcmp.eq.f32.partialorder %v2379_v43, 0.0 }
 0x119   :  { %v1429_v51 = vpop.eup %1428  ;;  %v915_v58 = vadd.f32 %v859_v48, %v2296_v46  ;;  %v861_v7 = vmul.f32 %v1589_v16, %v1425_v39  ;;  %1446 = vrcp.f32 %v759_v28  ;;  %v586_v54 = vsel %vm585_vm13, %v2365_v3, %v584_v26  ;;  %v1592_v48 = vld [vmem:[%s3351_s0 + $0x68] sm:$0xff] }
 0x11a   :  { %v1431_v60 = vpop.eup %1430  ;;  %v1079_v18 = vmul.f32 %v1429_v51, %v2407_v5  ;;  %v760_v55 = vmax.f32 %v582_v20, 1e-12  ;;  %v591_v33 = vmul.f32 %v1427_v6, %v2388_v0  ;;  %vm398_vm1 = vcmp.eq.f32.partialorder %v2411_v8, 0.0 }
 0x11b   :  { %v2492_v59 = vpop.xlane.xlu0 %240  ;;  %v1433_v14 = vpop.eup %1432  ;;  %vm1080_vm2 = vcmp.eq.f32.partialorder %v2407_v5, inf  ;;  %v1083_v23 = vand.u32 2147483648, %v2407_v5  ;;  %vm592_vm3 = vcmp.eq.f32.partialorder %v2388_v0, inf  ;;  %1448 = vrsqrt.f32 %v2470_v47 }
 0x11c   :  { %v1435_v46 = vpop.eup %1434  ;;  %v1081_v22 = vsel %vm1080_vm2, %v2407_v5, %v1079_v18  ;;  %vm1082_vm4 = vcmp.eq.f32.partialorder %v2407_v5, 0.0  ;;  %v589_v13 = vsel %vm587_vm15, %v588_v31, %v586_v54  ;;  %v732_v50 = vmax.f32 %v386_v1, 1e-12  ;;  %v1593_v18 = vld [vmem:[%s3351_s0 + $0x150] sm:$0xff]  ;;  %v2576_v54 = vpop.xlane.xlu1 %182 }
 0x11d   :  { %v2510_v24 = vpop.eup %1436  ;;  %v395_v9 = vmul.f32 %v1433_v14, %v2411_v8  ;;  %v1084_v38 = vsel %vm1082_vm4, %v1083_v23, %v1081_v22  ;;  %v1199_v10 = vmul.f32 %v2487_v52, %v2487_v52  ;;  %v2519_v32 = vmul.f32 0.5, %v915_v58 }
 0x11e   :  { %v1439_v27 = vpop.eup %1438  ;;  %vm594_vm5 = vcmp.eq.f32.partialorder %v2388_v0, 0.0  ;;  %v595_v5 = vand.u32 2147483648, %v2388_v0  ;;  %1303 = vpush %v1084_v38  ;;  %v916_v3 = vadd.f32 %v861_v7, %v2360_v11  ;;  %v863_v41 = vmul.f32 %v1590_v40, %v1435_v46 }
 0x11f   :  { %v2515_v29 = vpop.xlane.xlu0 %242  ;;  %1450 = vrcp.f32 %v760_v55  ;;  %v593_v63 = vsel %vm592_vm3, %v2388_v0, %v591_v33  ;;  %v1441_v37 = vpop.eup %1440  ;;  %v2536_v30 = vmul.f32 %v1591_v45, %v2449_v62  ;;  %v761_v11 = vmax.f32 %v589_v13, 1e-12 }
 0x120   :  { %v399_v39 = vand.u32 2147483648, %v2411_v8  ;;  %1452 = vrsqrt.f32 %v2492_v59  ;;  %v1443_v44 = vpop.eup %1442  ;;  %v2543_v28 = vmul.f32 %v1592_v48, %v1431_v60  ;;  %v598_v26 = vmul.f32 %v1439_v27, %v2409_v12  ;;  %v2613_v45 = vpop.xlane.xlu1 %184 }
 0x121   :  { %1454 = vrcp.f32 %v731_v15  ;;  %v390_v62 = vsel %vm389_vm12, %v2379_v43, %v388_v57  ;;  %v1445_v6 = vpop.eup %1444  ;;  %v596_v51 = vsel %vm594_vm5, %v595_v5, %v593_v63  ;;  %vm599_vm6 = vcmp.eq.f32.partialorder %v2409_v12, inf }
 0x122   :  { %1456 = vrcp.f32 %v732_v50  ;;  %v397_v20 = vsel %vm396_vm14, %v2411_v8, %v395_v9  ;;  %v1230_v15 = vadd.f32 %v2392_v49, %v1199_v10  ;;  %v1200_v60 = vmul.f32 %v2519_v32, %v2519_v32  ;;  %v1594_v8 = vld [vmem:[%s3351_s0 + $0x158] sm:$0xff] }
 0x123   :  { %v2555_v1 = vpop.xlane.xlu0 %244  ;;  %v2560_v31 = vmul.f32 0.5, %v916_v3  ;;  %v917_v57 = vadd.f32 %v863_v41, %v2417_v19  ;;  %v1447_v0 = vpop.eup %1446  ;;  %v865_v14 = vmul.f32 %v1593_v18, %v1443_v44  ;;  %1458 = vrcp.f32 %v761_v11 }
 0x124   :  { %v602_v58 = vand.u32 2147483648, %v2409_v12  ;;  %v2571_v49 = vsel %vm391_vm0, %v392_v34, %v390_v62  ;;  %v762_v16 = vmax.f32 %v596_v51, 1e-12  ;;  %v600_v7 = vsel %vm599_vm6, %v2409_v12, %v598_v26  ;;  %v1595_v62 = vld [vmem:[%s3351_s0 + $0x160] sm:$0xff] }
 0x125   :  { %vm601_vm7 = vcmp.eq.f32.partialorder %v2409_v12, 0.0  ;;  %v605_v19 = vmul.f32 %v1445_v6, %v2436_v17  ;;  %v1449_v55 = vpop.eup %1448  ;;  %vm606_vm8 = vcmp.eq.f32.partialorder %v2436_v17, inf  ;;  %v2581_v33 = vsel %vm398_vm1, %v399_v39, %v397_v20 }
 0x126   :  { %v402_v43 = vmul.f32 %v1441_v37, %v2447_v36  ;;  %vm403_vm9 = vcmp.eq.f32.partialorder %v2447_v36, inf  ;;  %v1231_v34 = vadd.f32 %v1230_v15, %v1200_v60  ;;  %v1201_v23 = vmul.f32 %v2560_v31, %v2560_v31 }
 0x127   :  { %v2587_v12 = vmul.f32 0.5, %v917_v57  ;;  %v609_v46 = vand.u32 2147483648, %v2436_v17  ;;  %v918_v22 = vadd.f32 %v865_v14, %v2442_v56  ;;  %v867_v13 = vmul.f32 %v1594_v8, %v1447_v0  ;;  %v2595_v9 = vpop.xlane.xlu0 %246 }
 0x128   :  { %v603_v50 = vsel %vm601_vm7, %v602_v58, %v600_v7  ;;  %1460 = vrsqrt.f32 %v2530_v61  ;;  %v607_v27 = vsel %vm606_vm8, %v2436_v17, %v605_v19  ;;  %vm608_vm10 = vcmp.eq.f32.partialorder %v2436_v17, 0.0 }
 0x129   :  { %v1451_v38 = vpop.eup %1450  ;;  %1462 = vrcp.f32 %v762_v16  ;;  %v612_v56 = vmul.f32 %v1449_v55, %v2470_v47  ;;  %vm613_vm11 = vcmp.eq.f32.partialorder %v2470_v47, inf  ;;  %vm405_vm12 = vcmp.eq.f32.partialorder %v2447_v36, 0.0  ;;  %v2650_v55 = vpop.xlane.xlu1 %186 }
 0x12a   :  { %v1453_v10 = vpop.eup %1452  ;;  %v406_v5 = vand.u32 2147483648, %v2447_v36  ;;  %1464 = vrsqrt.f32 %v2515_v29  ;;  %v1232_v40 = vadd.f32 %v1231_v34, %v1201_v23  ;;  %v1202_v41 = vmul.f32 %v2587_v12, %v2587_v12 }
 0x12b   :  { %v2606_v3 = vpop.eup %1454  ;;  %v763_v63 = vmax.f32 %v603_v50, 1e-12  ;;  %v404_v37 = vsel %vm403_vm9, %v2447_v36, %v402_v43  ;;  %v2617_v39 = vmul.f32 0.5, %v918_v22  ;;  %v919_v44 = vadd.f32 %v867_v13, %v2454_v25  ;;  %v2636_v57 = vpop.xlane.xlu0 %248  ;;  %v1596_v36 = vld [vmem:[%s3351_s0 + $0x168] sm:$0xff] }
 0x12c   :  { %v2615_v11 = vpop.eup %1456  ;;  %v610_v48 = vsel %vm608_vm10, %v609_v46, %v607_v27  ;;  %v616_v26 = vand.u32 2147483648, %v2470_v47  ;;  %v869_v6 = vmul.f32 %v1595_v62, %v1451_v38  ;;  %v614_v51 = vsel %vm613_vm11, %v2470_v47, %v612_v56  ;;  %v1597_v56 = vld [vmem:[%s3351_s0 + $0x70] sm:$0xff] }
 0x12d   :  { %vm615_vm13 = vcmp.eq.f32.partialorder %v2470_v47, 0.0  ;;  %v619_v20 = vmul.f32 %v1453_v10, %v2492_v59  ;;  %v1459_v15 = vpop.eup %1458  ;;  %v733_v25 = vmax.f32 %v2571_v49, 1e-12  ;;  %v734_v17 = vmax.f32 %v2581_v33, 1e-12 }
 0x12e   :  { %vm620_vm14 = vcmp.eq.f32.partialorder %v2492_v59, inf  ;;  %v407_v60 = vsel %vm405_vm12, %v406_v5, %v404_v37  ;;  %v1233_v0 = vadd.f32 %v1232_v40, %v1202_v41  ;;  %1466 = vrcp.f32 %v763_v63  ;;  %v1598_v5 = vld [vmem:[%s3351_s0 + $0x170] sm:$0xff]  ;;  %v2671_v41 = vpop.xlane.xlu1 %188 }
 0x12f   :  { %v764_v18 = vmax.f32 %v610_v48, 1e-12  ;;  %vm622_vm15 = vcmp.eq.f32.partialorder %v2492_v59, 0.0  ;;  %v1203_v47 = vmul.f32 %v2617_v39, %v2617_v39  ;;  %v2641_v14 = vmul.f32 0.5, %v919_v44  ;;  %v2656_v13 = vpop.xlane.xlu0 %250 }
 0x130   :  { %v617_v58 = vsel %vm615_vm13, %v616_v26, %v614_v51  ;;  %v623_v49 = vand.u32 2147483648, %v2492_v59  ;;  %v920_v16 = vadd.f32 %v869_v6, %v2536_v30  ;;  %v871_v7 = vmul.f32 %v1596_v36, %v1459_v15 }
 0x131   :  { %v621_v19 = vsel %vm620_vm14, %v2492_v59, %v619_v20  ;;  %1468 = vrsqrt.f32 %v2555_v1  ;;  %v735_v43 = vmax.f32 %v407_v60, 1e-12  ;;  %v765_v23 = vmax.f32 %v617_v58, 1e-12  ;;  %v1600_v60 = vld [vmem:[%s3351_s0 + $0x178] sm:$0xff] }
 0x132   :  { %v1461_v33 = vpop.eup %1460  ;;  %1470 = vrcp.f32 %v733_v25  ;;  %v1234_v22 = vadd.f32 %v1233_v0, %v1203_v47  ;;  %v1204_v30 = vmul.f32 %v2641_v14, %v2641_v14  ;;  %v624_v8 = vsel %vm622_vm15, %v623_v49, %v621_v19  ;;  %v2699_v49 = vpop.xlane.xlu1 %190 }
 0x133   :  { %v1463_v34 = vpop.eup %1462  ;;  %1472 = vrcp.f32 %v764_v18  ;;  %v2658_v50 = vmul.f32 0.5, %v920_v16  ;;  %v921_v38 = vadd.f32 %v871_v7, %v2543_v28  ;;  %v409_v27 = vmul.f32 %v1461_v33, %v2530_v61  ;;  %v2684_v51 = vpop.xlane.xlu0 %252 }
 0x134   :  { %v1465_v46 = vpop.eup %1464  ;;  %1474 = vrcp.f32 %v734_v17  ;;  %v809_v10 = vmul.f32 %v1597_v56, %v2510_v24  ;;  %v873_v59 = vmul.f32 %v1598_v5, %v1463_v34  ;;  %vm410_vm0 = vcmp.eq.f32.partialorder %v2530_v61, inf  ;;  %v1599_v17 = vld [vmem:[%s3351_s0 + $0x78] sm:$0xff]  ;;  %v1601_v34 = vld [vmem:[%s3351_s0 + $0x80] sm:$0xff]  ;;  %v1604_v56 = vld [vmem:[%s3351_s0 + $0x90] sm:$0xff] }
 0x135   :  { %1476 = vrcp.f32 %v735_v43  ;;  %v766_v40 = vmax.f32 %v624_v8, 1e-12  ;;  %v626_v28 = vmul.f32 %v1465_v46, %v2515_v29  ;;  %v1235_v63 = vadd.f32 %v1234_v22, %v1204_v30  ;;  %v1602_v46 = vld [vmem:[%s3351_s0 + $0x180] sm:$0xff]  ;;  %v1603_v30 = vld [vmem:[%s3351_s0 + $0x88] sm:$0xff] }
 0x136   :  { %1478 = vrcp.f32 %v765_v23  ;;  %vm627_vm1 = vcmp.eq.f32.partialorder %v2515_v29, inf  ;;  %v413_v37 = vand.u32 2147483648, %v2530_v61  ;;  %v1205_v44 = vmul.f32 %v2658_v50, %v2658_v50 }
 0x137   :  { %1480 = vrsqrt.f32 %v2576_v54  ;;  %v2678_v48 = vmul.f32 0.5, %v921_v38  ;;  %v411_v26 = vsel %vm410_vm0, %v2530_v61, %v409_v27  ;;  %vm412_vm2 = vcmp.eq.f32.partialorder %v2530_v61, 0.0  ;;  %v2717_v38 = vpop.xlane.xlu0 %254 }
 0x138   :  { %v1467_v24 = vpop.eup %1466  ;;  %v922_v62 = vadd.f32 %v873_v59, %v809_v10  ;;  %v630_v6 = vand.u32 2147483648, %v2515_v29  ;;  %1482 = vrsqrt.f32 %v2595_v9  ;;  %v628_v15 = vsel %vm627_vm1, %v2515_v29, %v626_v28 }
 0x139   :  { %1484 = vrcp.f32 %v766_v40  ;;  %vm629_vm3 = vcmp.eq.f32.partialorder %v2515_v29, 0.0  ;;  %v811_v61 = vmul.f32 %v1599_v17, %v2606_v3  ;;  %v875_v0 = vmul.f32 %v1600_v60, %v1467_v24 }
 0x13a   :  { %v414_v18 = vsel %vm412_vm2, %v413_v37, %v411_v26  ;;  %1486 = vrsqrt.f32 %v2613_v45  ;;  %v1236_v58 = vadd.f32 %v1235_v63, %v1205_v44  ;;  %v1206_v29 = vmul.f32 %v2678_v48, %v2678_v48  ;;  %v1605_v37 = vld [vmem:[%s3351_s0 + $0x98] sm:$0xff]  ;;  %v2739_v44 = vpop.xlane.xlu1 %192 }
 0x13b   :  { %v1469_v20 = vpop.eup %1468  ;;  %1488 = vrsqrt.f32 %v2636_v57  ;;  %v2701_v36 = vmul.f32 0.5, %v922_v62  ;;  %v631_v3 = vsel %vm629_vm3, %v630_v6, %v628_v15  ;;  %v736_v19 = vmax.f32 %v414_v18, 1e-12 }
 0x13c   :  { %v1471_v25 = vpop.eup %1470  ;;  %v633_v7 = vmul.f32 %v1469_v20, %v2555_v1  ;;  %1490 = vrsqrt.f32 %v2650_v55  ;;  %vm634_vm4 = vcmp.eq.f32.partialorder %v2555_v1, inf  ;;  %v923_v43 = vadd.f32 %v875_v0, %v811_v61 }
 0x13d   :  { %v1473_v47 = vpop.eup %1472  ;;  %1492 = vrsqrt.f32 %v2656_v13  ;;  %v813_v23 = vmul.f32 %v1601_v34, %v2615_v11  ;;  %v815_v8 = vmul.f32 %v1603_v30, %v1471_v25  ;;  %v767_v11 = vmax.f32 %v631_v3, 1e-12  ;;  %v1606_v25 = vld [vmem:[%s3351_s0 + $0x188] sm:$0xff] }
 0x13e   :  { %v1475_v16 = vpop.eup %1474  ;;  %v877_v22 = vmul.f32 %v1602_v46, %v1473_v47  ;;  %v637_v5 = vand.u32 2147483648, %v2555_v1  ;;  %1494 = vrsqrt.f32 %v2671_v41  ;;  %v1237_v40 = vadd.f32 %v1236_v58, %v1206_v29  ;;  %v2756_v58 = vpop.xlane.xlu0 %256 }
 0x13f   :  { %v1477_v33 = vpop.eup %1476  ;;  %v2722_v10 = vmul.f32 %v1604_v56, %v1475_v16  ;;  %v1207_v28 = vmul.f32 %v2701_v36, %v2701_v36  ;;  %v635_v63 = vsel %vm634_vm4, %v2555_v1, %v633_v7  ;;  %vm636_vm5 = vcmp.eq.f32.partialorder %v2555_v1, 0.0  ;;  %v2772_v30 = vpop.xlane.xlu1 %194 }
 0x140   :  { %v1479_v27 = vpop.eup %1478  ;;  %v2735_v24 = vmul.f32 %v1605_v37, %v1477_v33  ;;  %1496 = vrcp.f32 %v736_v19  ;;  %vm417_vm6 = vcmp.eq.f32.partialorder %v2576_v54, inf  ;;  %vm419_vm7 = vcmp.eq.f32.partialorder %v2576_v54, 0.0 }
 0x141   :  { %v1481_v59 = vpop.eup %1480  ;;  %v2741_v62 = vmul.f32 0.5, %v923_v43  ;;  %v924_v6 = vadd.f32 %v877_v22, %v813_v23  ;;  %v420_v20 = vand.u32 2147483648, %v2576_v54  ;;  %vm641_vm8 = vcmp.eq.f32.partialorder %v2595_v9, inf }
 0x142   :  { %v1483_v26 = vpop.eup %1482  ;;  %v879_v17 = vmul.f32 %v1606_v25, %v1479_v27  ;;  %1498 = vrcp.f32 %v767_v11  ;;  %v638_v61 = vsel %vm636_vm5, %v637_v5, %v635_v63  ;;  %v416_v60 = vmul.f32 %v1481_v59, %v2576_v54  ;;  %v1607_v59 = vld [vmem:[%s3351_s0 + $0x190] sm:$0xff]  ;;  %v2790_v37 = vpop.xlane.xlu0 %258 }
 0x143   :  { %3357 = vst [vmem:[#allocation5_spill] sm:$0xff] %v2741_v62  ;;  %v1485_v15 = vpop.eup %1484  ;;  %v2751_v18 = vadd.f32 %v1237_v40, %v1207_v28  ;;  %vm643_vm9 = vcmp.eq.f32.partialorder %v2595_v9, 0.0  ;;  %v644_v47 = vand.u32 2147483648, %v2595_v9  ;;  %vm424_vm10 = vcmp.eq.f32.partialorder %v2613_v45, inf }
 0x144   :  { %v1487_v0 = vpop.eup %1486  ;;  %v640_v16 = vmul.f32 %v1483_v26, %v2595_v9  ;;  %vm426_vm11 = vcmp.eq.f32.partialorder %v2613_v45, 0.0  ;;  %v427_v1 = vand.u32 2147483648, %v2613_v45  ;;  %vm648_vm12 = vcmp.eq.f32.partialorder %v2636_v57, inf }
 0x145   :  { %v1489_v29 = vpop.eup %1488  ;;  %v1208_v7 = vmul.f32 %v2741_v62, %v2741_v62  ;;  %v768_v19 = vmax.f32 %v638_v61, 1e-12  ;;  %vm650_vm13 = vcmp.eq.f32.partialorder %v2636_v57, 0.0  ;;  %v651_v33 = vand.u32 2147483648, %v2636_v57 }
 0x146   :  { %v1491_v3 = vpop.eup %1490  ;;  %v2766_v34 = vmul.f32 0.5, %v924_v6  ;;  %v925_v23 = vadd.f32 %v879_v17, %v815_v8  ;;  %v418_v46 = vsel %vm417_vm6, %v2576_v54, %v416_v60  ;;  %v423_v22 = vmul.f32 %v1487_v0, %v2613_v45 }
 0x147   :  { %v1493_v43 = vpop.eup %1492  ;;  %v647_v27 = vmul.f32 %v1489_v29, %v2636_v57  ;;  %vm431_vm14 = vcmp.eq.f32.partialorder %v2650_v55, inf  ;;  %vm433_vm15 = vcmp.eq.f32.partialorder %v2650_v55, 0.0  ;;  %1500 = vrsqrt.f32 %v2684_v51 }
 0x148   :  { %3358 = vst [vmem:[#allocation6_spill] sm:$0xff] %v2766_v34  ;;  %v1495_v56 = vpop.eup %1494  ;;  %v642_v8 = vsel %vm641_vm8, %v2595_v9, %v640_v16  ;;  %v430_v11 = vmul.f32 %v1491_v3, %v2650_v55  ;;  %v434_v5 = vand.u32 2147483648, %v2650_v55  ;;  %1502 = vrsqrt.f32 %v2699_v49  ;;  %v2811_v9 = vpop.xlane.xlu1 %196 }
 0x149   :  { %v881_v40 = vmul.f32 %v1607_v59, %v1485_v15  ;;  %1504 = vrcp.f32 %v768_v19  ;;  %v421_v28 = vsel %vm419_vm7, %v420_v20, %v418_v46  ;;  %v654_v63 = vmul.f32 %v1493_v43, %v2656_v13 }
 0x14a   :  { %v1497_v26 = vpop.eup %1496  ;;  %v2792_v6 = vmul.f32 0.5, %v925_v23  ;;  %v425_v25 = vsel %vm424_vm10, %v2613_v45, %v423_v22  ;;  %vm655_vm0 = vcmp.eq.f32.partialorder %v2656_v13, inf  ;;  %1506 = vrsqrt.f32 %v2717_v38  ;;  %v1608_v23 = vld [vmem:[%s3351_s0 + $0x198] sm:$0xff] }
 0x14b   :  { %v645_v15 = vsel %vm643_vm9, %v644_v47, %v642_v8  ;;  %v649_v54 = vsel %vm648_vm12, %v2636_v57, %v647_v27  ;;  %v658_v20 = vand.u32 2147483648, %v2656_v13  ;;  %v437_v17 = vmul.f32 %v1495_v56, %v2671_v41 }
 0x14c   :  { %3359 = vst [vmem:[#allocation7_spill] sm:$0xff] %v2792_v6  ;;  %v1499_v61 = vpop.eup %1498  ;;  %v737_v60 = vmax.f32 %v421_v28, 1e-12  ;;  %v432_v0 = vsel %vm431_vm14, %v2650_v55, %v430_v11  ;;  %vm438_vm1 = vcmp.eq.f32.partialorder %v2671_v41, inf  ;;  %1508 = vrsqrt.f32 %v2739_v44  ;;  %v1609_v55 = vld [vmem:[%s3351_s0 + $0xa0] sm:$0xff] }
 0x14d   :  { %v926_v47 = vadd.f32 %v881_v40, %v2722_v10  ;;  %v428_v29 = vsel %vm426_vm11, %v427_v1, %v425_v25  ;;  %v656_v16 = vsel %vm655_vm0, %v2656_v13, %v654_v63  ;;  %vm657_vm2 = vcmp.eq.f32.partialorder %v2656_v13, 0.0  ;;  %v2829_v13 = vpop.xlane.xlu0 %260  ;;  %v2850_v40 = vpop.xlane.xlu1 %198 }
 0x14e   :  { %v769_v3 = vmax.f32 %v645_v15, 1e-12  ;;  %v652_v19 = vsel %vm650_vm13, %v651_v33, %v649_v54  ;;  %vm440_vm3 = vcmp.eq.f32.partialorder %v2671_v41, 0.0  ;;  %v441_v43 = vand.u32 2147483648, %v2671_v41 }
 0x14f   :  { %v883_v10 = vmul.f32 %v1608_v23, %v1499_v61  ;;  %v435_v45 = vsel %vm433_vm15, %v434_v5, %v432_v0  ;;  %v439_v1 = vsel %vm438_vm1, %v2671_v41, %v437_v17  ;;  %1510 = vrsqrt.f32 %v2756_v58  ;;  %s1304_s30 = spop %1303  ;;  %v1610_v61 = vld [vmem:[%s3351_s0 + $0x1a0] sm:$0xff] }
 0x150   :  { %v2832_v57 = vadd.f32 %v2751_v18, %v1208_v7  ;;  %1512 = vrcp.f32 %v737_v60  ;;  %v738_v33 = vmax.f32 %v428_v29, 1e-12  ;;  %v659_v46 = vsel %vm657_vm2, %v658_v20, %v656_v16  ;;  %s1086_s6 = smax.f32 %s1677_s5, %s1304_s30 }
 0x151   :  { %v1501_v22 = vpop.eup %1500  ;;  %v2836_v27 = vmul.f32 %v2766_v34, %v2766_v34  ;;  %v821_v56 = vmul.f32 %v1609_v55, %v1497_v26  ;;  %v770_v8 = vmax.f32 %v652_v19, 1e-12  ;;  %1514 = vrsqrt.f32 %v2772_v30  ;;  %v2876_v19 = vpop.xlane.xlu1 %200 }
 0x152   :  { %v1503_v11 = vpop.eup %1502  ;;  %v2844_v18 = vmul.f32 %v2792_v6, %v2792_v6  ;;  %v2846_v7 = vmul.f32 0.5, %v926_v47  ;;  %v739_v5 = vmax.f32 %v435_v45, 1e-12  ;;  %v442_v59 = vsel %vm440_vm3, %v441_v43, %v439_v1 }
 0x153   :  { %v1505_v28 = vpop.eup %1504  ;;  %v927_v63 = vadd.f32 %v883_v10, %v2735_v24  ;;  %1516 = vrcp.f32 %v769_v3  ;;  %v771_v26 = vmax.f32 %v659_v46, 1e-12  ;;  %vm662_vm4 = vcmp.eq.f32.partialorder %v2684_v51, inf  ;;  %v2859_v24 = vpop.xlane.xlu0 %262 }
 0x154   :  { %v1507_v25 = vpop.eup %1506  ;;  %1518 = vrcp.f32 %v738_v33  ;;  %v661_v15 = vmul.f32 %v1501_v22, %v2684_v51  ;;  %vm664_vm5 = vcmp.eq.f32.partialorder %v2684_v51, 0.0  ;;  %v665_v54 = vand.u32 2147483648, %v2684_v51 }
 0x155   :  { %1520 = vrcp.f32 %v770_v8  ;;  %v740_v41 = vmax.f32 %v442_v59, 1e-12  ;;  %v444_v20 = vmul.f32 %v1503_v11, %v2699_v49  ;;  %vm445_vm6 = vcmp.eq.f32.partialorder %v2699_v49, inf  ;;  %v1611_v59 = vld [vmem:[%s3351_s0 + $0xa8] sm:$0xff] }
 0x156   :  { %v1509_v17 = vpop.eup %1508  ;;  %v885_v60 = vmul.f32 %v1610_v61, %v1505_v28  ;;  %1522 = vrcp.f32 %v739_v5  ;;  %vm447_vm7 = vcmp.eq.f32.partialorder %v2699_v49, 0.0  ;;  %v448_v0 = vand.u32 2147483648, %v2699_v49 }
 0x157   :  { %v2866_v47 = vmul.f32 0.5, %v927_v63  ;;  %1524 = vrcp.f32 %v771_v26  ;;  %v668_v29 = vmul.f32 %v1507_v25, %v2717_v38  ;;  %vm669_vm8 = vcmp.eq.f32.partialorder %v2717_v38, inf }
 0x158   :  { %v663_v16 = vsel %vm662_vm4, %v2684_v51, %v661_v15  ;;  %vm671_vm9 = vcmp.eq.f32.partialorder %v2717_v38, 0.0  ;;  %v672_v3 = vand.u32 2147483648, %v2717_v38  ;;  %1526 = vrsqrt.f32 %v2790_v37 }
 0x159   :  { %v1511_v43 = vpop.eup %1510  ;;  %1528 = vrcp.f32 %v740_v41  ;;  %v446_v23 = vsel %vm445_vm6, %v2699_v49, %v444_v20  ;;  %v451_v10 = vmul.f32 %v1509_v17, %v2739_v44  ;;  %v1087_v45 = vstv %s1086_s6 }
 0x15a   :  { %v1513_v1 = vpop.eup %1512  ;;  %v2882_v33 = vadd.f32 %v885_v60, %v821_v56  ;;  %vm452_vm10 = vcmp.eq.f32.partialorder %v2739_v44, inf  ;;  %vm454_vm11 = vcmp.eq.f32.partialorder %v2739_v44, 0.0  ;;  %1530 = vrsqrt.f32 %v2811_v9  ;;  %v2894_v56 = vpop.xlane.xlu0 %264 }
 0x15b   :  { %v1515_v46 = vpop.eup %1514  ;;  %v666_v22 = vsel %vm664_vm5, %v665_v54, %v663_v16  ;;  %v670_v55 = vsel %vm669_vm8, %v2717_v38, %v668_v29  ;;  %v455_v8 = vand.u32 2147483648, %v2739_v44  ;;  %1532 = vrsqrt.f32 %v2829_v13  ;;  %v2914_v54 = vpop.xlane.xlu1 %202  ;;  %v1612_v38 = vld [vmem:[%s3351_s0 + $0x1a8] sm:$0xff] }
 0x15c   :  { %v449_v11 = vsel %vm447_vm7, %v448_v0, %v446_v23  ;;  %v675_v5 = vmul.f32 %v1511_v43, %v2756_v58  ;;  %vm676_vm12 = vcmp.eq.f32.partialorder %v2756_v58, inf  ;;  %1534 = vrcp.f32 %v1087_v45 }
 0x15d   :  { %v1517_v51 = vpop.eup %1516  ;;  %v2903_v28 = vmul.f32 %v1611_v59, %v1513_v1  ;;  %v453_v63 = vsel %vm452_vm10, %v2739_v44, %v451_v10  ;;  %vm678_vm13 = vcmp.eq.f32.partialorder %v2756_v58, 0.0  ;;  %1536 = vrsqrt.f32 %v2850_v40  ;;  %v1613_v44 = vld [vmem:[%s3351_s0 + $0xb0] sm:$0xff] }
 0x15e   :  { %v1519_v49 = vpop.eup %1518  ;;  %v772_v26 = vmax.f32 %v666_v22, 1e-12  ;;  %v673_v25 = vsel %vm671_vm9, %v672_v3, %v670_v55  ;;  %v458_v15 = vmul.f32 %v1515_v46, %v2772_v30  ;;  %1538 = vrsqrt.f32 %v2859_v24  ;;  %v2939_v23 = vpop.xlane.xlu0 %266 }
 0x15f   :  { %v2916_v41 = vpop.eup %1520  ;;  %v741_v20 = vmax.f32 %v449_v11, 1e-12  ;;  %v679_v17 = vand.u32 2147483648, %v2756_v58  ;;  %vm459_vm14 = vcmp.eq.f32.partialorder %v2772_v30, inf  ;;  %1540 = vrsqrt.f32 %v2876_v19 }
 0x160   :  { %v2921_v61 = vpop.eup %1522  ;;  %v2926_v60 = vmul.f32 %v1612_v38, %v1517_v51  ;;  %v456_v0 = vsel %vm454_vm11, %v455_v8, %v453_v63  ;;  %v677_v29 = vsel %vm676_vm12, %v2756_v58, %v675_v5  ;;  %1542 = vrsqrt.f32 %v2894_v56 }
 0x161   :  { %v2934_v16 = vpop.eup %1524  ;;  %v773_v3 = vmax.f32 %v673_v25, 1e-12  ;;  %vm461_vm15 = vcmp.eq.f32.partialorder %v2772_v30, 0.0  ;;  %v462_v43 = vand.u32 2147483648, %v2772_v30  ;;  %1544 = vrsqrt.f32 %v2914_v54 }
 0x162   :  { %v1527_v10 = vpop.eup %1526  ;;  %v2944_v45 = vmul.f32 %v1613_v44, %v1519_v49  ;;  %1546 = vrcp.f32 %v772_v26  ;;  %v460_v1 = vsel %vm459_vm14, %v2772_v30, %v458_v15  ;;  %vm683_vm0 = vcmp.eq.f32.partialorder %v2790_v37, inf }
 0x163   :  { %v2950_v46 = vpop.eup %1528  ;;  %1548 = vrcp.f32 %v741_v20  ;;  %v742_v22 = vmax.f32 %v456_v0, 1e-12  ;;  %v680_v55 = vsel %vm678_vm13, %v679_v17, %v677_v29  ;;  %vm685_vm1 = vcmp.eq.f32.partialorder %v2790_v37, 0.0 }
 0x164   :  { %v1531_v8 = vpop.eup %1530  ;;  %v686_v11 = vand.u32 2147483648, %v2790_v37  ;;  %vm466_vm2 = vcmp.eq.f32.partialorder %v2811_v9, inf  ;;  %vm468_vm3 = vcmp.eq.f32.partialorder %v2811_v9, 0.0  ;;  %1550 = vrsqrt.f32 %v2939_v23 }
 0x165   :  { %v1533_v5 = vpop.eup %1532  ;;  %1552 = vrcp.f32 %v773_v3  ;;  %v463_v51 = vsel %vm461_vm15, %v462_v43, %v460_v1  ;;  %v682_v59 = vmul.f32 %v1527_v10, %v2790_v37  ;;  %v469_v58 = vand.u32 2147483648, %v2811_v9  ;;  %v1614_v3 = vld [vmem:[%s3352_s1] sm:$0xff]  ;;  %v1615_v10 = vld [vmem:[%s3352_s1 + $0x8] sm:$0xff] }
 0x166   :  { %v2963_v63 = vpop.eup %1534  ;;  %v774_v49 = vmax.f32 %v680_v55, 1e-12  ;;  %vm690_vm4 = vcmp.eq.f32.partialorder %v2829_v13, inf  ;;  %vm692_vm5 = vcmp.eq.f32.partialorder %v2829_v13, 0.0  ;;  %v693_v26 = vand.u32 2147483648, %v2829_v13 }
 0x167   :  { %v1537_v25 = vpop.eup %1536  ;;  %1554 = vrcp.f32 %v742_v22  ;;  %vm473_vm6 = vcmp.eq.f32.partialorder %v2850_v40, inf  ;;  %vm475_vm7 = vcmp.eq.f32.partialorder %v2850_v40, 0.0  ;;  %v476_v30 = vand.u32 2147483648, %v2850_v40 }
 0x168   :  { %v1539_v15 = vpop.eup %1538  ;;  %v743_v20 = vmax.f32 %v463_v51, 1e-12  ;;  %v465_v17 = vmul.f32 %v1531_v8, %v2811_v9  ;;  %vm697_vm8 = vcmp.eq.f32.partialorder %v2859_v24, inf  ;;  %vm699_vm9 = vcmp.eq.f32.partialorder %v2859_v24, 0.0 }
 0x169   :  { %v1541_v38 = vpop.eup %1540  ;;  %v684_v0 = vsel %vm683_vm0, %v2790_v37, %v682_v59  ;;  %v689_v29 = vmul.f32 %v1533_v5, %v2829_v13  ;;  %v1089_v43 = vmul.f32 %v1614_v3, %v2963_v63  ;;  %v1090_v44 = vmul.f32 %v1615_v10, %v2963_v63 }
 0x16a   :  { %v1543_v1 = vpop.eup %1542  ;;  %1556 = vrcp.f32 %v774_v49  ;;  %v472_v22 = vmul.f32 %v1537_v25, %v2850_v40  ;;  %v700_v55 = vand.u32 2147483648, %v2859_v24  ;;  %vm480_vm10 = vcmp.eq.f32.partialorder %v2876_v19, inf }
 0x16b   :  { %v1545_v8 = vpop.eup %1544  ;;  %v696_v5 = vmul.f32 %v1539_v15, %v2859_v24  ;;  %vm482_vm11 = vcmp.eq.f32.partialorder %v2876_v19, 0.0  ;;  %v483_v51 = vand.u32 2147483648, %v2876_v19  ;;  %vm704_vm12 = vcmp.eq.f32.partialorder %v2894_v56, inf }
 0x16c   :  { %v2993_v59 = vpop.eup %1546  ;;  %1558 = vrcp.f32 %v743_v20  ;;  %v687_v49 = vsel %vm685_vm1, %v686_v11, %v684_v0  ;;  %v467_v25 = vsel %vm466_vm2, %v2811_v9, %v465_v17  ;;  %v479_v3 = vmul.f32 %v1541_v38, %v2876_v19 }
 0x16d   :  { %v1549_v10 = vpop.eup %1548  ;;  %v691_v15 = vsel %vm690_vm4, %v2829_v13, %v689_v29  ;;  %v703_v6 = vmul.f32 %v1543_v1, %v2894_v56  ;;  %v1121_v34 = vmul.f32 %v1089_v43, %v2233_v2  ;;  %v1122_v20 = vmul.f32 %v1090_v44, %v2259_v21 }
 0x16e   :  { %v1551_v62 = vpop.eup %1550  ;;  %v474_v37 = vsel %vm473_vm6, %v2850_v40, %v472_v22  ;;  %vm706_vm13 = vcmp.eq.f32.partialorder %v2894_v56, 0.0  ;;  %v707_v11 = vand.u32 2147483648, %v2894_v56  ;;  %v486_v17 = vmul.f32 %v1545_v8, %v2914_v54  ;;  %v1616_v40 = vld [vmem:[%s3351_s0 + $0x1b0] sm:$0xff] }
 0x16f   :  { %v1553_v38 = vpop.eup %1552  ;;  %v775_v0 = vmax.f32 %v687_v49, 1e-12  ;;  %v470_v29 = vsel %vm468_vm3, %v469_v58, %v467_v25  ;;  %v698_v2 = vsel %vm697_vm8, %v2859_v24, %v696_v5  ;;  %vm487_vm14 = vcmp.eq.f32.partialorder %v2914_v54, inf }
 0x170   :  { %v694_v21 = vsel %vm692_vm5, %v693_v26, %v691_v15  ;;  %v481_v43 = vsel %vm480_vm10, %v2876_v19, %v479_v3  ;;  %v490_v44 = vand.u32 2147483648, %v2914_v54  ;;  %vm711_vm15 = vcmp.eq.f32.partialorder %v2939_v23, inf  ;;  %v1617_v19 = vld [vmem:[%s3351_s0 + $0xb8] sm:$0xff] }
 0x171   :  { %v1555_v1 = vpop.eup %1554  ;;  %v477_v9 = vsel %vm475_vm7, %v476_v30, %v474_v37  ;;  %v705_v58 = vsel %vm704_vm12, %v2894_v56, %v703_v6  ;;  %v710_v22 = vmul.f32 %v1551_v62, %v2939_v23  ;;  %v3032_v13 = vadd.f32 %v1122_v20, %v1121_v34  ;;  %v1618_v56 = vld [vmem:[%s3351_s0 + $0xc0] sm:$0xff]  ;;  %v1619_v37 = vld [vmem:[%s3351_s0 + $0xc8] sm:$0xff] }
 0x172   :  { %v744_v26 = vmax.f32 %v470_v29, 1e-12  ;;  %v701_v8 = vsel %vm699_vm9, %v700_v55, %v698_v2  ;;  %v488_v5 = vsel %vm487_vm14, %v2914_v54, %v486_v17  ;;  %vm489_vm0 = vcmp.eq.f32.partialorder %v2914_v54, 0.0 }
 0x173   :  { %v889_v30 = vmul.f32 %v1616_v40, %v2916_v41  ;;  %v776_v49 = vmax.f32 %v694_v21, 1e-12  ;;  %v484_v62 = vsel %vm482_vm11, %v483_v51, %v481_v43  ;;  %v714_v34 = vand.u32 2147483648, %v2939_v23 }
 0x174   :  { %v1557_v6 = vpop.eup %1556  ;;  %v745_v25 = vmax.f32 %v477_v9, 1e-12  ;;  %v708_v24 = vsel %vm706_vm13, %v707_v11, %v705_v58  ;;  %v712_v54 = vsel %vm711_vm15, %v2939_v23, %v710_v22  ;;  %vm713_vm1 = vcmp.eq.f32.partialorder %v2939_v23, 0.0  ;;  %v1623_v23 = vld [vmem:[%s3351_s0 + $0x1c0] sm:$0xff]  ;;  %v1624_v9 = vld [vmem:[%s3351_s0 + $0x1c8] sm:$0xff] }
 0x175   :  { %1560 = vrcp.f32 %v775_v0  ;;  %v777_v55 = vmax.f32 %v701_v8, 1e-12  ;;  %v491_v41 = vsel %vm489_vm0, %v490_v44, %v488_v5  ;;  %v827_v51 = vmul.f32 %v1617_v19, %v2921_v61  ;;  %v1620_v61 = vld [vmem:[%s3352_s1 + $0x10] sm:$0xff] }
 0x176   :  { %v1559_v3 = vpop.eup %1558  ;;  %1562 = vrcp.f32 %v744_v26  ;;  %v746_v15 = vmax.f32 %v484_v62, 1e-12  ;;  %v829_v20 = vmul.f32 %v1618_v56, %v2950_v46  ;;  %v3062_v11 = vmul.f32 %v1619_v37, %v1549_v10  ;;  %v1621_v46 = vld [vmem:[%s3351_s0 + $0xd0] sm:$0xff]  ;;  %v1622_v10 = vld [vmem:[%s3351_s0 + $0x1b8] sm:$0xff]  ;;  %v1633_v37 = vld [vmem:[%s3352_s1 + $0x48] sm:$0xff] }
 0x177   :  { %1564 = vrcp.f32 %v776_v49  ;;  %v778_v17 = vmax.f32 %v708_v24, 1e-12  ;;  %v1091_v0 = vmul.f32 %v1620_v61, %v2963_v63  ;;  %v715_v29 = vsel %vm713_vm1, %v714_v34, %v712_v54  ;;  %v1629_v34 = vld [vmem:[%s3352_s1 + $0x28] sm:$0xff] }
 0x178   :  { %1566 = vrcp.f32 %v745_v25  ;;  %v747_v2 = vmax.f32 %v491_v41, 1e-12  ;;  %v3073_v21 = vmul.f32 %v1621_v46, %v1555_v1  ;;  %v891_v43 = vmul.f32 %v1622_v10, %v2934_v16  ;;  %v1625_v1 = vld [vmem:[%s3351_s0 + $0x1d0] sm:$0xff]  ;;  %v1626_v16 = vld [vmem:[%s3352_s1 + $0x18] sm:$0xff] }
 0x179   :  { %1568 = vrcp.f32 %v777_v55  ;;  %v893_v44 = vmul.f32 %v1623_v23, %v2993_v59  ;;  %v895_v58 = vmul.f32 %v1624_v9, %v1553_v38  ;;  %v3089_v22 = vmul.f32 %v1625_v1, %v1557_v6  ;;  %v1627_v59 = vld [vmem:[%s3351_s0 + $0xd8] sm:$0xff]  ;;  %v1628_v38 = vld [vmem:[%s3352_s1 + $0x20] sm:$0xff]  ;;  %v1630_v25 = vld [vmem:[%s3352_s1 + $0x30] sm:$0xff] }
 0x17a   :  { %1570 = vrcp.f32 %v746_v15  ;;  %v1092_v26 = vmul.f32 %v1626_v16, %v2963_v63  ;;  %v779_v8 = vmax.f32 %v715_v29, 1e-12  ;;  %v3098_v5 = vmul.f32 %v1627_v59, %v1559_v3  ;;  %v1631_v41 = vld [vmem:[%s3352_s1 + $0x38] sm:$0xff] }
 0x17b   :  { %1572 = vrcp.f32 %v778_v17  ;;  %v1093_v40 = vmul.f32 %v1628_v38, %v2963_v63  ;;  %v1123_v49 = vmul.f32 %v1091_v0, %v2290_v42  ;;  %v929_v62 = vadd.f32 %v2926_v60, %v2903_v28  ;;  %v1635_v23 = vld [vmem:[%s3352_s1 + $0x58] sm:$0xff] }
 0x17c   :  { %v1094_v6 = vmul.f32 %v1629_v34, %v2963_v63  ;;  %v1095_v24 = vmul.f32 %v1630_v25, %v2963_v63  ;;  %1574 = vrcp.f32 %v747_v2  ;;  %v930_v54 = vadd.f32 %v889_v30, %v2944_v45  ;;  %v1632_v45 = vld [vmem:[%s3352_s1 + $0x40] sm:$0xff] }
 0x17d   :  { %v3117_v42 = vmul.f32 0.5, %v2882_v33  ;;  %v1211_v28 = vmul.f32 %v2846_v7, %v2846_v7  ;;  %v1240_v60 = vadd.f32 %v2832_v57, %v2836_v27  ;;  %v1154_v55 = vadd.f32 %v3032_v13, %v1123_v49 }
 0x17e   :  { %v1096_v19 = vmul.f32 %v1631_v41, %v2963_v63  ;;  %v1097_v33 = vmul.f32 %v1632_v45, %v2963_v63  ;;  %v1124_v30 = vmul.f32 %v1092_v26, %v2314_v53  ;;  %1576 = vrcp.f32 %v779_v8  ;;  %v1634_v53 = vld [vmem:[%s3352_s1 + $0x50] sm:$0xff] }
 0x17f   :  { %v1561_v3 = vpop.eup %1560  ;;  %v931_v15 = vadd.f32 %v891_v43, %v827_v51  ;;  %v3133_v57 = vmul.f32 0.5, %v929_v62  ;;  %v1212_v27 = vmul.f32 %v2866_v47, %v2866_v47  ;;  %v1241_v13 = vadd.f32 %v1240_v60, %v2844_v18 }
 0x180   :  { %v1563_v56 = vpop.eup %1562  ;;  %v1098_v17 = vmul.f32 %v1633_v37, %v2963_v63  ;;  %v3146_v51 = vmul.f32 %v1634_v53, %v2963_v63  ;;  %v1125_v61 = vmul.f32 %v1093_v40, %v2339_v35  ;;  %v932_v0 = vadd.f32 %v893_v44, %v829_v20  ;;  %v1636_v35 = vld [vmem:[%s3351_s0 + $0x1d8] sm:$0xff]  ;;  %v1642_v37 = vld [vmem:[%s3351_s0 + $0x1f0] sm:$0xff] }
 0x181   :  { %v1565_v29 = vpop.eup %1564  ;;  %v3149_v2 = vmul.f32 0.5, %v930_v54  ;;  %v1213_v18 = vmul.f32 %v3117_v42, %v3117_v42  ;;  %v1242_v46 = vadd.f32 %v1241_v13, %v1211_v28  ;;  %v1155_v10 = vadd.f32 %v1154_v55, %v1124_v30  ;;  %v1639_v55 = vld [vmem:[%s3351_s0 + $0xe8] sm:$0xff]  ;;  %v1641_v13 = vld [vmem:[%s3351_s0 + $0xf0] sm:$0xff] }
 0x182   :  { %v1567_v43 = vpop.eup %1566  ;;  %v3157_v9 = vmul.f32 %v1635_v23, %v2963_v63  ;;  %v1126_v1 = vmul.f32 %v1094_v6, %v2367_v4  ;;  %v899_v20 = vmul.f32 %v1636_v35, %v1561_v3  ;;  %v933_v44 = vadd.f32 %v895_v58, %v3062_v11  ;;  %v1637_v4 = vld [vmem:[%s3351_s0 + $0xe0] sm:$0xff]  ;;  %v1644_v23 = vld [vmem:[%s3351_s0 + $0x1f8] sm:$0xff] }
 0x183   :  { %v1569_v16 = vpop.eup %1568  ;;  %v3164_v26 = vmul.f32 0.5, %v931_v15  ;;  %v1214_v8 = vmul.f32 %v3133_v57, %v3133_v57  ;;  %v1243_v59 = vadd.f32 %v1242_v46, %v1212_v27  ;;  %v1156_v38 = vadd.f32 %v1155_v10, %v1125_v61  ;;  %v1638_v11 = vld [vmem:[%s3351_s0 + $0x1e0] sm:$0xff] }
 0x184   :  { %v1571_v40 = vpop.eup %1570  ;;  %v1127_v49 = vmul.f32 %v1095_v24, %v2487_v52  ;;  %v837_v62 = vmul.f32 %v1637_v4, %v1563_v56  ;;  %v901_v58 = vmul.f32 %v1638_v11, %v1565_v29  ;;  %v934_v34 = vadd.f32 %v3089_v22, %v3073_v21  ;;  %v1640_v21 = vld [vmem:[%s3351_s0 + $0x1e8] sm:$0xff] }
 0x185   :  { %v1573_v6 = vpop.eup %1572  ;;  %v3177_v25 = vmul.f32 0.5, %v932_v0  ;;  %v1215_v54 = vmul.f32 %v3149_v2, %v3149_v2  ;;  %v1244_v52 = vadd.f32 %v1243_v59, %v1213_v18  ;;  %v1157_v24 = vadd.f32 %v1156_v38, %v1126_v1  ;;  %v1646_v4 = vld [vmem:[%s3352_s1 + $0x68] sm:$0xff] }
 0x186   :  { %v1575_v28 = vpop.eup %1574  ;;  %v1128_v60 = vmul.f32 %v1096_v19, %v2519_v32  ;;  %v839_v41 = vmul.f32 %v1639_v55, %v1567_v43  ;;  %v903_v22 = vmul.f32 %v1640_v21, %v1569_v16  ;;  %v935_v45 = vadd.f32 %v899_v20, %v3098_v5  ;;  %v1648_v55 = vld [vmem:[%s3352_s1 + $0x78] sm:$0xff] }
 0x187   :  { %v3189_v30 = vmul.f32 0.5, %v933_v44  ;;  %v1216_v3 = vmul.f32 %v3164_v26, %v3164_v26  ;;  %v1245_v15 = vadd.f32 %v1244_v52, %v1214_v8  ;;  %v1158_v27 = vadd.f32 %v1157_v24, %v1127_v49 }
 0x188   :  { %v1577_v32 = vpop.eup %1576  ;;  %v1129_v19 = vmul.f32 %v1097_v33, %v2560_v31  ;;  %v841_v56 = vmul.f32 %v1641_v13, %v1571_v40  ;;  %v905_v5 = vmul.f32 %v1642_v37, %v1573_v6  ;;  %v936_v53 = vadd.f32 %v901_v58, %v837_v62  ;;  %v1643_v33 = vld [vmem:[%s3351_s0 + $0xf8] sm:$0xff] }
 0x189   :  { %v3200_v61 = vmul.f32 0.5, %v934_v34  ;;  %v1217_v0 = vmul.f32 %v3177_v25, %v3177_v25  ;;  %v1246_v29 = vadd.f32 %v1245_v15, %v1215_v54  ;;  %v1159_v18 = vadd.f32 %v1158_v27, %v1128_v60  ;;  %v1647_v54 = vld [vmem:[%s3352_s1 + $0x70] sm:$0xff]  ;;  %v1649_v15 = vld [vmem:[%s3352_s1 + $0x80] sm:$0xff] }
 0x18a   :  { %v1130_v31 = vmul.f32 %v1098_v17, %v2587_v12  ;;  %v843_v46 = vmul.f32 %v1643_v33, %v1575_v28  ;;  %v937_v10 = vadd.f32 %v903_v22, %v839_v41  ;;  %v3208_v43 = vmul.f32 0.5, %v935_v45  ;;  %v1645_v12 = vld [vmem:[%s3352_s1 + $0x60] sm:$0xff]  ;;  %v3361_v33 = vld [vmem:[#allocation6_spill] sm:$0xff] }
 0x18b   :  { %v907_v1 = vmul.f32 %v1644_v23, %v1577_v32  ;;  %v1218_v35 = vmul.f32 %v3189_v30, %v3189_v30  ;;  %v1247_v20 = vadd.f32 %v1246_v29, %v1216_v3  ;;  %v1160_v44 = vadd.f32 %v1159_v18, %v1129_v19 }
 0x18c   :  { %v1101_v17 = vmul.f32 %v1645_v12, %v2963_v63  ;;  %v1131_v16 = vmul.f32 %v3146_v51, %v2617_v39  ;;  %v938_v8 = vadd.f32 %v905_v5, %v841_v56  ;;  %v3221_v59 = vmul.f32 0.5, %v936_v53  ;;  %v1650_v56 = vld [vmem:[%s3352_s1 + $0x88] sm:$0xff]  ;;  %v3360_v5 = vld [vmem:[#allocation5_spill] sm:$0xff] }
 0x18d   :  { %v1219_v38 = vmul.f32 %v3200_v61, %v3200_v61  ;;  %v1248_v40 = vadd.f32 %v1247_v20, %v1217_v0  ;;  %v1161_v49 = vadd.f32 %v1160_v44, %v1130_v31  ;;  %v1102_v62 = vmul.f32 %v1646_v4, %v2963_v63  ;;  %v3362_v20 = vld [vmem:[#allocation7_spill] sm:$0xff] }
 0x18e   :  { %v1132_v11 = vmul.f32 %v3157_v9, %v2641_v14  ;;  %v3231_v58 = vmul.f32 0.5, %v937_v10  ;;  %v939_v39 = vadd.f32 %v907_v1, %v843_v46  ;;  %v1220_v51 = vmul.f32 %v3208_v43, %v3208_v43  ;;  %v1652_v1 = vld [vmem:[%s3352_s1 + $0x98] sm:$0xff] }
 0x18f   :  { %v1249_v34 = vadd.f32 %v1248_v40, %v1218_v35  ;;  %v1162_v6 = vadd.f32 %v1161_v49, %v1131_v16  ;;  %v1103_v52 = vmul.f32 %v1647_v54, %v2963_v63  ;;  %v1133_v24 = vmul.f32 %v1101_v17, %v2658_v50  ;;  %v1653_v16 = vld [vmem:[%s3352_s1 + $0xa0] sm:$0xff]  ;;  %v1654_v49 = vld [vmem:[%s3352_s1 + $0xa8] sm:$0xff] }
 0x190   :  { %v3240_v28 = vmul.f32 0.5, %v938_v8  ;;  %v1221_v14 = vmul.f32 %v3221_v59, %v3221_v59  ;;  %v1104_v41 = vmul.f32 %v1648_v55, %v2963_v63  ;;  %v1134_v21 = vmul.f32 %v1102_v62, %v2678_v48 }
 0x191   :  { %v1250_v9 = vadd.f32 %v1249_v34, %v1219_v38  ;;  %v1163_v60 = vadd.f32 %v1162_v6, %v1132_v11  ;;  %v3249_v22 = vmul.f32 0.5, %v939_v39  ;;  %v1222_v50 = vmul.f32 %v3231_v58, %v3231_v58  ;;  %v1655_v39 = vld [vmem:[%s3352_s1 + $0xb0] sm:$0xff] }
 0x192   :  { %v1105_v27 = vmul.f32 %v1649_v15, %v2963_v63  ;;  %v1135_v32 = vmul.f32 %v1103_v52, %v2701_v36  ;;  %v1223_v19 = vmul.f32 %v3240_v28, %v3240_v28  ;;  %v1106_v37 = vmul.f32 %v1650_v56, %v2963_v63  ;;  %v1651_v36 = vld [vmem:[%s3352_s1 + $0x90] sm:$0xff] }
 0x193   :  { %v1251_v45 = vadd.f32 %v1250_v9, %v1220_v51  ;;  %v1164_v3 = vadd.f32 %v1163_v60, %v1133_v24  ;;  %v1136_v53 = vmul.f32 %v1104_v41, %v3360_v5  ;;  %v1224_v0 = vmul.f32 %v3249_v22, %v3249_v22 }
 0x194   :  { %v1107_v31 = vmul.f32 %v1651_v36, %v2963_v63  ;;  %v1137_v46 = vmul.f32 %v1105_v27, %v3361_v33  ;;  %v1108_v35 = vmul.f32 %v1652_v1, %v2963_v63  ;;  %v1138_v44 = vmul.f32 %v1106_v37, %v3362_v20  ;;  %v1660_v27 = vld [vmem:[%s3352_s1 + $0xd8] sm:$0xff] }
 0x195   :  { %v1252_v13 = vadd.f32 %v1251_v45, %v1221_v14  ;;  %v1165_v48 = vadd.f32 %v1164_v3, %v1134_v21  ;;  %v1109_v8 = vmul.f32 %v1653_v16, %v2963_v63  ;;  %v1110_v4 = vmul.f32 %v1654_v49, %v2963_v63 }
 0x196   :  { %v1139_v38 = vmul.f32 %v1107_v31, %v2846_v7  ;;  %v1140_v62 = vmul.f32 %v1108_v35, %v2866_v47  ;;  %v1111_v51 = vmul.f32 %v1655_v39, %v2963_v63  ;;  %v1656_v7 = vld [vmem:[%s3352_s1 + $0xb8] sm:$0xff]  ;;  %v1657_v47 = vld [vmem:[%s3352_s1 + $0xc0] sm:$0xff] }
 0x197   :  { %v1253_v29 = vadd.f32 %v1252_v13, %v1222_v50  ;;  %v1166_v18 = vadd.f32 %v1165_v48, %v1135_v32  ;;  %v1141_v34 = vmul.f32 %v1109_v8, %v3117_v42  ;;  %v1112_v54 = vmul.f32 %v1656_v7, %v2963_v63  ;;  %v1658_v42 = vld [vmem:[%s3352_s1 + $0xc8] sm:$0xff]  ;;  %v1661_v13 = vld [vmem:[%s3352_s1 + $0xe0] sm:$0xff] }
 0x198   :  { %v1142_v52 = vmul.f32 %v1110_v4, %v3133_v57  ;;  %v1113_v14 = vmul.f32 %v1657_v47, %v2963_v63  ;;  %v1143_v9 = vmul.f32 %v1111_v51, %v3149_v2  ;;  %v1114_v55 = vmul.f32 %v1658_v42, %v2963_v63  ;;  %v1659_v57 = vld [vmem:[%s3352_s1 + $0xd0] sm:$0xff] }
 0x199   :  { %v1254_v10 = vadd.f32 %v1253_v29, %v1223_v19  ;;  %v1167_v23 = vadd.f32 %v1166_v18, %v1136_v53  ;;  %v1144_v41 = vmul.f32 %v1112_v54, %v3164_v26  ;;  %v1115_v50 = vmul.f32 %v1659_v57, %v2963_v63 }
 0x19a   :  { %v1145_v45 = vmul.f32 %v1113_v14, %v3177_v25  ;;  %v1146_v2 = vmul.f32 %v1114_v55, %v3189_v30  ;;  %v1116_v32 = vmul.f32 %v1660_v27, %v2963_v63  ;;  %v1117_v48 = vmul.f32 %v1661_v13, %v2963_v63  ;;  %v1662_v30 = vld [vmem:[%s3352_s1 + $0xe8] sm:$0xff] }
 0x19b   :  { %v1255_v12 = vadd.f32 %v1254_v10, %v1224_v0  ;;  %v1168_v17 = vadd.f32 %v1167_v23, %v1137_v46  ;;  %v1147_v26 = vmul.f32 %v1115_v50, %v3200_v61  ;;  %v1118_v37 = vmul.f32 %v1662_v30, %v2963_v63  ;;  %v1663_v61 = vld [vmem:[%s3352_s1 + $0xf0] sm:$0xff] }
 0x19c   :  { %v1148_v25 = vmul.f32 %v1116_v32, %v3208_v43  ;;  %v1149_v5 = vmul.f32 %v1117_v48, %v3221_v59  ;;  %v1119_v0 = vmul.f32 %v1663_v61, %v2963_v63  ;;  %v1664_v43 = vld [vmem:[%s3352_s1 + $0xf8] sm:$0xff] }
 0x19d   :  { %1256 = vadd.xlane.f32.xlu0 %v1255_v12  ;;  %v1169_v40 = vadd.f32 %v1168_v17, %v1138_v44  ;;  %v1150_v29 = vmul.f32 %v1118_v37, %v3231_v58  ;;  %v1120_v36 = vmul.f32 %v1664_v43, %v2963_v63 }
 0x19e   :  { %v1151_v31 = vmul.f32 %v1119_v0, %v3240_v28 }
 0x19f   :  { %v1170_v11 = vadd.f32 %v1169_v40, %v1139_v38  ;;  %v1152_v59 = vmul.f32 %v1120_v36, %v3249_v22 }
 0x1a1   :  { %v1171_v6 = vadd.f32 %v1170_v11, %v1140_v62 }
 0x1a3   :  { %v1172_v24 = vadd.f32 %v1171_v6, %v1141_v34 }
 0x1a5   :  { %v1173_v60 = vadd.f32 %v1172_v24, %v1142_v52 }
 0x1a7   :  { %v1174_v21 = vadd.f32 %v1173_v60, %v1143_v9 }
 0x1a9   :  { %v1175_v3 = vadd.f32 %v1174_v21, %v1144_v41 }
 0x1ab   :  { %v1176_v15 = vadd.f32 %v1175_v3, %v1145_v45 }
 0x1ad   :  { %v1177_v19 = vadd.f32 %v1176_v15, %v1146_v2 }
 0x1af   :  { %v1178_v56 = vadd.f32 %v1177_v19, %v1147_v26 }
 0x1b1   :  { %v1179_v53 = vadd.f32 %v1178_v56, %v1148_v25 }
 0x1b3   :  { %v1180_v18 = vadd.f32 %v1179_v53, %v1149_v5 }
 0x1b5   :  { %v1181_v33 = vadd.f32 %v1180_v18, %v1150_v29 }
 0x1b7   :  { %v1182_v46 = vadd.f32 %v1181_v33, %v1151_v31 }
 0x1b9   :  { %v1183_v10 = vadd.f32 %v1182_v46, %v1152_v59 }
 0x1bb   :  { %1184 = vadd.xlane.f32.xlu1 %v1183_v10 }
 0x22a   :  { %v1257_v23 = vpop.xlane.xlu0 %1256 }
 0x22b   :  { %v1258_v1 = vrot.slane %v1257_v23, 4 }
 0x22d   :  { %v1259_v35 = vadd.f32 %v1258_v1, %v1257_v23 }
 0x22f   :  { %v1260_v20 = vrot.slane %v1259_v35, 2 }
 0x231   :  { %v1261_v17 = vadd.f32 %v1260_v20, %v1259_v35 }
 0x233   :  { %v1262_v38 = vrot.slane %v1261_v17, 1 }
 0x235   :  { %v1263_v28 = vadd.f32 %v1262_v38, %v1261_v17 }
 0x248   :  { %v1185_v58 = vpop.xlane.xlu1 %1184 }
 0x249   :  { %v1186_v44 = vrot.slane %v1185_v58, 4 }
 0x24b   :  { %v1187_v12 = vadd.f32 %v1186_v44, %v1185_v58 }
 0x24d   :  { %v1188_v16 = vrot.slane %v1187_v12, 2 }
 0x24f   :  { %v1189_v8 = vadd.f32 %v1188_v16, %v1187_v12 }
 0x251   :  { %v1190_v63 = vrot.slane %v1189_v8, 1 }
 0x253   :  { %v1191_v40 = vadd.f32 %v1190_v63, %v1189_v8 }
 0x255   :  { %1305 = vpush %v1191_v40 }
 0x256   :  { %1307 = vpush %v1263_v28 }
 0x286   :  { %s1306_s1 = spop %1305 }
 0x287   :  { %s1308_s29 = spop %1307 }
 0x288   :  { %v1265_v22 = vstv %s1308_s29 }
 0x289   :  { %1578 = vrsqrt.f32 %v1265_v22  ;;  %vm1268_vm2 = vcmp.eq.f32.partialorder %v1265_v22, inf  ;;  %v1271_v62 = vand.u32 2147483648, %v1265_v22  ;;  %vm1270_vm3 = vcmp.eq.f32.partialorder %v1265_v22, 0.0 }
 0x293   :  { %v1579_v49 = vpop.eup %1578 }
 0x294   :  { %v1267_v4 = vmul.f32 %v1579_v49, %v1265_v22 }
 0x296   :  { %v1269_v11 = vsel %vm1268_vm2, %v1265_v22, %v1267_v4 }
 0x297   :  { %v1272_v39 = vsel %vm1270_vm3, %v1271_v62, %v1269_v11 }
 0x298   :  { %1309 = vpush %v1272_v39 }
 0x2c9   :  { %s1310_s30 = spop %1309 }
 0x2ca   :  { %s1274_s4 = smax.f32 %s1678_s3, %s1310_s30 }
 0x2cb   :  { %v1275_v51 = vstv %s1274_s4 }
 0x2cc   :  { %1580 = vrcp.f32 %v1275_v51 }
 0x2d6   :  { %v1581_v34 = vpop.eup %1580 }
 0x2d7   :  { %1311 = vpush %v1581_v34 }
 0x308   :  { %s1312_s5 = spop %1311 }
 0x309   :  { %s1278_s6 = smul.f32 %s1312_s5, %s1306_s1 }
 0x30b   :  { %s1279_s7 = ssub.f32 1.0, %s1278_s6 }
 0x30d   :  { %s1280_s8 = ssub.f32 0.0, %s1279_s7 }
 0x30f   :  { %s1281_s9 = smul.f32 0.05, %s1280_s8 }
 0x311   :  { %v1282_v6 = vstv %s1281_s9 }
 0x312   :  { %v1283_v7 = vmul.f32 1.442695, %v1282_v6 }
 0x314   :  { %1582 = vpow2.f32 %v1283_v7 }
 0x31e   :  { %v1583_v54 = vpop.eup %1582 }
 0x31f   :  { %1313 = vpush %v1583_v54 }
 0x350   :  { %s1314_s10 = spop %1313 }
 0x351   :  { %1287 = sst [smem:[#allocation2]] %s1314_s10 }
 0x352   :  { %1674 = shalt.err (!%p1671_p2)
}
 0x353   :  { %s1679_s18 = smov [#allocation2]  }
 0x354   :  { %1295 = dma.smem_to_hbm %s1679_s18, 16, %s3353_s2, [#allocation3]  }
 0x355   :  { %1675 = dma.done.wait [#allocation3], 16  }
 0x356   :  { %1676 = vsyncadd [#allocation3], 4294967280 }
 0x357   :  { %1299 = sfence }
 0x358   :  { %1300 = vsyncpa [#allocation3], 1 }

// kernel: _tta_step.3
= control target key start
LH: loop header
LB: loop body
LE: loop exit
PB: predicated region body
PF: predicated region fallthrough
CT: control target
= control target key end

     0   :  { %s1737_s27 = smov 0   ;;  %s2180_s0 = inlined_call_operand.vmem [shape: f32[512,128], index: 0, kind: input, shape index: {}]   ;;  %s2181_s1 = inlined_call_operand.vmem [shape: f32[512,128], index: 1, kind: input, shape index: {}]   ;;  %s2182_s2 = inlined_call_operand.vmem [shape: f32[128,128], index: 2, kind: input, shape index: {}]   ;;  %s2183_s3 = inlined_call_operand.vmem [shape: f32[1,128], index: 3, kind: input, shape index: {}]   ;;  %s2184_s4 = inlined_call_operand.vmem [shape: f32[128,128], index: 4, kind: input, shape index: {}]   ;;  %s2185_s5 = inlined_call_operand.vmem [shape: f32[1,128], index: 5, kind: input, shape index: {}]   ;;  %s2186_s6 = inlined_call_operand.vmem [shape: f32[512,128], index: 6, kind: output, shape index: {0}]   ;;  %s2187_s7 = inlined_call_operand.vmem [shape: f32[512,128], index: 7, kind: output, shape index: {1}]   ;;  %s2188_s8 = inlined_call_operand.vmem [shape: f32[2,8,128], index: 8, kind: output, shape index: {2}]  }
   0x1 LB: > { %s1743_s28 = sadd.s32 4294967295, %s1690_s27   ;;  %p1338_p0 = scmp.ge.s32.totalorder %s1690_s27, 1  ;;  %s1690_s27 = sphi %s1737_s27, %s19_s27  }
   0x2   : > { %p279_p1 = scmp.lt.s32.totalorder %s1690_s27, 3 }
   0x4   : > { %p280_p2 = pnand %p1338_p0, %p279_p1 }
   0x5   : > { %v387_v0 = vld [vmem:[%s2182_s2] sm:$0xff] (!%p280_p2)  ;;  %v388_v1 = vld [vmem:[%s2182_s2 + $0x8] sm:$0xff] (!%p280_p2)  ;;  %v389_v2 = vld [vmem:[%s2182_s2 + $0x10] sm:$0xff] (!%p280_p2)  ;;  %s1339_s13 = sshll.u32 (!%p280_p2), %s1743_s28, 5  ;;  %p351_p4 = scmp.lt.s32.totalorder (!%p280_p2), %s1743_s28, 1 }
   0x6   : > { %283 = sbr.rel (%p280_p2) target bundleno = 753 (0x2f1), region = 44  ;;  %v1608_v3 = vpack.c.bf16 (!%p280_p2), %v388_v1, %v387_v0  ;;  %v390_v4 = vld [vmem:[%s2182_s2 + $0x18] sm:$0xff] (!%p280_p2)  ;;  %p328_p3 = scmp.lt.s32.totalorder (!%p280_p2), %s1339_s13, 63  ;;  %v391_v6 = vld [vmem:[%s2182_s2 + $0x20] sm:$0xff] (!%p280_p2)  ;;  %v392_v7 = vld [vmem:[%s2182_s2 + $0x28] sm:$0xff] (!%p280_p2) }
   0x7   : > { %v1612_v5 = vpack.c.bf16 (!%p280_p2), %v390_v4, %v389_v2  ;;  %v1616_v8 = vpack.c.bf16 (!%p280_p2), %v392_v7, %v391_v6  ;;  %v393_v9 = vld [vmem:[%s2182_s2 + $0x30] sm:$0xff] (!%p280_p2)  ;;  %v699_v10 = vld [vmem:[%s2184_s4] sm:$0xff] (!%p280_p2)  ;;  %v700_v11 = vld [vmem:[%s2184_s4 + $0x8] sm:$0xff] (!%p280_p2) }
   0x8   : > { %1609 = vmatprep.subr.bf16.mxu0 (!%p280_p2), %v1608_v3  ;;  %v394_v12 = vld [vmem:[%s2182_s2 + $0x38] sm:$0xff] (!%p280_p2)  ;;  %v1640_v13 = vpack.c.bf16 (!%p280_p2), %v700_v11, %v699_v10  ;;  %v701_v14 = vld [vmem:[%s2184_s4 + $0x10] sm:$0xff] (!%p280_p2)  ;;  %v395_v19 = vld [vmem:[%s2182_s2 + $0x40] sm:$0xff] (!%p280_p2) }
   0x9   : > { %1611 = vmatpush3.bf16.msra.mxu0 (!%p280_p2), %v1608_v3  ;;  %v702_v15 = vld [vmem:[%s2184_s4 + $0x18] sm:$0xff] (!%p280_p2)  ;;  %v1620_v18 = vpack.c.bf16 (!%p280_p2), %v394_v12, %v393_v9  ;;  %v396_v20 = vld [vmem:[%s2182_s2 + $0x48] sm:$0xff] (!%p280_p2)  ;;  %v397_v22 = vld [vmem:[%s2182_s2 + $0x50] sm:$0xff] (!%p280_p2) }
   0xa   : > { %1613 = vmatprep.subr.bf16.mxu0 (!%p280_p2), %v1612_v5  ;;  %v1644_v17 = vpack.c.bf16 (!%p280_p2), %v702_v15, %v701_v14  ;;  %1641 = vmatprep.subr.bf16.mxu1 (!%p280_p2), %v1640_v13  ;;  %v1624_v21 = vpack.c.bf16 (!%p280_p2), %v396_v20, %v395_v19  ;;  %v398_v23 = vld [vmem:[%s2182_s2 + $0x58] sm:$0xff] (!%p280_p2)  ;;  %v703_v24 = vld [vmem:[%s2184_s4 + $0x20] sm:$0xff] (!%p280_p2)  ;;  %v704_v27 = vld [vmem:[%s2184_s4 + $0x28] sm:$0xff] (!%p280_p2) }
   0xb   : > { %1643 = vmatpush3.bf16.msra.mxu1 (!%p280_p2), %v1640_v13  ;;  %v1628_v25 = vpack.c.bf16 (!%p280_p2), %v398_v23, %v397_v22  ;;  %v399_v26 = vld [vmem:[%s2182_s2 + $0x60] sm:$0xff] (!%p280_p2)  ;;  %v400_v28 = vld [vmem:[%s2182_s2 + $0x68] sm:$0xff] (!%p280_p2)  ;;  %v1648_v29 = vpack.c.bf16 (!%p280_p2), %v704_v27, %v703_v24  ;;  %v705_v30 = vld [vmem:[%s2184_s4 + $0x30] sm:$0xff] (!%p280_p2) }
   0xc   : > { %1645 = vmatprep.subr.bf16.mxu1 (!%p280_p2), %v1644_v17  ;;  %v706_v31 = vld [vmem:[%s2184_s4 + $0x38] sm:$0xff] (!%p280_p2)  ;;  %v707_v33 = vld [vmem:[%s2184_s4 + $0x40] sm:$0xff] (!%p280_p2)  ;;  %v708_v34 = vld [vmem:[%s2184_s4 + $0x48] sm:$0xff] (!%p280_p2)  ;;  %v1632_v35 = vpack.c.bf16 (!%p280_p2), %v400_v28, %v399_v26 }
   0xd   : > { %s2190_s13 = smov (!%p328_p3, %s1339_s13), 63  ;;  %1615 = vmatpush3.bf16.msra.mxu0 %v1612_v5  ;;  %v1652_v32 = vpack.c.bf16 %v706_v31, %v705_v30  ;;  %v401_v36 = vld [vmem:[%s2182_s2 + $0x70] sm:$0xff]  ;;  %v402_v37 = vld [vmem:[%s2182_s2 + $0x78] sm:$0xff]  ;;  %v1656_v38 = vpack.c.bf16 %v708_v34, %v707_v33  ;;  %v711_v43 = vld [vmem:[%s2184_s4 + $0x60] sm:$0xff]  ;;  %s2192_s28 = smov (!%p351_p4, %s1743_s28), 1 }
   0xe   : > { %s1769_s22 = sshll.u32 %s2190_s13, 3  ;;  %1617 = vmatprep.subr.bf16.mxu0 %v1616_v8  ;;  %v709_v39 = vld [vmem:[%s2184_s4 + $0x50] sm:$0xff]  ;;  %v710_v40 = vld [vmem:[%s2184_s4 + $0x58] sm:$0xff]  ;;  %v1636_v41 = vpack.c.bf16 %v402_v37, %v401_v36  ;;  %v712_v44 = vld [vmem:[%s2184_s4 + $0x68] sm:$0xff] }
   0xf   : > { %s1784_s11 = scalar_lea.vmem %s2180_s0, %s1769_s22  ;;  %1647 = vmatpush3.bf16.msra.mxu1 %v1644_v17  ;;  %v1660_v42 = vpack.c.bf16 %v710_v40, %v709_v39  ;;  %v1664_v45 = vpack.c.bf16 %v712_v44, %v711_v43  ;;  %v713_v13 = vld [vmem:[%s2184_s4 + $0x70] sm:$0xff]  ;;  %v714_v14 = vld [vmem:[%s2184_s4 + $0x78] sm:$0xff]  ;;  %s1894_s24 = scalar_lea.vmem %s2186_s6, %s1769_s22 }
  0x10   : > { %v355_v16 = vld [vmem:[%s1784_s11] sm:$0xff]  ;;  %1649 = vmatprep.subr.bf16.mxu1 %v1648_v29  ;;  %v356_v46 = vld [vmem:[%s1784_s11 + $0x8] sm:$0xff]  ;;  %v357_v47 = vld [vmem:[%s1784_s11 + $0x10] sm:$0xff]  ;;  %v1668_v15 = vpack.c.bf16 %v714_v14, %v713_v13  ;;  %s1963_s29 = scalar_lea.vmem %s2181_s1, %s1769_s22  ;;  %s2037_s13 = scalar_lea.vmem %s2187_s7, %s1769_s22 }
  0x11   : > { %1480 = vmatprep.mubr.f32.mxu0 %v355_v16  ;;  %1619 = vmatpush3.bf16.msra.mxu0 %v1616_v8  ;;  %v358_v48 = vld [vmem:[%s1784_s11 + $0x18] sm:$0xff]  ;;  %v359_v49 = vld [vmem:[%s1784_s11 + $0x20] sm:$0xff]  ;;  %v360_v50 = vld [vmem:[%s1784_s11 + $0x28] sm:$0xff]  ;;  %s1347_s22 = sshll.u32 %s2192_s28, 3 }
  0x12   : > { %1621 = vmatprep.subr.bf16.mxu0 %v1620_v18  ;;  %v361_v51 = vld [vmem:[%s1784_s11 + $0x30] sm:$0xff]  ;;  %v362_v52 = vld [vmem:[%s1784_s11 + $0x38] sm:$0xff]  ;;  %v363_v53 = vld [vmem:[%s1784_s11 + $0x40] sm:$0xff]  ;;  %s354_s18 = scalar_lea.vmem %s2188_s8, %s1347_s22 }
  0x13   : > { %1651 = vmatpush3.bf16.msra.mxu1 %v1648_v29  ;;  %v364_v54 = vld [vmem:[%s1784_s11 + $0x48] sm:$0xff]  ;;  %v365_v55 = vld [vmem:[%s1784_s11 + $0x50] sm:$0xff]  ;;  %v366_v56 = vld [vmem:[%s1784_s11 + $0x58] sm:$0xff] }
  0x14   : > { %1653 = vmatprep.subr.bf16.mxu1 %v1652_v32  ;;  %v367_v57 = vld [vmem:[%s1784_s11 + $0x60] sm:$0xff]  ;;  %v368_v58 = vld [vmem:[%s1784_s11 + $0x68] sm:$0xff]  ;;  %v369_v59 = vld [vmem:[%s1784_s11 + $0x70] sm:$0xff] }
  0x15   : > { %1623 = vmatpush3.bf16.msra.mxu0 %v1620_v18  ;;  %v370_v60 = vld [vmem:[%s1784_s11 + $0x78] sm:$0xff]  ;;  %v371_v61 = vld [vmem:[%s1784_s11 + $0x80] sm:$0xff]  ;;  %v372_v62 = vld [vmem:[%s1784_s11 + $0x88] sm:$0xff] }
  0x16   : > { %1625 = vmatprep.subr.bf16.mxu0 %v1624_v21  ;;  %v373_v63 = vld [vmem:[%s1784_s11 + $0x90] sm:$0xff]  ;;  %v374_v0 = vld [vmem:[%s1784_s11 + $0x98] sm:$0xff]  ;;  %v375_v1 = vld [vmem:[%s1784_s11 + $0xa0] sm:$0xff] }
  0x17   : > { %1655 = vmatpush3.bf16.msra.mxu1 %v1652_v32  ;;  %v376_v2 = vld [vmem:[%s1784_s11 + $0xa8] sm:$0xff]  ;;  %v377_v3 = vld [vmem:[%s1784_s11 + $0xb0] sm:$0xff]  ;;  %v378_v4 = vld [vmem:[%s1784_s11 + $0xb8] sm:$0xff] }
  0x18   : > { %1657 = vmatprep.subr.bf16.mxu1 %v1656_v38  ;;  %v379_v5 = vld [vmem:[%s1784_s11 + $0xc0] sm:$0xff]  ;;  %v380_v6 = vld [vmem:[%s1784_s11 + $0xc8] sm:$0xff]  ;;  %v381_v7 = vld [vmem:[%s1784_s11 + $0xd0] sm:$0xff] }
  0x19   : > { %1627 = vmatpush3.bf16.msra.mxu0 %v1624_v21  ;;  %v382_v8 = vld [vmem:[%s1784_s11 + $0xd8] sm:$0xff]  ;;  %v383_v9 = vld [vmem:[%s1784_s11 + $0xe0] sm:$0xff]  ;;  %v384_v10 = vld [vmem:[%s1784_s11 + $0xe8] sm:$0xff] }
  0x1a   : > { %1629 = vmatprep.subr.bf16.mxu0 %v1628_v25  ;;  %v385_v11 = vld [vmem:[%s1784_s11 + $0xf0] sm:$0xff]  ;;  %v386_v12 = vld [vmem:[%s1784_s11 + $0xf8] sm:$0xff]  ;;  %v1887_v16 = vld [vmem:[%s2183_s3] ss:$0 sm:$0xff] }
  0x1b   : > { %1659 = vmatpush3.bf16.msra.mxu1 %v1656_v38 }
  0x1c   : > { %1661 = vmatprep.subr.bf16.mxu1 %v1660_v42 }
  0x1d   : > { %1631 = vmatpush3.bf16.msra.mxu0 %v1628_v25 }
  0x1e   : > { %1633 = vmatprep.subr.bf16.mxu0 %v1632_v35 }
  0x1f   : > { %1663 = vmatpush3.bf16.msra.mxu1 %v1660_v42 }
  0x20   : > { %1665 = vmatprep.subr.bf16.mxu1 %v1664_v45 }
  0x21   : > { %1635 = vmatpush3.bf16.msra.mxu0 %v1632_v35 }
  0x22   : > { %1637 = vmatprep.subr.bf16.mxu0 %v1636_v41 }
  0x23   : > { %1667 = vmatpush3.bf16.msra.mxu1 %v1664_v45 }
  0x24   : > { %1669 = vmatprep.subr.bf16.mxu1 %v1668_v15 }
  0x25   : > { %1639 = vmatpush3.bf16.msra.mxu0 %v1636_v41 }
  0x27   : > { %1671 = vmatpush3.bf16.msra.mxu1 %v1668_v15 }
  0x28   : > { %1481 = vmatmul.mubr.f32.vlgmr.msra.gmra.mrb[0].mxu0 %v356_v46 }
  0x29   : > { %1483 = vmatprep.mubr.f32.mxu0 %v357_v47 }
  0x2c   : > { %1484 = vmatmul.mubr.f32.gmra.mrb[2].mxu0 %v358_v48 }
  0x2d   : > { %1486 = vmatprep.mubr.f32.mxu0 %v359_v49 }
  0x30   : > { %1487 = vmatmul.mubr.f32.gmra.mrb[4].mxu0 %v360_v50 }
  0x31   : > { %1489 = vmatprep.mubr.f32.mxu0 %v361_v51 }
  0x34   : > { %1490 = vmatmul.mubr.f32.gmra.mrb[6].mxu0 %v362_v52 }
  0x35   : > { %1492 = vmatprep.mubr.f32.mxu0 %v363_v53 }
  0x38   : > { %1493 = vmatmul.mubr.f32.gmra.mrb[8].mxu0 %v364_v54 }
  0x39   : > { %1495 = vmatprep.mubr.f32.mxu0 %v365_v55 }
  0x3c   : > { %1496 = vmatmul.mubr.f32.gmra.mrb[10].mxu0 %v366_v56 }
  0x3d   : > { %1498 = vmatprep.mubr.f32.mxu0 %v367_v57 }
  0x40   : > { %1499 = vmatmul.mubr.f32.gmra.mrb[12].mxu0 %v368_v58 }
  0x41   : > { %1501 = vmatprep.mubr.f32.mxu0 %v369_v59 }
  0x44   : > { %1502 = vmatmul.mubr.f32.gmra.mrb[14].mxu0 %v370_v60 }
  0x45   : > { %1504 = vmatprep.mubr.f32.mxu0 %v371_v61 }
  0x48   : > { %1505 = vmatmul.mubr.f32.gmra.mrb[16].mxu0 %v372_v62 }
  0x49   : > { %1507 = vmatprep.mubr.f32.mxu0 %v373_v63 }
  0x4c   : > { %1508 = vmatmul.mubr.f32.gmra.mrb[18].mxu0 %v374_v0 }
  0x4d   : > { %1510 = vmatprep.mubr.f32.mxu0 %v375_v1 }
  0x50   : > { %1511 = vmatmul.mubr.f32.gmra.mrb[20].mxu0 %v376_v2 }
  0x51   : > { %1513 = vmatprep.mubr.f32.mxu0 %v377_v3 }
  0x54   : > { %1514 = vmatmul.mubr.f32.gmra.mrb[22].mxu0 %v378_v4 }
  0x55   : > { %1516 = vmatprep.mubr.f32.mxu0 %v379_v5 }
  0x58   : > { %1517 = vmatmul.mubr.f32.gmra.mrb[24].mxu0 %v380_v6 }
  0x59   : > { %1519 = vmatprep.mubr.f32.mxu0 %v381_v7 }
  0x5c   : > { %1520 = vmatmul.mubr.f32.gmra.mrb[26].mxu0 %v382_v8 }
  0x5d   : > { %1522 = vmatprep.mubr.f32.mxu0 %v383_v9 }
  0x60   : > { %1523 = vmatmul.mubr.f32.gmra.mrb[28].mxu0 %v384_v10 }
  0x61   : > { %1525 = vmatprep.mubr.f32.mxu0 %v385_v11 }
  0x64   : > { %1526 = vmatmul.mubr.f32.gmra.mrb[30].mxu0 %v386_v12 }
  0xfb   : > { %v1482_v17 = vpop.f32.mrb[0].mxu0 }
  0xfc   : > { %v482_v18 = vadd.f32 %v1482_v17, %v1887_v16  ;;  %v476_v19 = vpop.f32.mrb[1].mxu0 }
  0xfd   : > { %v477_v20 = vadd.f32 %v1887_v16, %v476_v19 }
  0xfe   : > { %v636_v21 = vmax.f32 %v482_v18, 0.0 }
  0xff   : > { %v635_v22 = vmax.f32 %v477_v20, 0.0  ;;  %v1485_v23 = vpop.f32.mrb[2].mxu0 }
 0x100   : > { %668 = vst [vmem:[%s1894_s24 + $0x8] sm:$0xff] %v636_v21  ;;  %v492_v24 = vadd.f32 %v1485_v23, %v1887_v16  ;;  %v486_v25 = vpop.f32.mrb[3].mxu0 }
 0x101   : > { %667 = vst [vmem:[%s1894_s24] sm:$0xff] %v635_v22  ;;  %v487_v26 = vadd.f32 %v1887_v16, %v486_v25  ;;  %1560 = vmatprep.mubr.f32.mxu1 %v635_v22 }
 0x102   : > { %v638_v27 = vmax.f32 %v492_v24, 0.0  ;;  %1561 = vmatmul.mubr.f32.vlgmr.msra.gmra.mrb[0].mxu1 %v636_v21 }
 0x103   : > { %v637_v28 = vmax.f32 %v487_v26, 0.0  ;;  %v1488_v29 = vpop.f32.mrb[4].mxu0 }
 0x104   : > { %670 = vst [vmem:[%s1894_s24 + $0x18] sm:$0xff] %v638_v27  ;;  %v502_v30 = vadd.f32 %v1488_v29, %v1887_v16  ;;  %v496_v31 = vpop.f32.mrb[5].mxu0 }
 0x105   : > { %669 = vst [vmem:[%s1894_s24 + $0x10] sm:$0xff] %v637_v28  ;;  %v497_v32 = vadd.f32 %v1887_v16, %v496_v31  ;;  %1563 = vmatprep.mubr.f32.mxu1 %v637_v28 }
 0x106   : > { %v640_v33 = vmax.f32 %v502_v30, 0.0  ;;  %1564 = vmatmul.mubr.f32.gmra.mrb[2].mxu1 %v638_v27 }
 0x107   : > { %v639_v34 = vmax.f32 %v497_v32, 0.0  ;;  %v1491_v35 = vpop.f32.mrb[6].mxu0 }
 0x108   : > { %672 = vst [vmem:[%s1894_s24 + $0x28] sm:$0xff] %v640_v33  ;;  %v512_v36 = vadd.f32 %v1491_v35, %v1887_v16  ;;  %v506_v37 = vpop.f32.mrb[7].mxu0 }
 0x109   : > { %671 = vst [vmem:[%s1894_s24 + $0x20] sm:$0xff] %v639_v34  ;;  %v507_v38 = vadd.f32 %v1887_v16, %v506_v37  ;;  %1566 = vmatprep.mubr.f32.mxu1 %v639_v34 }
 0x10a   : > { %v642_v39 = vmax.f32 %v512_v36, 0.0  ;;  %1567 = vmatmul.mubr.f32.gmra.mrb[4].mxu1 %v640_v33 }
 0x10b   : > { %v641_v40 = vmax.f32 %v507_v38, 0.0  ;;  %v1494_v41 = vpop.f32.mrb[8].mxu0 }
 0x10c   : > { %674 = vst [vmem:[%s1894_s24 + $0x38] sm:$0xff] %v642_v39  ;;  %v522_v42 = vadd.f32 %v1494_v41, %v1887_v16  ;;  %v516_v43 = vpop.f32.mrb[9].mxu0 }
 0x10d   : > { %673 = vst [vmem:[%s1894_s24 + $0x30] sm:$0xff] %v641_v40  ;;  %v517_v44 = vadd.f32 %v1887_v16, %v516_v43  ;;  %1569 = vmatprep.mubr.f32.mxu1 %v641_v40 }
 0x10e   : > { %v644_v45 = vmax.f32 %v522_v42, 0.0  ;;  %1570 = vmatmul.mubr.f32.gmra.mrb[6].mxu1 %v642_v39 }
 0x10f   : > { %v643_v46 = vmax.f32 %v517_v44, 0.0  ;;  %v1497_v47 = vpop.f32.mrb[10].mxu0 }
 0x110   : > { %676 = vst [vmem:[%s1894_s24 + $0x48] sm:$0xff] %v644_v45  ;;  %v532_v48 = vadd.f32 %v1497_v47, %v1887_v16  ;;  %v526_v49 = vpop.f32.mrb[11].mxu0 }
 0x111   : > { %675 = vst [vmem:[%s1894_s24 + $0x40] sm:$0xff] %v643_v46  ;;  %v527_v50 = vadd.f32 %v1887_v16, %v526_v49  ;;  %1572 = vmatprep.mubr.f32.mxu1 %v643_v46 }
 0x112   : > { %v646_v51 = vmax.f32 %v532_v48, 0.0  ;;  %1573 = vmatmul.mubr.f32.gmra.mrb[8].mxu1 %v644_v45 }
 0x113   : > { %v645_v52 = vmax.f32 %v527_v50, 0.0  ;;  %v1500_v53 = vpop.f32.mrb[12].mxu0  ;;  %v979_v50 = vld [vmem:[%s1963_s29] sm:$0xff] }
 0x114   : > { %678 = vst [vmem:[%s1894_s24 + $0x58] sm:$0xff] %v646_v51  ;;  %v542_v54 = vadd.f32 %v1500_v53, %v1887_v16  ;;  %v536_v55 = vpop.f32.mrb[13].mxu0  ;;  %v1968_v53 = vld [vmem:[%s1963_s29 + $0x10] sm:$0xff] }
 0x115   : > { %677 = vst [vmem:[%s1894_s24 + $0x50] sm:$0xff] %v645_v52  ;;  %v537_v56 = vadd.f32 %v1887_v16, %v536_v55  ;;  %1575 = vmatprep.mubr.f32.mxu1 %v645_v52  ;;  %v1115_v52 = vmul.f32 %v979_v50, %v979_v50  ;;  %v1117_v55 = vmul.f32 %v1968_v53, %v1968_v53 }
 0x116   : > { %v648_v57 = vmax.f32 %v542_v54, 0.0  ;;  %1576 = vmatmul.mubr.f32.gmra.mrb[10].mxu1 %v646_v51 }
 0x117   : > { %v647_v58 = vmax.f32 %v537_v56, 0.0  ;;  %v1503_v59 = vpop.f32.mrb[14].mxu0  ;;  %v982_v56 = vld [vmem:[%s1963_s29 + $0x18] sm:$0xff] }
 0x118   : > { %680 = vst [vmem:[%s1894_s24 + $0x68] sm:$0xff] %v648_v57  ;;  %v552_v60 = vadd.f32 %v1503_v59, %v1887_v16  ;;  %v546_v61 = vpop.f32.mrb[15].mxu0  ;;  %v1974_v59 = vld [vmem:[%s1963_s29 + $0x20] sm:$0xff] }
 0x119   : > { %679 = vst [vmem:[%s1894_s24 + $0x60] sm:$0xff] %v647_v58  ;;  %v547_v62 = vadd.f32 %v1887_v16, %v546_v61  ;;  %1578 = vmatprep.mubr.f32.mxu1 %v647_v58 }
 0x11a   : > { %v650_v63 = vmax.f32 %v552_v60, 0.0  ;;  %1579 = vmatmul.mubr.f32.gmra.mrb[12].mxu1 %v648_v57  ;;  %v1118_v57 = vmul.f32 %v982_v56, %v982_v56  ;;  %v1119_v60 = vmul.f32 %v1974_v59, %v1974_v59 }
 0x11b   : > { %v649_v0 = vmax.f32 %v547_v62, 0.0  ;;  %v1506_v1 = vpop.f32.mrb[16].mxu0  ;;  %v1979_v62 = vld [vmem:[%s1963_s29 + $0x28] sm:$0xff] }
 0x11c   : > { %682 = vst [vmem:[%s1894_s24 + $0x78] sm:$0xff] %v650_v63  ;;  %v562_v2 = vadd.f32 %v1506_v1, %v1887_v16  ;;  %v556_v3 = vpop.f32.mrb[17].mxu0  ;;  %v1984_v1 = vld [vmem:[%s1963_s29 + $0x30] sm:$0xff] }
 0x11d   : > { %681 = vst [vmem:[%s1894_s24 + $0x70] sm:$0xff] %v649_v0  ;;  %v557_v4 = vadd.f32 %v1887_v16, %v556_v3  ;;  %1581 = vmatprep.mubr.f32.mxu1 %v649_v0 }
 0x11e   : > { %v652_v5 = vmax.f32 %v562_v2, 0.0  ;;  %1582 = vmatmul.mubr.f32.gmra.mrb[14].mxu1 %v650_v63  ;;  %v1120_v63 = vmul.f32 %v1979_v62, %v1979_v62  ;;  %v1121_v2 = vmul.f32 %v1984_v1, %v1984_v1 }
 0x11f   : > { %v651_v6 = vmax.f32 %v557_v4, 0.0  ;;  %v1509_v7 = vpop.f32.mrb[18].mxu0  ;;  %v1989_v4 = vld [vmem:[%s1963_s29 + $0x38] sm:$0xff] }
 0x120   : > { %684 = vst [vmem:[%s1894_s24 + $0x88] sm:$0xff] %v652_v5  ;;  %v572_v8 = vadd.f32 %v1509_v7, %v1887_v16  ;;  %v566_v9 = vpop.f32.mrb[19].mxu0  ;;  %v1994_v7 = vld [vmem:[%s1963_s29 + $0x40] sm:$0xff] }
 0x121   : > { %683 = vst [vmem:[%s1894_s24 + $0x80] sm:$0xff] %v651_v6  ;;  %v567_v10 = vadd.f32 %v1887_v16, %v566_v9  ;;  %1584 = vmatprep.mubr.f32.mxu1 %v651_v6 }
 0x122   : > { %v654_v11 = vmax.f32 %v572_v8, 0.0  ;;  %1585 = vmatmul.mubr.f32.gmra.mrb[16].mxu1 %v652_v5  ;;  %v1122_v5 = vmul.f32 %v1989_v4, %v1989_v4  ;;  %v1123_v8 = vmul.f32 %v1994_v7, %v1994_v7 }
 0x123   : > { %v653_v12 = vmax.f32 %v567_v10, 0.0  ;;  %v1512_v13 = vpop.f32.mrb[20].mxu0  ;;  %v1999_v10 = vld [vmem:[%s1963_s29 + $0x48] sm:$0xff] }
 0x124   : > { %686 = vst [vmem:[%s1894_s24 + $0x98] sm:$0xff] %v654_v11  ;;  %v582_v14 = vadd.f32 %v1512_v13, %v1887_v16  ;;  %v576_v15 = vpop.f32.mrb[21].mxu0  ;;  %v2004_v13 = vld [vmem:[%s1963_s29 + $0x50] sm:$0xff] }
 0x125   : > { %685 = vst [vmem:[%s1894_s24 + $0x90] sm:$0xff] %v653_v12  ;;  %v577_v17 = vadd.f32 %v1887_v16, %v576_v15  ;;  %1587 = vmatprep.mubr.f32.mxu1 %v653_v12 }
 0x126   : > { %v656_v18 = vmax.f32 %v582_v14, 0.0  ;;  %1588 = vmatmul.mubr.f32.gmra.mrb[18].mxu1 %v654_v11  ;;  %v1124_v11 = vmul.f32 %v1999_v10, %v1999_v10  ;;  %v1125_v14 = vmul.f32 %v2004_v13, %v2004_v13 }
 0x127   : > { %v655_v19 = vmax.f32 %v577_v17, 0.0  ;;  %v1515_v20 = vpop.f32.mrb[22].mxu0  ;;  %v2009_v17 = vld [vmem:[%s1963_s29 + $0x58] sm:$0xff] }
 0x128   : > { %688 = vst [vmem:[%s1894_s24 + $0xa8] sm:$0xff] %v656_v18  ;;  %v592_v21 = vadd.f32 %v1515_v20, %v1887_v16  ;;  %v586_v22 = vpop.f32.mrb[23].mxu0  ;;  %v2014_v20 = vld [vmem:[%s1963_s29 + $0x60] sm:$0xff] }
 0x129   : > { %687 = vst [vmem:[%s1894_s24 + $0xa0] sm:$0xff] %v655_v19  ;;  %v587_v23 = vadd.f32 %v1887_v16, %v586_v22  ;;  %1590 = vmatprep.mubr.f32.mxu1 %v655_v19 }
 0x12a   : > { %v658_v24 = vmax.f32 %v592_v21, 0.0  ;;  %1591 = vmatmul.mubr.f32.gmra.mrb[20].mxu1 %v656_v18  ;;  %v1126_v18 = vmul.f32 %v2009_v17, %v2009_v17  ;;  %v1127_v21 = vmul.f32 %v2014_v20, %v2014_v20 }
 0x12b   : > { %v657_v25 = vmax.f32 %v587_v23, 0.0  ;;  %v1518_v26 = vpop.f32.mrb[24].mxu0  ;;  %v2019_v23 = vld [vmem:[%s1963_s29 + $0x68] sm:$0xff] }
 0x12c   : > { %690 = vst [vmem:[%s1894_s24 + $0xb8] sm:$0xff] %v658_v24  ;;  %v602_v27 = vadd.f32 %v1518_v26, %v1887_v16  ;;  %v596_v28 = vpop.f32.mrb[25].mxu0  ;;  %v2026_v26 = vld [vmem:[%s2185_s5] ss:$0 sm:$0xff] }
 0x12d   : > { %689 = vst [vmem:[%s1894_s24 + $0xb0] sm:$0xff] %v657_v25  ;;  %v597_v29 = vadd.f32 %v1887_v16, %v596_v28  ;;  %1593 = vmatprep.mubr.f32.mxu1 %v657_v25 }
 0x12e   : > { %v660_v30 = vmax.f32 %v602_v27, 0.0  ;;  %1594 = vmatmul.mubr.f32.gmra.mrb[22].mxu1 %v658_v24  ;;  %v1128_v24 = vmul.f32 %v2019_v23, %v2019_v23  ;;  %v2029_v27 = vld [vmem:[%s1963_s29 + $0x70] sm:$0xff] }
 0x12f   : > { %v659_v31 = vmax.f32 %v597_v29, 0.0  ;;  %v1521_v32 = vpop.f32.mrb[26].mxu0  ;;  %v1129_v28 = vmul.f32 %v2029_v27, %v2029_v27 }
 0x130   : > { %692 = vst [vmem:[%s1894_s24 + $0xc8] sm:$0xff] %v660_v30  ;;  %v612_v33 = vadd.f32 %v1521_v32, %v1887_v16  ;;  %v606_v34 = vpop.f32.mrb[27].mxu0 }
 0x131   : > { %691 = vst [vmem:[%s1894_s24 + $0xc0] sm:$0xff] %v659_v31  ;;  %v607_v35 = vadd.f32 %v1887_v16, %v606_v34  ;;  %1596 = vmatprep.mubr.f32.mxu1 %v659_v31  ;;  %v2042_v34 = vld [vmem:[%s1963_s29 + $0x78] sm:$0xff] }
 0x132   : > { %v662_v36 = vmax.f32 %v612_v33, 0.0  ;;  %1597 = vmatmul.mubr.f32.gmra.mrb[24].mxu1 %v660_v30 }
 0x133   : > { %v661_v37 = vmax.f32 %v607_v35, 0.0  ;;  %v1524_v38 = vpop.f32.mrb[28].mxu0 }
 0x134   : > { %694 = vst [vmem:[%s1894_s24 + $0xd8] sm:$0xff] %v662_v36  ;;  %v622_v39 = vadd.f32 %v1524_v38, %v1887_v16  ;;  %v616_v40 = vpop.f32.mrb[29].mxu0 }
 0x135   : > { %693 = vst [vmem:[%s1894_s24 + $0xd0] sm:$0xff] %v661_v37  ;;  %v617_v41 = vadd.f32 %v1887_v16, %v616_v40  ;;  %1599 = vmatprep.mubr.f32.mxu1 %v661_v37 }
 0x136   : > { %v664_v42 = vmax.f32 %v622_v39, 0.0  ;;  %1600 = vmatmul.mubr.f32.gmra.mrb[26].mxu1 %v662_v36  ;;  %v1130_v36 = vmul.f32 %v2042_v34, %v2042_v34 }
 0x137   : > { %v663_v43 = vmax.f32 %v617_v41, 0.0  ;;  %v1527_v44 = vpop.f32.mrb[30].mxu0 }
 0x138   : > { %696 = vst [vmem:[%s1894_s24 + $0xe8] sm:$0xff] %v664_v42  ;;  %v632_v45 = vadd.f32 %v1527_v44, %v1887_v16  ;;  %v626_v46 = vpop.f32.mrb[31].mxu0 }
 0x139   : > { %695 = vst [vmem:[%s1894_s24 + $0xe0] sm:$0xff] %v663_v43  ;;  %v627_v47 = vadd.f32 %v1887_v16, %v626_v46  ;;  %1602 = vmatprep.mubr.f32.mxu1 %v663_v43  ;;  %v980_v16 = vld [vmem:[%s1963_s29 + $0x8] sm:$0xff] }
 0x13a   : > { %v666_v48 = vmax.f32 %v632_v45, 0.0  ;;  %1603 = vmatmul.mubr.f32.gmra.mrb[28].mxu1 %v664_v42  ;;  %v1116_v51 = vmul.f32 %v980_v16, %v980_v16  ;;  %v2051_v45 = vld [vmem:[%s1963_s29 + $0x80] sm:$0xff] }
 0x13b   : > { %v665_v49 = vmax.f32 %v627_v47, 0.0  ;;  %v1131_v46 = vmul.f32 %v2051_v45, %v2051_v45 }
 0x13c   : > { %698 = vst [vmem:[%s1894_s24 + $0xf8] sm:$0xff] %v666_v48  ;;  %v1147_v54 = vadd.f32 %v1116_v51, %v1115_v52 }
 0x13d   : > { %697 = vst [vmem:[%s1894_s24 + $0xf0] sm:$0xff] %v665_v49  ;;  %1605 = vmatprep.mubr.f32.mxu1 %v665_v49 }
 0x13e   : > { %1606 = vmatmul.mubr.f32.gmra.mrb[30].mxu1 %v666_v48  ;;  %v1148_v58 = vadd.f32 %v1147_v54, %v1117_v55 }
 0x140   : > { %v1149_v61 = vadd.f32 %v1148_v58, %v1118_v57  ;;  %v2061_v57 = vld [vmem:[%s1963_s29 + $0x88] sm:$0xff] }
 0x141   : > { %v1132_v58 = vmul.f32 %v2061_v57, %v2061_v57 }
 0x142   : > { %v1150_v0 = vadd.f32 %v1149_v61, %v1119_v60 }
 0x144   : > { %v1151_v3 = vadd.f32 %v1150_v0, %v1120_v63 }
 0x146   : > { %v1152_v6 = vadd.f32 %v1151_v3, %v1121_v2 }
 0x148   : > { %v1153_v9 = vadd.f32 %v1152_v6, %v1122_v5 }
 0x14a   : > { %v1154_v12 = vadd.f32 %v1153_v9, %v1123_v8  ;;  %v2072_v9 = vld [vmem:[%s1963_s29 + $0x90] sm:$0xff] }
 0x14c   : > { %v1155_v15 = vadd.f32 %v1154_v12, %v1124_v11 }
 0x14e   : > { %v1156_v19 = vadd.f32 %v1155_v15, %v1125_v14 }
 0x150   : > { %v1157_v22 = vadd.f32 %v1156_v19, %v1126_v18 }
 0x152   : > { %v1158_v25 = vadd.f32 %v1157_v22, %v1127_v21 }
 0x154   : > { %v1159_v29 = vadd.f32 %v1158_v25, %v1128_v24 }
 0x156   : > { %v1160_v37 = vadd.f32 %v1159_v29, %v1129_v28  ;;  %v2083_v28 = vld [vmem:[%s1963_s29 + $0x98] sm:$0xff] }
 0x158   : > { %v1161_v47 = vadd.f32 %v1160_v37, %v1130_v36 }
 0x15a   : > { %v1162_v60 = vadd.f32 %v1161_v47, %v1131_v46 }
 0x15c   : > { %v1163_v11 = vadd.f32 %v1162_v60, %v1132_v58 }
 0x1d5   : > { %v1562_v30 = vpop.f32.mrb[0].mxu1 }
 0x1d6   : > { %v794_v31 = vadd.f32 %v1562_v30, %v2026_v26  ;;  %v788_v32 = vpop.f32.mrb[1].mxu1 }
 0x1d7   : > { %v789_v33 = vadd.f32 %v2026_v26, %v788_v32 }
 0x1d8   : > { %948 = vst [vmem:[%s2037_s13 + $0x8] sm:$0xff] %v794_v31  ;;  %v1012_v35 = vsub.f32 %v794_v31, %v980_v16 }
 0x1d9   : > { %947 = vst [vmem:[%s2037_s13] sm:$0xff] %v789_v33  ;;  %v1011_v38 = vsub.f32 %v789_v33, %v979_v50  ;;  %v1565_v39 = vpop.f32.mrb[2].mxu1 }
 0x1da   : > { %v1044_v40 = vmul.f32 %v1012_v35, %v1012_v35  ;;  %v804_v41 = vadd.f32 %v1565_v39, %v2026_v26  ;;  %v798_v42 = vpop.f32.mrb[3].mxu1 }
 0x1db   : > { %v1043_v43 = vmul.f32 %v1011_v38, %v1011_v38  ;;  %v799_v44 = vadd.f32 %v2026_v26, %v798_v42 }
 0x1dc   : > { %950 = vst [vmem:[%s2037_s13 + $0x18] sm:$0xff] %v804_v41  ;;  %v1014_v49 = vsub.f32 %v804_v41, %v982_v56 }
 0x1dd   : > { %v1075_v48 = vadd.f32 %v1044_v40, %v1043_v43  ;;  %949 = vst [vmem:[%s2037_s13 + $0x10] sm:$0xff] %v799_v44  ;;  %v1013_v16 = vsub.f32 %v799_v44, %v1968_v53  ;;  %v1568_v50 = vpop.f32.mrb[4].mxu1  ;;  %v2094_v40 = vld [vmem:[%s1963_s29 + $0xa0] sm:$0xff] }
 0x1de   : > { %v814_v51 = vadd.f32 %v1568_v50, %v2026_v26  ;;  %v808_v52 = vpop.f32.mrb[5].mxu1  ;;  %v1046_v56 = vmul.f32 %v1014_v49, %v1014_v49 }
 0x1df   : > { %v1045_v54 = vmul.f32 %v1013_v16, %v1013_v16  ;;  %v809_v55 = vadd.f32 %v2026_v26, %v808_v52 }
 0x1e0   : > { %952 = vst [vmem:[%s2037_s13 + $0x28] sm:$0xff] %v814_v51  ;;  %v1016_v53 = vsub.f32 %v814_v51, %v1979_v62  ;;  %v1133_v62 = vmul.f32 %v2072_v9, %v2072_v9  ;;  %v2105_v51 = vld [vmem:[%s1963_s29 + $0xa8] sm:$0xff] }
 0x1e1   : > { %v1076_v61 = vadd.f32 %v1075_v48, %v1045_v54  ;;  %951 = vst [vmem:[%s2037_s13 + $0x20] sm:$0xff] %v809_v55  ;;  %v1015_v63 = vsub.f32 %v809_v55, %v1974_v59  ;;  %v1571_v0 = vpop.f32.mrb[6].mxu1 }
 0x1e2   : > { %v824_v2 = vadd.f32 %v1571_v0, %v2026_v26  ;;  %v818_v3 = vpop.f32.mrb[7].mxu1  ;;  %v1048_v12 = vmul.f32 %v1016_v53, %v1016_v53  ;;  %v1164_v29 = vadd.f32 %v1163_v11, %v1133_v62 }
 0x1e3   : > { %v1047_v5 = vmul.f32 %v1015_v63, %v1015_v63  ;;  %v1077_v6 = vadd.f32 %v1076_v61, %v1046_v56  ;;  %v819_v8 = vadd.f32 %v2026_v26, %v818_v3 }
 0x1e4   : > { %954 = vst [vmem:[%s2037_s13 + $0x38] sm:$0xff] %v824_v2  ;;  %v1018_v59 = vsub.f32 %v824_v2, %v1989_v4  ;;  %v1134_v4 = vmul.f32 %v2083_v28, %v2083_v28  ;;  %v2116_v2 = vld [vmem:[%s1963_s29 + $0xb0] sm:$0xff] }
 0x1e5   : > { %v1078_v14 = vadd.f32 %v1077_v6, %v1047_v5  ;;  %953 = vst [vmem:[%s2037_s13 + $0x30] sm:$0xff] %v819_v8  ;;  %v1017_v15 = vsub.f32 %v819_v8, %v1984_v1  ;;  %v1574_v18 = vpop.f32.mrb[8].mxu1 }
 0x1e6   : > { %v834_v19 = vadd.f32 %v1574_v18, %v2026_v26  ;;  %v828_v21 = vpop.f32.mrb[9].mxu1  ;;  %v1050_v30 = vmul.f32 %v1018_v59, %v1018_v59  ;;  %v1165_v41 = vadd.f32 %v1164_v29, %v1134_v4  ;;  %v1002_v18 = vld [vmem:[%s1963_s29 + $0xb8] sm:$0xff] }
 0x1e7   : > { %v1049_v22 = vmul.f32 %v1017_v15, %v1017_v15  ;;  %v1079_v24 = vadd.f32 %v1078_v14, %v1048_v12  ;;  %v829_v25 = vadd.f32 %v2026_v26, %v828_v21 }
 0x1e8   : > { %956 = vst [vmem:[%s2037_s13 + $0x48] sm:$0xff] %v834_v19  ;;  %v1020_v1 = vsub.f32 %v834_v19, %v1999_v10  ;;  %v1135_v10 = vmul.f32 %v2094_v40, %v2094_v40  ;;  %v1138_v19 = vmul.f32 %v1002_v18, %v1002_v18 }
 0x1e9   : > { %v1080_v31 = vadd.f32 %v1079_v24, %v1049_v22  ;;  %955 = vst [vmem:[%s2037_s13 + $0x40] sm:$0xff] %v829_v25  ;;  %v1019_v32 = vsub.f32 %v829_v25, %v1994_v7  ;;  %v1577_v33 = vpop.f32.mrb[10].mxu1 }
 0x1ea   : > { %v844_v35 = vadd.f32 %v1577_v33, %v2026_v26  ;;  %v838_v36 = vpop.f32.mrb[11].mxu1  ;;  %v1052_v42 = vmul.f32 %v1020_v1, %v1020_v1  ;;  %v1166_v52 = vadd.f32 %v1165_v41, %v1135_v10 }
 0x1eb   : > { %v1051_v37 = vmul.f32 %v1019_v32, %v1019_v32  ;;  %v1081_v38 = vadd.f32 %v1080_v31, %v1050_v30  ;;  %v839_v39 = vadd.f32 %v2026_v26, %v838_v36  ;;  %v1003_v32 = vld [vmem:[%s1963_s29 + $0xc0] sm:$0xff] }
 0x1ec   : > { %958 = vst [vmem:[%s2037_s13 + $0x58] sm:$0xff] %v844_v35  ;;  %v1022_v7 = vsub.f32 %v844_v35, %v2009_v17  ;;  %v1136_v17 = vmul.f32 %v2105_v51, %v2105_v51  ;;  %v1139_v33 = vmul.f32 %v1003_v32, %v1003_v32 }
 0x1ed   : > { %v1082_v43 = vadd.f32 %v1081_v38, %v1051_v37  ;;  %957 = vst [vmem:[%s2037_s13 + $0x50] sm:$0xff] %v839_v39  ;;  %v1021_v44 = vsub.f32 %v839_v39, %v2004_v13  ;;  %v1580_v46 = vpop.f32.mrb[12].mxu1 }
 0x1ee   : > { %v854_v47 = vadd.f32 %v1580_v46, %v2026_v26  ;;  %v848_v48 = vpop.f32.mrb[13].mxu1  ;;  %v1054_v54 = vmul.f32 %v1022_v7, %v1022_v7  ;;  %v1167_v3 = vadd.f32 %v1166_v52, %v1136_v17  ;;  %v1004_v7 = vld [vmem:[%s1963_s29 + $0xc8] sm:$0xff] }
 0x1ef   : > { %v1053_v49 = vmul.f32 %v1021_v44, %v1021_v44  ;;  %v1083_v16 = vadd.f32 %v1082_v43, %v1052_v42  ;;  %v849_v50 = vadd.f32 %v2026_v26, %v848_v48  ;;  %v1140_v44 = vmul.f32 %v1004_v7, %v1004_v7 }
 0x1f0   : > { %960 = vst [vmem:[%s2037_s13 + $0x68] sm:$0xff] %v854_v47  ;;  %v1024_v13 = vsub.f32 %v854_v47, %v2019_v23  ;;  %v1137_v23 = vmul.f32 %v2116_v2, %v2116_v2 }
 0x1f1   : > { %v1084_v55 = vadd.f32 %v1083_v16, %v1053_v49  ;;  %959 = vst [vmem:[%s2037_s13 + $0x60] sm:$0xff] %v849_v50  ;;  %v1023_v58 = vsub.f32 %v849_v50, %v2014_v20  ;;  %v1583_v60 = vpop.f32.mrb[14].mxu1 }
 0x1f2   : > { %v864_v56 = vadd.f32 %v1583_v60, %v2026_v26  ;;  %v858_v61 = vpop.f32.mrb[15].mxu1  ;;  %v1056_v5 = vmul.f32 %v1024_v13, %v1024_v13  ;;  %v1168_v21 = vadd.f32 %v1167_v3, %v1137_v23 }
 0x1f3   : > { %v1055_v53 = vmul.f32 %v1023_v58, %v1023_v58  ;;  %v1085_v63 = vadd.f32 %v1084_v55, %v1054_v54  ;;  %v859_v0 = vadd.f32 %v2026_v26, %v858_v61  ;;  %v1005_v55 = vld [vmem:[%s1963_s29 + $0xd0] sm:$0xff] }
 0x1f4   : > { %962 = vst [vmem:[%s2037_s13 + $0x78] sm:$0xff] %v864_v56  ;;  %v1026_v20 = vsub.f32 %v864_v56, %v2042_v34  ;;  %v1169_v35 = vadd.f32 %v1168_v21, %v1138_v19  ;;  %v1141_v13 = vmul.f32 %v1005_v55, %v1005_v55  ;;  %v1007_v21 = vld [vmem:[%s1963_s29 + $0xe0] sm:$0xff] }
 0x1f5   : > { %v1086_v6 = vadd.f32 %v1085_v63, %v1055_v53  ;;  %961 = vst [vmem:[%s2037_s13 + $0x70] sm:$0xff] %v859_v0  ;;  %v1025_v8 = vsub.f32 %v859_v0, %v2029_v27  ;;  %v1586_v62 = vpop.f32.mrb[16].mxu1 }
 0x1f6   : > { %v874_v11 = vadd.f32 %v1586_v62, %v2026_v26  ;;  %v868_v12 = vpop.f32.mrb[17].mxu1  ;;  %v1058_v22 = vmul.f32 %v1026_v20, %v1026_v20  ;;  %v1170_v46 = vadd.f32 %v1169_v35, %v1139_v33 }
 0x1f7   : > { %v1057_v14 = vmul.f32 %v1025_v8, %v1025_v8  ;;  %v1087_v59 = vadd.f32 %v1086_v6, %v1056_v5  ;;  %v869_v15 = vadd.f32 %v2026_v26, %v868_v12  ;;  %v1006_v5 = vld [vmem:[%s1963_s29 + $0xd8] sm:$0xff] }
 0x1f8   : > { %964 = vst [vmem:[%s2037_s13 + $0x88] sm:$0xff] %v874_v11  ;;  %v1028_v24 = vsub.f32 %v874_v11, %v2061_v57  ;;  %v1171_v58 = vadd.f32 %v1170_v46, %v1140_v44  ;;  %v1142_v6 = vmul.f32 %v1006_v5, %v1006_v5 }
 0x1f9   : > { %v1088_v34 = vadd.f32 %v1087_v59, %v1057_v14  ;;  %963 = vst [vmem:[%s2037_s13 + $0x80] sm:$0xff] %v869_v15  ;;  %v1027_v27 = vsub.f32 %v869_v15, %v2051_v45  ;;  %v1589_v25 = vpop.f32.mrb[18].mxu1 }
 0x1fa   : > { %v884_v4 = vadd.f32 %v1589_v25, %v2026_v26  ;;  %v878_v29 = vpop.f32.mrb[19].mxu1  ;;  %v1060_v36 = vmul.f32 %v1028_v24, %v1028_v24  ;;  %v1172_v20 = vadd.f32 %v1171_v58, %v1141_v13 }
 0x1fb   : > { %v1059_v30 = vmul.f32 %v1027_v27, %v1027_v27  ;;  %v1089_v31 = vadd.f32 %v1088_v34, %v1058_v22  ;;  %v879_v1 = vadd.f32 %v2026_v26, %v878_v29  ;;  %v1143_v22 = vmul.f32 %v1007_v21, %v1007_v21 }
 0x1fc   : > { %966 = vst [vmem:[%s2037_s13 + $0x98] sm:$0xff] %v884_v4  ;;  %v1030_v37 = vsub.f32 %v884_v4, %v2083_v28  ;;  %v1173_v34 = vadd.f32 %v1172_v20, %v1142_v6 }
 0x1fd   : > { %v1090_v57 = vadd.f32 %v1089_v31, %v1059_v30  ;;  %965 = vst [vmem:[%s2037_s13 + $0x90] sm:$0xff] %v879_v1  ;;  %v1029_v45 = vsub.f32 %v879_v1, %v2072_v9  ;;  %v1592_v38 = vpop.f32.mrb[20].mxu1  ;;  %v1008_v31 = vld [vmem:[%s1963_s29 + $0xe8] sm:$0xff] }
 0x1fe   : > { %v894_v39 = vadd.f32 %v1592_v38, %v2026_v26  ;;  %v888_v10 = vpop.f32.mrb[21].mxu1  ;;  %v1062_v47 = vmul.f32 %v1030_v37, %v1030_v37 }
 0x1ff   : > { %v1061_v41 = vmul.f32 %v1029_v45, %v1029_v45  ;;  %v1091_v42 = vadd.f32 %v1090_v57, %v1060_v36  ;;  %v889_v43 = vadd.f32 %v2026_v26, %v888_v10  ;;  %v1144_v36 = vmul.f32 %v1008_v31, %v1008_v31 }
 0x200   : > { %968 = vst [vmem:[%s2037_s13 + $0xa8] sm:$0xff] %v894_v39  ;;  %v1032_v48 = vsub.f32 %v894_v39, %v2105_v51  ;;  %v1174_v57 = vadd.f32 %v1173_v34, %v1143_v22 }
 0x201   : > { %v1092_v28 = vadd.f32 %v1091_v42, %v1061_v41  ;;  %967 = vst [vmem:[%s2037_s13 + $0xa0] sm:$0xff] %v889_v43  ;;  %v1031_v9 = vsub.f32 %v889_v43, %v2094_v40  ;;  %v1595_v49 = vpop.f32.mrb[22].mxu1  ;;  %v1009_v43 = vld [vmem:[%s1963_s29 + $0xf0] sm:$0xff] }
 0x202   : > { %v904_v16 = vadd.f32 %v1595_v49, %v2026_v26  ;;  %v898_v50 = vpop.f32.mrb[23].mxu1  ;;  %v1064_v60 = vmul.f32 %v1032_v48, %v1032_v48  ;;  %v1175_v48 = vadd.f32 %v1174_v57, %v1144_v36 }
 0x203   : > { %v1063_v17 = vmul.f32 %v1031_v9, %v1031_v9  ;;  %v1093_v52 = vadd.f32 %v1092_v28, %v1062_v47  ;;  %v899_v54 = vadd.f32 %v2026_v26, %v898_v50  ;;  %v1145_v28 = vmul.f32 %v1009_v43, %v1009_v43 }
 0x204   : > { %970 = vst [vmem:[%s2037_s13 + $0xb8] sm:$0xff] %v904_v16  ;;  %v1034_v56 = vsub.f32 %v904_v16, %v1002_v18 }
 0x205   : > { %v1094_v51 = vadd.f32 %v1093_v52, %v1063_v17  ;;  %969 = vst [vmem:[%s2037_s13 + $0xb0] sm:$0xff] %v899_v54  ;;  %v1033_v40 = vsub.f32 %v899_v54, %v2116_v2  ;;  %v1598_v61 = vpop.f32.mrb[24].mxu1  ;;  %v1176_v58 = vadd.f32 %v1175_v48, %v1145_v28 }
 0x206   : > { %v914_v53 = vadd.f32 %v1598_v61, %v2026_v26  ;;  %v908_v63 = vpop.f32.mrb[25].mxu1  ;;  %v1066_v8 = vmul.f32 %v1034_v56, %v1034_v56 }
 0x207   : > { %v1065_v0 = vmul.f32 %v1033_v40, %v1033_v40  ;;  %v1095_v23 = vadd.f32 %v1094_v51, %v1064_v60  ;;  %v909_v3 = vadd.f32 %v2026_v26, %v908_v63 }
 0x208   : > { %972 = vst [vmem:[%s2037_s13 + $0xc8] sm:$0xff] %v914_v53  ;;  %v1036_v11 = vsub.f32 %v914_v53, %v1004_v7  ;;  %v1010_v7 = vld [vmem:[%s1963_s29 + $0xf8] sm:$0xff] }
 0x209   : > { %v1096_v62 = vadd.f32 %v1095_v23, %v1065_v0  ;;  %971 = vst [vmem:[%s2037_s13 + $0xc0] sm:$0xff] %v909_v3  ;;  %v1035_v2 = vsub.f32 %v909_v3, %v1003_v32  ;;  %v1601_v12 = vpop.f32.mrb[26].mxu1  ;;  %v1146_v13 = vmul.f32 %v1010_v7, %v1010_v7 }
 0x20a   : > { %v924_v14 = vadd.f32 %v1601_v12, %v2026_v26  ;;  %v918_v59 = vpop.f32.mrb[27].mxu1  ;;  %v1068_v24 = vmul.f32 %v1036_v11, %v1036_v11  ;;  %v1187_v11 = vlaneseq }
 0x20b   : > { %v1067_v15 = vmul.f32 %v1035_v2, %v1035_v2  ;;  %v1097_v18 = vadd.f32 %v1096_v62, %v1066_v8  ;;  %v919_v19 = vadd.f32 %v2026_v26, %v918_v59  ;;  %v1177_v51 = vadd.f32 %v1176_v58, %v1146_v13 }
 0x20c   : > { %974 = vst [vmem:[%s2037_s13 + $0xd8] sm:$0xff] %v924_v14  ;;  %v1038_v25 = vsub.f32 %v924_v14, %v1006_v5  ;;  %v1188_v2 = vshrl.u32 %v1187_v11, 7  ;;  %v1190_v12 = vand.u32 127, %v1187_v11 }
 0x20d   : > { %v1098_v27 = vadd.f32 %v1097_v18, %v1067_v15  ;;  %973 = vst [vmem:[%s2037_s13 + $0xd0] sm:$0xff] %v919_v19  ;;  %v1037_v4 = vsub.f32 %v919_v19, %v1005_v55  ;;  %v1604_v29 = vpop.f32.mrb[28].mxu1 }
 0x20e   : > { %v934_v30 = vadd.f32 %v1604_v29, %v2026_v26  ;;  %v928_v1 = vpop.f32.mrb[29].mxu1  ;;  %v1070_v37 = vmul.f32 %v1038_v25, %v1038_v25  ;;  %vm1191_vm0 = vcmp.eq.s32.totalorder %v1188_v2, 0  ;;  %vm1194_vm1 = vcmp.eq.s32.totalorder %v1190_v12, 1 }
 0x20f   : > { %v1069_v32 = vmul.f32 %v1037_v4, %v1037_v4  ;;  %v1099_v33 = vadd.f32 %v1098_v27, %v1068_v24  ;;  %v929_v35 = vadd.f32 %v2026_v26, %v928_v1  ;;  %vm1192_vm2 = vcmp.eq.s32.totalorder %v1190_v12, 0  ;;  %vm1195_vm3 = vmand %vm1191_vm0, %vm1194_vm1 }
 0x210   : > { %976 = vst [vmem:[%s2037_s13 + $0xe8] sm:$0xff] %v934_v30  ;;  %v1040_v38 = vsub.f32 %v934_v30, %v1008_v31  ;;  %vm1193_vm4 = vmand %vm1191_vm0, %vm1192_vm2 }
 0x211   : > { %v1100_v45 = vadd.f32 %v1099_v33, %v1069_v32  ;;  %975 = vst [vmem:[%s2037_s13 + $0xe0] sm:$0xff] %v929_v35  ;;  %v1039_v39 = vsub.f32 %v929_v35, %v1007_v21  ;;  %v1607_v10 = vpop.f32.mrb[30].mxu1 }
 0x212   : > { %v944_v41 = vadd.f32 %v1607_v10, %v2026_v26  ;;  %v938_v42 = vpop.f32.mrb[31].mxu1  ;;  %v1072_v9 = vmul.f32 %v1040_v38, %v1040_v38 }
 0x213   : > { %v1071_v44 = vmul.f32 %v1039_v39, %v1039_v39  ;;  %v1101_v46 = vadd.f32 %v1100_v45, %v1070_v37  ;;  %v939_v47 = vadd.f32 %v2026_v26, %v938_v42 }
 0x214   : > { %978 = vst [vmem:[%s2037_s13 + $0xf8] sm:$0xff] %v944_v41  ;;  %v1042_v50 = vsub.f32 %v944_v41, %v1010_v7 }
 0x215   : > { %v1102_v49 = vadd.f32 %v1101_v46, %v1071_v44  ;;  %977 = vst [vmem:[%s2037_s13 + $0xf0] sm:$0xff] %v939_v47  ;;  %v1041_v16 = vsub.f32 %v939_v47, %v1009_v43 }
 0x216   : > { %v1074_v54 = vmul.f32 %v1042_v50, %v1042_v50 }
 0x217   : > { %v1073_v17 = vmul.f32 %v1041_v16, %v1041_v16  ;;  %v1103_v52 = vadd.f32 %v1102_v49, %v1072_v9 }
 0x219   : > { %v1104_v55 = vadd.f32 %v1103_v52, %v1073_v17 }
 0x21b   : > { %v1105_v60 = vadd.f32 %v1104_v55, %v1074_v54 }
 0x21d   : > { %1106 = vadd.xlane.f32.xlu0 %v1105_v60 }
 0x221   : > { %1178 = vadd.xlane.f32.xlu0 %v1177_v51 }
 0x2aa   : > { %v1107_v56 = vpop.xlane.xlu0 %1106 }
 0x2ab   : > { %v1108_v26 = vrot.slane %v1107_v56, 4 }
 0x2ad   : > { %v1109_v40 = vadd.f32 %v1108_v26, %v1107_v56 }
 0x2ae   : > { %v1179_v61 = vpop.xlane.xlu0 %1178 }
 0x2af   : > { %v1110_v53 = vrot.slane %v1109_v40, 2  ;;  %v1180_v63 = vrot.slane %v1179_v61, 4 }
 0x2b1   : > { %v1181_v0 = vadd.f32 %v1180_v63, %v1179_v61  ;;  %v1111_v23 = vadd.f32 %v1110_v53, %v1109_v40 }
 0x2b3   : > { %v1182_v3 = vrot.slane %v1181_v0, 2  ;;  %v1112_v5 = vrot.slane %v1111_v23, 1 }
 0x2b5   : > { %v1183_v6 = vadd.f32 %v1182_v3, %v1181_v0  ;;  %v1113_v20 = vadd.f32 %v1112_v5, %v1111_v23 }
 0x2b7   : > { %1672 = vpush %v1113_v20  ;;  %v1184_v8 = vrot.slane %v1183_v6, 1 }
 0x2b9   : > { %v1185_v62 = vadd.f32 %v1184_v8, %v1183_v6 }
 0x2bb   : > { %1674 = vpush %v1185_v62 }
 0x2e8   : > { %s1673_s14 = spop %1672 }
 0x2e9   : > { %v1198_v59 = vstv %s1673_s14 }
 0x2ec   : > { %s1675_s15 = spop %1674 }
 0x2ed   : > { %v1196_v14 = vstv %s1675_s15 }
 0x2ee   : > { %v1197_v15 = vsel %vm1195_vm3, %v1196_v14, 0.0 }
 0x2ef   : > { %v1199_v18 = vsel %vm1193_vm4, %v1198_v59, %v1197_v15 }
 0x2f0   : > { %1200 = vst [vmem:[%s354_s18] sm:$0xff] %v1199_v18 }
 0x2f1 PF: > { %s19_s27 = sadd.s32 1, %s1690_s27  }
 0x2f2   : > { %p16_p5 = scmp.ge.s32.totalorder %s19_s27, 4  }
 0x2f4   :  { %18 = sbr.rel (!%p16_p5) target bundleno = 1 (0x1), region = 101 }

// kernel: _tta_step.4
= control target key start
LH: loop header
LB: loop body
LE: loop exit
PB: predicated region body
PF: predicated region fallthrough
CT: control target
= control target key end

     0   :  { %vm238_vm0 = vcmask 1043456   ;;  %vm708_vm1 = vcmask 1040384   ;;  %vm658_vm2 = vcmask 1041408   ;;  %s921_s21 = smov 1e-08   ;;  %vm896_vm7 = vcmask 1024   ;;  %s1812_s0 = inlined_call_operand.<no memory space> [shape: s32[1], index: 0, kind: input, shape index: {}]   ;;  %s1813_s1 = inlined_call_operand.vmem [shape: f32[100,2048], index: 1, kind: input, shape index: {}]   ;;  %s1814_s2 = inlined_call_operand.vmem [shape: f32[2,2048], index: 2, kind: input, shape index: {}]   ;;  %s1815_s3 = inlined_call_operand.vmem [shape: f32[2,1], index: 3, kind: output, shape index: {}]  }
   0x1   :  { %p16_p0 = scmp.gt.s32.totalorder %s1812_s0, 1  ;;  %v19_v0 = vld [vmem:[%s1813_s1] sm:$0xff]  ;;  %v20_v1 = vld [vmem:[%s1813_s1 + $0x8] sm:$0xff]  ;;  %v21_v2 = vld [vmem:[%s1813_s1 + $0x10] sm:$0xff] }
   0x2   :  { %v22_v3 = vld [vmem:[%s1813_s1 + $0x18] sm:$0xff]  ;;  %v35_v4 = vld [vmem:[%s1813_s1 + $0x80] sm:$0xff]  ;;  %v24_v6 = vld [vmem:[%s1813_s1 + $0x28] sm:$0xff] }
   0x3   :  { %s1817_s0 = smov (!%p16_p0, %s1812_s0), 1  ;;  %v23_v5 = vld [vmem:[%s1813_s1 + $0x20] sm:$0xff]  ;;  %v36_v7 = vld [vmem:[%s1813_s1 + $0x88] sm:$0xff]  ;;  %v37_v8 = vld [vmem:[%s1813_s1 + $0x90] sm:$0xff]  ;;  %v227_v16 = vadd.f32 %v35_v4, %v19_v0 }
   0x4   :  { %s18_s26 = scvt.s32.f32 %s1817_s0  ;;  %v38_v9 = vld [vmem:[%s1813_s1 + $0x98] sm:$0xff]  ;;  %v25_v10 = vld [vmem:[%s1813_s1 + $0x30] sm:$0xff]  ;;  %v39_v12 = vld [vmem:[%s1813_s1 + $0xa0] sm:$0xff]  ;;  %v247_v22 = vadd.f32 %v36_v7, %v20_v1  ;;  %v266_v23 = vadd.f32 %v37_v8, %v21_v2  ;;  %v920_v7 = vmov 1983009808  }
   0x5   :  { %v26_v11 = vld [vmem:[%s1813_s1 + $0x38] sm:$0xff]  ;;  %v40_v13 = vld [vmem:[%s1813_s1 + $0xa8] sm:$0xff]  ;;  %v41_v14 = vld [vmem:[%s1813_s1 + $0xb0] sm:$0xff]  ;;  %v285_v24 = vadd.f32 %v38_v9, %v22_v3  ;;  %v304_v34 = vadd.f32 %v39_v12, %v23_v5  ;;  %v1101_v8 = vunpack.c.l.s4 %v920_v7  ;;  %v562_v9 = vlaneseq }
   0x6   :  { %v42_v15 = vld [vmem:[%s1813_s1 + $0xb8] sm:$0xff]  ;;  %v27_v17 = vld [vmem:[%s1813_s1 + $0x40] sm:$0xff]  ;;  %v28_v18 = vld [vmem:[%s1813_s1 + $0x48] sm:$0xff]  ;;  %v532_v28 = vstv %s18_s26  ;;  %v323_v35 = vadd.f32 %v40_v13, %v24_v6  ;;  %v342_v36 = vadd.f32 %v41_v14, %v25_v10 }
   0x7   :  { %v43_v19 = vld [vmem:[%s1813_s1 + $0xc0] sm:$0xff]  ;;  %v44_v20 = vld [vmem:[%s1813_s1 + $0xc8] sm:$0xff]  ;;  %v53_v26 = vld [vmem:[%s1813_s1 + $0x110] sm:$0xff]  ;;  %v361_v37 = vadd.f32 %v42_v15, %v26_v11  ;;  %912 = vrcp.f32 %v532_v28 }
   0x8   :  { %v51_v21 = vld [vmem:[%s1813_s1 + $0x100] sm:$0xff]  ;;  %v52_v25 = vld [vmem:[%s1813_s1 + $0x108] sm:$0xff]  ;;  %v54_v27 = vld [vmem:[%s1813_s1 + $0x118] sm:$0xff]  ;;  %v267_v52 = vadd.f32 %v266_v23, %v53_v26  ;;  %v380_v57 = vadd.f32 %v43_v19, %v27_v17  ;;  %v399_v58 = vadd.f32 %v44_v20, %v28_v18 }
   0x9   :  { %v29_v29 = vld [vmem:[%s1813_s1 + $0x50] sm:$0xff]  ;;  %v30_v30 = vld [vmem:[%s1813_s1 + $0x58] sm:$0xff]  ;;  %v55_v33 = vld [vmem:[%s1813_s1 + $0x120] sm:$0xff]  ;;  %v228_v41 = vadd.f32 %v227_v16, %v51_v21  ;;  %v248_v51 = vadd.f32 %v247_v22, %v52_v25  ;;  %v286_v53 = vadd.f32 %v285_v24, %v54_v27 }
   0xa   :  { %v45_v31 = vld [vmem:[%s1813_s1 + $0xd0] sm:$0xff]  ;;  %v46_v32 = vld [vmem:[%s1813_s1 + $0xd8] sm:$0xff]  ;;  %v56_v38 = vld [vmem:[%s1813_s1 + $0x128] sm:$0xff]  ;;  %v305_v62 = vadd.f32 %v304_v34, %v55_v33 }
   0xb   :  { %v57_v39 = vld [vmem:[%s1813_s1 + $0x130] sm:$0xff]  ;;  %v58_v40 = vld [vmem:[%s1813_s1 + $0x138] sm:$0xff]  ;;  %v31_v42 = vld [vmem:[%s1813_s1 + $0x60] sm:$0xff]  ;;  %v324_v63 = vadd.f32 %v323_v35, %v56_v38  ;;  %v418_v5 = vadd.f32 %v45_v31, %v29_v29  ;;  %v437_v6 = vadd.f32 %v46_v32, %v30_v30 }
   0xc   :  { %v32_v43 = vld [vmem:[%s1813_s1 + $0x68] sm:$0xff]  ;;  %v33_v44 = vld [vmem:[%s1813_s1 + $0x70] sm:$0xff]  ;;  %v34_v45 = vld [vmem:[%s1813_s1 + $0x78] sm:$0xff]  ;;  %v343_v0 = vadd.f32 %v342_v36, %v57_v39  ;;  %v362_v1 = vadd.f32 %v361_v37, %v58_v40  ;;  %v561_v39 = vunpack.c.0.s8 %v1101_v8  ;;  %v563_v40 = vshrl.u32 %v562_v9, 7 }
   0xd   :  { %v47_v46 = vld [vmem:[%s1813_s1 + $0xe0] sm:$0xff]  ;;  %v48_v47 = vld [vmem:[%s1813_s1 + $0xe8] sm:$0xff]  ;;  %v49_v48 = vld [vmem:[%s1813_s1 + $0xf0] sm:$0xff] }
   0xe   :  { %v50_v49 = vld [vmem:[%s1813_s1 + $0xf8] sm:$0xff]  ;;  %v67_v50 = vld [vmem:[%s1813_s1 + $0x180] sm:$0xff]  ;;  %v68_v54 = vld [vmem:[%s1813_s1 + $0x188] sm:$0xff]  ;;  %v456_v22 = vadd.f32 %v47_v46, %v31_v42  ;;  %v475_v23 = vadd.f32 %v48_v47, %v32_v43  ;;  %v494_v24 = vadd.f32 %v49_v48, %v33_v44  ;;  %v1199_v9 = vsub.s32 %v561_v39, %v563_v40 }
   0xf   :  { %v69_v55 = vld [vmem:[%s1813_s1 + $0x190] sm:$0xff]  ;;  %v70_v56 = vld [vmem:[%s1813_s1 + $0x198] sm:$0xff]  ;;  %v59_v59 = vld [vmem:[%s1813_s1 + $0x140] sm:$0xff]  ;;  %v229_v15 = vadd.f32 %v228_v41, %v67_v50  ;;  %v249_v16 = vadd.f32 %v248_v51, %v68_v54  ;;  %v513_v25 = vadd.f32 %v50_v49, %v34_v45 }
  0x10   :  { %v60_v60 = vld [vmem:[%s1813_s1 + $0x148] sm:$0xff]  ;;  %v71_v61 = vld [vmem:[%s1813_s1 + $0x1a0] sm:$0xff]  ;;  %v73_v3 = vld [vmem:[%s1813_s1 + $0x1b0] sm:$0xff]  ;;  %v268_v17 = vadd.f32 %v267_v52, %v69_v55  ;;  %v287_v18 = vadd.f32 %v286_v53, %v70_v56  ;;  %v381_v37 = vadd.f32 %v380_v57, %v59_v59 }
  0x11   :  { %v72_v2 = vld [vmem:[%s1813_s1 + $0x1a8] sm:$0xff]  ;;  %v74_v4 = vld [vmem:[%s1813_s1 + $0x1b8] sm:$0xff]  ;;  %v61_v10 = vld [vmem:[%s1813_s1 + $0x150] sm:$0xff]  ;;  %v306_v30 = vadd.f32 %v305_v62, %v71_v61  ;;  %v344_v32 = vadd.f32 %v343_v0, %v73_v3  ;;  %v400_v38 = vadd.f32 %v399_v58, %v60_v60 }
  0x12   :  { %v62_v11 = vld [vmem:[%s1813_s1 + $0x158] sm:$0xff]  ;;  %v63_v12 = vld [vmem:[%s1813_s1 + $0x160] sm:$0xff]  ;;  %v64_v13 = vld [vmem:[%s1813_s1 + $0x168] sm:$0xff]  ;;  %v325_v31 = vadd.f32 %v324_v63, %v72_v2  ;;  %v363_v33 = vadd.f32 %v362_v1, %v74_v4  ;;  %v419_v53 = vadd.f32 %v418_v5, %v61_v10  ;;  %v1188_v2 = vpop.eup %912 }
  0x13   :  { %v83_v14 = vld [vmem:[%s1813_s1 + $0x200] sm:$0xff]  ;;  %v84_v19 = vld [vmem:[%s1813_s1 + $0x208] sm:$0xff]  ;;  %v85_v20 = vld [vmem:[%s1813_s1 + $0x210] sm:$0xff]  ;;  %v438_v54 = vadd.f32 %v437_v6, %v62_v11  ;;  %v457_v55 = vadd.f32 %v456_v22, %v63_v12  ;;  %v476_v56 = vadd.f32 %v475_v23, %v64_v13 }
  0x14   :  { %v86_v21 = vld [vmem:[%s1813_s1 + $0x218] sm:$0xff]  ;;  %v65_v26 = vld [vmem:[%s1813_s1 + $0x170] sm:$0xff]  ;;  %v75_v28 = vld [vmem:[%s1813_s1 + $0x1c0] sm:$0xff]  ;;  %v230_v46 = vadd.f32 %v229_v15, %v83_v14  ;;  %v250_v47 = vadd.f32 %v249_v16, %v84_v19  ;;  %v269_v48 = vadd.f32 %v268_v17, %v85_v20 }
  0x15   :  { %v66_v27 = vld [vmem:[%s1813_s1 + $0x178] sm:$0xff]  ;;  %v87_v29 = vld [vmem:[%s1813_s1 + $0x220] sm:$0xff]  ;;  %v88_v34 = vld [vmem:[%s1813_s1 + $0x228] sm:$0xff]  ;;  %v288_v49 = vadd.f32 %v287_v18, %v86_v21  ;;  %v382_v6 = vadd.f32 %v381_v37, %v75_v28  ;;  %v495_v7 = vadd.f32 %v494_v24, %v65_v26 }
  0x16   :  { %v89_v35 = vld [vmem:[%s1813_s1 + $0x230] sm:$0xff]  ;;  %v90_v36 = vld [vmem:[%s1813_s1 + $0x238] sm:$0xff]  ;;  %v76_v41 = vld [vmem:[%s1813_s1 + $0x1c8] sm:$0xff]  ;;  %v307_v62 = vadd.f32 %v306_v30, %v87_v29  ;;  %v326_v63 = vadd.f32 %v325_v31, %v88_v34  ;;  %v514_v8 = vadd.f32 %v513_v25, %v66_v27 }
  0x17   :  { %v77_v42 = vld [vmem:[%s1813_s1 + $0x1d0] sm:$0xff]  ;;  %v78_v43 = vld [vmem:[%s1813_s1 + $0x1d8] sm:$0xff]  ;;  %v79_v44 = vld [vmem:[%s1813_s1 + $0x1e0] sm:$0xff]  ;;  %v345_v0 = vadd.f32 %v344_v32, %v89_v35  ;;  %v364_v1 = vadd.f32 %v363_v33, %v90_v36  ;;  %v401_v22 = vadd.f32 %v400_v38, %v76_v41 }
  0x18   :  { %v99_v45 = vld [vmem:[%s1813_s1 + $0x280] sm:$0xff]  ;;  %v100_v50 = vld [vmem:[%s1813_s1 + $0x288] sm:$0xff]  ;;  %v101_v51 = vld [vmem:[%s1813_s1 + $0x290] sm:$0xff]  ;;  %v420_v23 = vadd.f32 %v419_v53, %v77_v42  ;;  %v439_v24 = vadd.f32 %v438_v54, %v78_v43  ;;  %v458_v25 = vadd.f32 %v457_v55, %v79_v44 }
  0x19   :  { %v102_v52 = vld [vmem:[%s1813_s1 + $0x298] sm:$0xff]  ;;  %v80_v57 = vld [vmem:[%s1813_s1 + $0x1e8] sm:$0xff]  ;;  %v81_v58 = vld [vmem:[%s1813_s1 + $0x1f0] sm:$0xff]  ;;  %v231_v15 = vadd.f32 %v230_v46, %v99_v45  ;;  %v251_v16 = vadd.f32 %v250_v47, %v100_v50  ;;  %v270_v17 = vadd.f32 %v269_v48, %v101_v51 }
  0x1a   :  { %v82_v59 = vld [vmem:[%s1813_s1 + $0x1f8] sm:$0xff]  ;;  %v91_v60 = vld [vmem:[%s1813_s1 + $0x240] sm:$0xff]  ;;  %v104_v3 = vld [vmem:[%s1813_s1 + $0x2a8] sm:$0xff]  ;;  %v289_v18 = vadd.f32 %v288_v49, %v102_v52  ;;  %v477_v39 = vadd.f32 %v476_v56, %v80_v57  ;;  %v496_v40 = vadd.f32 %v495_v7, %v81_v58 }
  0x1b   :  { %v103_v61 = vld [vmem:[%s1813_s1 + $0x2a0] sm:$0xff]  ;;  %v105_v4 = vld [vmem:[%s1813_s1 + $0x2b0] sm:$0xff]  ;;  %v106_v5 = vld [vmem:[%s1813_s1 + $0x2b8] sm:$0xff]  ;;  %v327_v32 = vadd.f32 %v326_v63, %v104_v3  ;;  %v383_v38 = vadd.f32 %v382_v6, %v91_v60  ;;  %v515_v41 = vadd.f32 %v514_v8, %v82_v59 }
  0x1c   :  { %v92_v10 = vld [vmem:[%s1813_s1 + $0x248] sm:$0xff]  ;;  %v93_v11 = vld [vmem:[%s1813_s1 + $0x250] sm:$0xff]  ;;  %v94_v12 = vld [vmem:[%s1813_s1 + $0x258] sm:$0xff]  ;;  %v308_v31 = vadd.f32 %v307_v62, %v103_v61  ;;  %v346_v33 = vadd.f32 %v345_v0, %v105_v4  ;;  %v365_v34 = vadd.f32 %v364_v1, %v106_v5 }
  0x1d   :  { %v95_v13 = vld [vmem:[%s1813_s1 + $0x260] sm:$0xff]  ;;  %v116_v19 = vld [vmem:[%s1813_s1 + $0x308] sm:$0xff]  ;;  %v117_v20 = vld [vmem:[%s1813_s1 + $0x310] sm:$0xff]  ;;  %v402_v54 = vadd.f32 %v401_v22, %v92_v10  ;;  %v421_v55 = vadd.f32 %v420_v23, %v93_v11  ;;  %v440_v56 = vadd.f32 %v439_v24, %v94_v12 }
  0x1e   :  { %v115_v14 = vld [vmem:[%s1813_s1 + $0x300] sm:$0xff]  ;;  %v118_v21 = vld [vmem:[%s1813_s1 + $0x318] sm:$0xff]  ;;  %v96_v26 = vld [vmem:[%s1813_s1 + $0x268] sm:$0xff]  ;;  %v252_v48 = vadd.f32 %v251_v16, %v116_v19  ;;  %v271_v49 = vadd.f32 %v270_v17, %v117_v20  ;;  %v459_v57 = vadd.f32 %v458_v25, %v95_v13 }
  0x1f   :  { %v97_v27 = vld [vmem:[%s1813_s1 + $0x270] sm:$0xff]  ;;  %v98_v28 = vld [vmem:[%s1813_s1 + $0x278] sm:$0xff]  ;;  %v107_v29 = vld [vmem:[%s1813_s1 + $0x2c0] sm:$0xff]  ;;  %v232_v47 = vadd.f32 %v231_v15, %v115_v14  ;;  %v290_v50 = vadd.f32 %v289_v18, %v118_v21  ;;  %v478_v8 = vadd.f32 %v477_v39, %v96_v26 }
  0x20   :  { %v119_v30 = vld [vmem:[%s1813_s1 + $0x320] sm:$0xff]  ;;  %v120_v35 = vld [vmem:[%s1813_s1 + $0x328] sm:$0xff]  ;;  %v121_v36 = vld [vmem:[%s1813_s1 + $0x330] sm:$0xff]  ;;  %v384_v7 = vadd.f32 %v383_v38, %v107_v29  ;;  %v497_v10 = vadd.f32 %v496_v40, %v97_v27  ;;  %v516_v11 = vadd.f32 %v515_v41, %v98_v28 }
  0x21   :  { %v122_v37 = vld [vmem:[%s1813_s1 + $0x338] sm:$0xff]  ;;  %v108_v42 = vld [vmem:[%s1813_s1 + $0x2c8] sm:$0xff]  ;;  %v109_v43 = vld [vmem:[%s1813_s1 + $0x2d0] sm:$0xff]  ;;  %v309_v63 = vadd.f32 %v308_v31, %v119_v30  ;;  %v328_v0 = vadd.f32 %v327_v32, %v120_v35  ;;  %v347_v1 = vadd.f32 %v346_v33, %v121_v36 }
  0x22   :  { %v110_v44 = vld [vmem:[%s1813_s1 + $0x2d8] sm:$0xff]  ;;  %v111_v45 = vld [vmem:[%s1813_s1 + $0x2e0] sm:$0xff]  ;;  %v132_v51 = vld [vmem:[%s1813_s1 + $0x388] sm:$0xff]  ;;  %v366_v3 = vadd.f32 %v365_v34, %v122_v37  ;;  %v403_v24 = vadd.f32 %v402_v54, %v108_v42  ;;  %v422_v25 = vadd.f32 %v421_v55, %v109_v43 }
  0x23   :  { %v131_v46 = vld [vmem:[%s1813_s1 + $0x380] sm:$0xff]  ;;  %v133_v52 = vld [vmem:[%s1813_s1 + $0x390] sm:$0xff]  ;;  %v134_v53 = vld [vmem:[%s1813_s1 + $0x398] sm:$0xff]  ;;  %v253_v18 = vadd.f32 %v252_v48, %v132_v51  ;;  %v441_v26 = vadd.f32 %v440_v56, %v110_v44  ;;  %v460_v27 = vadd.f32 %v459_v57, %v111_v45 }
  0x24   :  { %v112_v58 = vld [vmem:[%s1813_s1 + $0x2e8] sm:$0xff]  ;;  %v113_v59 = vld [vmem:[%s1813_s1 + $0x2f0] sm:$0xff]  ;;  %v114_v60 = vld [vmem:[%s1813_s1 + $0x2f8] sm:$0xff]  ;;  %v233_v17 = vadd.f32 %v232_v47, %v131_v46  ;;  %v272_v19 = vadd.f32 %v271_v49, %v133_v52  ;;  %v291_v20 = vadd.f32 %v290_v50, %v134_v53 }
  0x25   :  { %v123_v61 = vld [vmem:[%s1813_s1 + $0x340] sm:$0xff]  ;;  %v136_v4 = vld [vmem:[%s1813_s1 + $0x3a8] sm:$0xff]  ;;  %v137_v5 = vld [vmem:[%s1813_s1 + $0x3b0] sm:$0xff]  ;;  %v479_v41 = vadd.f32 %v478_v8, %v112_v58  ;;  %v498_v42 = vadd.f32 %v497_v10, %v113_v59  ;;  %v517_v43 = vadd.f32 %v516_v11, %v114_v60 }
  0x26   :  { %v135_v62 = vld [vmem:[%s1813_s1 + $0x3a0] sm:$0xff]  ;;  %v138_v6 = vld [vmem:[%s1813_s1 + $0x3b8] sm:$0xff]  ;;  %v124_v12 = vld [vmem:[%s1813_s1 + $0x348] sm:$0xff]  ;;  %v329_v34 = vadd.f32 %v328_v0, %v136_v4  ;;  %v348_v35 = vadd.f32 %v347_v1, %v137_v5  ;;  %v385_v40 = vadd.f32 %v384_v7, %v123_v61 }
  0x27   :  { %v125_v13 = vld [vmem:[%s1813_s1 + $0x350] sm:$0xff]  ;;  %v126_v14 = vld [vmem:[%s1813_s1 + $0x358] sm:$0xff]  ;;  %v127_v15 = vld [vmem:[%s1813_s1 + $0x360] sm:$0xff]  ;;  %v310_v33 = vadd.f32 %v309_v63, %v135_v62  ;;  %v367_v36 = vadd.f32 %v366_v3, %v138_v6  ;;  %v404_v56 = vadd.f32 %v403_v24, %v124_v12 }
  0x28   :  { %v147_v16 = vld [vmem:[%s1813_s1 + $0x400] sm:$0xff]  ;;  %v148_v21 = vld [vmem:[%s1813_s1 + $0x408] sm:$0xff]  ;;  %v149_v22 = vld [vmem:[%s1813_s1 + $0x410] sm:$0xff]  ;;  %v423_v57 = vadd.f32 %v422_v25, %v125_v13  ;;  %v442_v58 = vadd.f32 %v441_v26, %v126_v14  ;;  %v461_v59 = vadd.f32 %v460_v27, %v127_v15 }
  0x29   :  { %v150_v23 = vld [vmem:[%s1813_s1 + $0x418] sm:$0xff]  ;;  %v128_v28 = vld [vmem:[%s1813_s1 + $0x368] sm:$0xff]  ;;  %v129_v29 = vld [vmem:[%s1813_s1 + $0x370] sm:$0xff]  ;;  %v234_v49 = vadd.f32 %v233_v17, %v147_v16  ;;  %v254_v50 = vadd.f32 %v253_v18, %v148_v21  ;;  %v273_v51 = vadd.f32 %v272_v19, %v149_v22 }
  0x2a   :  { %v130_v30 = vld [vmem:[%s1813_s1 + $0x378] sm:$0xff]  ;;  %v139_v31 = vld [vmem:[%s1813_s1 + $0x3c0] sm:$0xff]  ;;  %v152_v37 = vld [vmem:[%s1813_s1 + $0x428] sm:$0xff]  ;;  %v292_v52 = vadd.f32 %v291_v20, %v150_v23  ;;  %v480_v11 = vadd.f32 %v479_v41, %v128_v28  ;;  %v499_v12 = vadd.f32 %v498_v42, %v129_v29 }
  0x2b   :  { %v151_v32 = vld [vmem:[%s1813_s1 + $0x420] sm:$0xff]  ;;  %v153_v38 = vld [vmem:[%s1813_s1 + $0x430] sm:$0xff]  ;;  %v154_v39 = vld [vmem:[%s1813_s1 + $0x438] sm:$0xff]  ;;  %v330_v3 = vadd.f32 %v329_v34, %v152_v37  ;;  %v386_v10 = vadd.f32 %v385_v40, %v139_v31  ;;  %v518_v13 = vadd.f32 %v517_v43, %v130_v30 }
  0x2c   :  { %v140_v44 = vld [vmem:[%s1813_s1 + $0x3c8] sm:$0xff]  ;;  %v141_v45 = vld [vmem:[%s1813_s1 + $0x3d0] sm:$0xff]  ;;  %v142_v46 = vld [vmem:[%s1813_s1 + $0x3d8] sm:$0xff]  ;;  %v311_v1 = vadd.f32 %v310_v33, %v151_v32  ;;  %v349_v4 = vadd.f32 %v348_v35, %v153_v38  ;;  %v368_v5 = vadd.f32 %v367_v36, %v154_v39 }
  0x2d   :  { %v143_v47 = vld [vmem:[%s1813_s1 + $0x3e0] sm:$0xff]  ;;  %v164_v53 = vld [vmem:[%s1813_s1 + $0x488] sm:$0xff]  ;;  %v165_v54 = vld [vmem:[%s1813_s1 + $0x490] sm:$0xff]  ;;  %v405_v26 = vadd.f32 %v404_v56, %v140_v44  ;;  %v424_v27 = vadd.f32 %v423_v57, %v141_v45  ;;  %v443_v28 = vadd.f32 %v442_v58, %v142_v46 }
  0x2e   :  { %v163_v48 = vld [vmem:[%s1813_s1 + $0x480] sm:$0xff]  ;;  %v166_v55 = vld [vmem:[%s1813_s1 + $0x498] sm:$0xff]  ;;  %v144_v60 = vld [vmem:[%s1813_s1 + $0x3e8] sm:$0xff]  ;;  %v255_v20 = vadd.f32 %v254_v50, %v164_v53  ;;  %v274_v21 = vadd.f32 %v273_v51, %v165_v54  ;;  %v462_v29 = vadd.f32 %v461_v59, %v143_v47 }
  0x2f   :  { %v145_v61 = vld [vmem:[%s1813_s1 + $0x3f0] sm:$0xff]  ;;  %v146_v62 = vld [vmem:[%s1813_s1 + $0x3f8] sm:$0xff]  ;;  %v155_v63 = vld [vmem:[%s1813_s1 + $0x440] sm:$0xff]  ;;  %v235_v19 = vadd.f32 %v234_v49, %v163_v48  ;;  %v293_v22 = vadd.f32 %v292_v52, %v166_v55  ;;  %v481_v43 = vadd.f32 %v480_v11, %v144_v60 }
  0x30   :  { %v167_v0 = vld [vmem:[%s1813_s1 + $0x4a0] sm:$0xff]  ;;  %v168_v6 = vld [vmem:[%s1813_s1 + $0x4a8] sm:$0xff]  ;;  %v169_v7 = vld [vmem:[%s1813_s1 + $0x4b0] sm:$0xff]  ;;  %v387_v42 = vadd.f32 %v386_v10, %v155_v63  ;;  %v500_v44 = vadd.f32 %v499_v12, %v145_v61  ;;  %v519_v45 = vadd.f32 %v518_v13, %v146_v62 }
  0x31   :  { %v170_v8 = vld [vmem:[%s1813_s1 + $0x4b8] sm:$0xff]  ;;  %v156_v14 = vld [vmem:[%s1813_s1 + $0x448] sm:$0xff]  ;;  %v157_v15 = vld [vmem:[%s1813_s1 + $0x450] sm:$0xff]  ;;  %v312_v35 = vadd.f32 %v311_v1, %v167_v0  ;;  %v331_v36 = vadd.f32 %v330_v3, %v168_v6  ;;  %v350_v37 = vadd.f32 %v349_v4, %v169_v7 }
  0x32   :  { %v158_v16 = vld [vmem:[%s1813_s1 + $0x458] sm:$0xff]  ;;  %v159_v17 = vld [vmem:[%s1813_s1 + $0x460] sm:$0xff]  ;;  %v180_v23 = vld [vmem:[%s1813_s1 + $0x508] sm:$0xff]  ;;  %v369_v38 = vadd.f32 %v368_v5, %v170_v8  ;;  %v406_v57 = vadd.f32 %v405_v26, %v156_v14  ;;  %v425_v58 = vadd.f32 %v424_v27, %v157_v15 }
  0x33   :  { %v179_v18 = vld [vmem:[%s1813_s1 + $0x500] sm:$0xff]  ;;  %v181_v24 = vld [vmem:[%s1813_s1 + $0x510] sm:$0xff]  ;;  %v182_v25 = vld [vmem:[%s1813_s1 + $0x518] sm:$0xff]  ;;  %v256_v51 = vadd.f32 %v255_v20, %v180_v23  ;;  %v444_v59 = vadd.f32 %v443_v28, %v158_v16  ;;  %v463_v60 = vadd.f32 %v462_v29, %v159_v17 }
  0x34   :  { %v160_v30 = vld [vmem:[%s1813_s1 + $0x468] sm:$0xff]  ;;  %v161_v31 = vld [vmem:[%s1813_s1 + $0x470] sm:$0xff]  ;;  %v162_v32 = vld [vmem:[%s1813_s1 + $0x478] sm:$0xff]  ;;  %v236_v50 = vadd.f32 %v235_v19, %v179_v18  ;;  %v275_v52 = vadd.f32 %v274_v21, %v181_v24  ;;  %v294_v53 = vadd.f32 %v293_v22, %v182_v25 }
  0x35   :  { %v171_v33 = vld [vmem:[%s1813_s1 + $0x4c0] sm:$0xff]  ;;  %v184_v39 = vld [vmem:[%s1813_s1 + $0x528] sm:$0xff]  ;;  %v185_v40 = vld [vmem:[%s1813_s1 + $0x530] sm:$0xff]  ;;  %v482_v10 = vadd.f32 %v481_v43, %v160_v30  ;;  %v501_v11 = vadd.f32 %v500_v44, %v161_v31  ;;  %v520_v12 = vadd.f32 %v519_v45, %v162_v32 }
  0x36   :  { %v183_v34 = vld [vmem:[%s1813_s1 + $0x520] sm:$0xff]  ;;  %v186_v41 = vld [vmem:[%s1813_s1 + $0x538] sm:$0xff]  ;;  %v172_v46 = vld [vmem:[%s1813_s1 + $0x4c8] sm:$0xff]  ;;  %v332_v1 = vadd.f32 %v331_v36, %v184_v39  ;;  %v351_v3 = vadd.f32 %v350_v37, %v185_v40  ;;  %v1480_v8 = vadd.f32 %v387_v42, %v171_v33 }
  0x37   :  { %v173_v47 = vld [vmem:[%s1813_s1 + $0x4d0] sm:$0xff]  ;;  %v174_v48 = vld [vmem:[%s1813_s1 + $0x4d8] sm:$0xff]  ;;  %v195_v49 = vld [vmem:[%s1813_s1 + $0x580] sm:$0xff]  ;;  %v313_v0 = vadd.f32 %v312_v35, %v183_v34  ;;  %v370_v4 = vadd.f32 %v369_v38, %v186_v41  ;;  %v407_v21 = vadd.f32 %v406_v57, %v172_v46 }
  0x38   :  { %v196_v54 = vld [vmem:[%s1813_s1 + $0x588] sm:$0xff]  ;;  %v197_v55 = vld [vmem:[%s1813_s1 + $0x590] sm:$0xff]  ;;  %v198_v56 = vld [vmem:[%s1813_s1 + $0x598] sm:$0xff]  ;;  %v237_v16 = vadd.f32 %v236_v50, %v195_v49  ;;  %v426_v22 = vadd.f32 %v425_v58, %v173_v47  ;;  %v445_v23 = vadd.f32 %v444_v59, %v174_v48 }
  0x39   :  { %v175_v61 = vld [vmem:[%s1813_s1 + $0x4e0] sm:$0xff]  ;;  %v200_v63 = vld [vmem:[%s1813_s1 + $0x5a8] sm:$0xff]  ;;  %v201_v5 = vld [vmem:[%s1813_s1 + $0x5b0] sm:$0xff]  ;;  %v257_v17 = vadd.f32 %v256_v51, %v196_v54  ;;  %v276_v18 = vadd.f32 %v275_v52, %v197_v55  ;;  %v295_v19 = vadd.f32 %v294_v53, %v198_v56 }
  0x3a   :  { %v199_v62 = vld [vmem:[%s1813_s1 + $0x5a0] sm:$0xff]  ;;  %v202_v6 = vld [vmem:[%s1813_s1 + $0x5b8] sm:$0xff]  ;;  %v212_v13 = vld [vmem:[%s1813_s1 + $0x608] sm:$0xf]  ;;  %v464_v24 = vadd.f32 %v463_v60, %v175_v61  ;;  %v333_v29 = vadd.f32 %v332_v1, %v200_v63  ;;  %v352_v30 = vadd.f32 %v351_v3, %v201_v5 }
  0x3b   :  { %v211_v7 = vld [vmem:[%s1813_s1 + $0x600] sm:$0xf]  ;;  %v213_v14 = vld [vmem:[%s1813_s1 + $0x610] sm:$0xf]  ;;  %v214_v15 = vld [vmem:[%s1813_s1 + $0x618] sm:$0xf]  ;;  %v314_v28 = vadd.f32 %v313_v0, %v199_v62  ;;  %v371_v31 = vadd.f32 %v370_v4, %v202_v6 }
  0x3c   :  { %v215_v20 = vld [vmem:[%s1813_s1 + $0x620] sm:$0xf]  ;;  %v216_v25 = vld [vmem:[%s1813_s1 + $0x628] sm:$0xf]  ;;  %v217_v26 = vld [vmem:[%s1813_s1 + $0x630] sm:$0xf] }
  0x3d   :  { %v218_v27 = vld [vmem:[%s1813_s1 + $0x638] sm:$0xf]  ;;  %v239_v32 = vsel %vm238_vm0, %v211_v7, 0.0  ;;  %v258_v33 = vsel %vm238_vm0, %v212_v13, 0.0  ;;  %v277_v34 = vsel %vm238_vm0, %v213_v14, 0.0  ;;  %v296_v35 = vsel %vm238_vm0, %v214_v15, 0.0 }
  0x3e   :  { %v176_v36 = vld [vmem:[%s1813_s1 + $0x4e8] sm:$0xff]  ;;  %v240_v37 = vadd.f32 %v239_v32, %v237_v16  ;;  %v259_v38 = vadd.f32 %v258_v33, %v257_v17  ;;  %v278_v39 = vadd.f32 %v277_v34, %v276_v18  ;;  %v297_v40 = vadd.f32 %v296_v35, %v295_v19  ;;  %v177_v41 = vld [vmem:[%s1813_s1 + $0x4f0] sm:$0xff]  ;;  %v178_v42 = vld [vmem:[%s1813_s1 + $0x4f8] sm:$0xff] }
  0x3f   :  { %v315_v43 = vsel %vm238_vm0, %v215_v20, 0.0  ;;  %v334_v44 = vsel %vm238_vm0, %v216_v25, 0.0  ;;  %v353_v45 = vsel %vm238_vm0, %v217_v26, 0.0  ;;  %v372_v46 = vsel %vm238_vm0, %v218_v27, 0.0  ;;  %v187_v47 = vld [vmem:[%s1813_s1 + $0x540] sm:$0xff]  ;;  %v188_v52 = vld [vmem:[%s1813_s1 + $0x548] sm:$0xff] }
  0x40   :  { %v241_v48 = vrot.slane %v240_v37, 4  ;;  %v260_v49 = vrot.slane %v259_v38, 4  ;;  %v279_v50 = vrot.slane %v278_v39, 4  ;;  %v298_v51 = vrot.slane %v297_v40, 4  ;;  %v189_v53 = vld [vmem:[%s1813_s1 + $0x550] sm:$0xff]  ;;  %v190_v54 = vld [vmem:[%s1813_s1 + $0x558] sm:$0xff] }
  0x41   :  { %v316_v55 = vadd.f32 %v315_v43, %v314_v28  ;;  %v335_v56 = vadd.f32 %v334_v44, %v333_v29  ;;  %v354_v57 = vadd.f32 %v353_v45, %v352_v30  ;;  %v373_v58 = vadd.f32 %v372_v46, %v371_v31  ;;  %v191_v59 = vld [vmem:[%s1813_s1 + $0x560] sm:$0xff]  ;;  %v192_v0 = vld [vmem:[%s1813_s1 + $0x568] sm:$0xff]  ;;  %v193_v1 = vld [vmem:[%s1813_s1 + $0x570] sm:$0xff] }
  0x42   :  { %v242_v60 = vadd.f32 %v241_v48, %v240_v37  ;;  %v483_v61 = vadd.f32 %v482_v10, %v176_v36  ;;  %v502_v62 = vadd.f32 %v501_v11, %v177_v41  ;;  %v521_v63 = vadd.f32 %v520_v12, %v178_v42  ;;  %v194_v3 = vld [vmem:[%s1813_s1 + $0x578] sm:$0xff]  ;;  %v203_v10 = vld [vmem:[%s1813_s1 + $0x5c0] sm:$0xff]  ;;  %v204_v11 = vld [vmem:[%s1813_s1 + $0x5c8] sm:$0xff] }
  0x43   :  { %v261_v4 = vadd.f32 %v260_v49, %v259_v38  ;;  %v280_v5 = vadd.f32 %v279_v50, %v278_v39  ;;  %v299_v6 = vadd.f32 %v298_v51, %v297_v40  ;;  %v317_v7 = vrot.slane %v316_v55, 4  ;;  %v205_v16 = vld [vmem:[%s1813_s1 + $0x5d0] sm:$0xff]  ;;  %v206_v17 = vld [vmem:[%s1813_s1 + $0x5d8] sm:$0xff]  ;;  %v207_v26 = vld [vmem:[%s1813_s1 + $0x5e0] sm:$0xff] }
  0x44   :  { %v389_v12 = vadd.f32 %v1480_v8, %v187_v47  ;;  %v408_v13 = vadd.f32 %v407_v21, %v188_v52  ;;  %v427_v14 = vadd.f32 %v426_v22, %v189_v53  ;;  %v446_v15 = vadd.f32 %v445_v23, %v190_v54  ;;  %v208_v27 = vld [vmem:[%s1813_s1 + $0x5e8] sm:$0xff]  ;;  %v209_v28 = vld [vmem:[%s1813_s1 + $0x5f0] sm:$0xff]  ;;  %v210_v29 = vld [vmem:[%s1813_s1 + $0x5f8] sm:$0xff] }
  0x45   :  { %v243_v18 = vrot.slane %v242_v60, 2  ;;  %v336_v19 = vrot.slane %v335_v56, 4  ;;  %v355_v20 = vrot.slane %v354_v57, 4  ;;  %v374_v25 = vrot.slane %v373_v58, 4  ;;  %v220_v38 = vld [vmem:[%s1813_s1 + $0x648] sm:$0xf] }
  0x46   :  { %v465_v8 = vadd.f32 %v464_v24, %v191_v59  ;;  %v484_v21 = vadd.f32 %v483_v61, %v192_v0  ;;  %v503_v22 = vadd.f32 %v502_v62, %v193_v1  ;;  %v522_v23 = vadd.f32 %v521_v63, %v194_v3  ;;  %v219_v24 = vld [vmem:[%s1813_s1 + $0x640] sm:$0xf]  ;;  %v221_v39 = vld [vmem:[%s1813_s1 + $0x650] sm:$0xf]  ;;  %v222_v40 = vld [vmem:[%s1813_s1 + $0x658] sm:$0xf] }
  0x47   :  { %v262_v30 = vrot.slane %v261_v4, 2  ;;  %v281_v31 = vrot.slane %v280_v5, 2  ;;  %v300_v32 = vrot.slane %v299_v6, 2  ;;  %v318_v33 = vadd.f32 %v317_v7, %v316_v55  ;;  %v223_v45 = vld [vmem:[%s1813_s1 + $0x660] sm:$0xf] }
  0x48   :  { %v390_v34 = vadd.f32 %v389_v12, %v203_v10  ;;  %v409_v35 = vadd.f32 %v408_v13, %v204_v11  ;;  %v428_v36 = vadd.f32 %v427_v14, %v205_v16  ;;  %v447_v37 = vadd.f32 %v446_v15, %v206_v17  ;;  %v224_v50 = vld [vmem:[%s1813_s1 + $0x668] sm:$0xf]  ;;  %v225_v51 = vld [vmem:[%s1813_s1 + $0x670] sm:$0xf] }
  0x49   :  { %v1581_v41 = vadd.f32 %v243_v18, %v242_v60  ;;  %v337_v42 = vadd.f32 %v336_v19, %v335_v56  ;;  %v356_v43 = vadd.f32 %v355_v20, %v354_v57  ;;  %v375_v44 = vadd.f32 %v374_v25, %v373_v58  ;;  %v226_v56 = vld [vmem:[%s1813_s1 + $0x678] sm:$0xf] }
  0x4a   :  { %v466_v46 = vadd.f32 %v465_v8, %v207_v26  ;;  %v485_v47 = vadd.f32 %v484_v21, %v208_v27  ;;  %v504_v48 = vadd.f32 %v503_v22, %v209_v28  ;;  %v523_v49 = vadd.f32 %v522_v23, %v210_v29 }
  0x4b   :  { %v263_v52 = vadd.f32 %v262_v30, %v261_v4  ;;  %v282_v53 = vadd.f32 %v281_v31, %v280_v5  ;;  %v1592_v54 = vadd.f32 %v300_v32, %v299_v6  ;;  %v319_v55 = vrot.slane %v318_v33, 2 }
  0x4c   :  { %v391_v57 = vsel %vm238_vm0, %v219_v24, 0.0  ;;  %v410_v58 = vsel %vm238_vm0, %v220_v38, 0.0  ;;  %v429_v59 = vsel %vm238_vm0, %v221_v39, 0.0  ;;  %v448_v60 = vsel %vm238_vm0, %v222_v40, 0.0 }
  0x4d   :  { %v245_v61 = vrot.slane %v1581_v41, 1  ;;  %v338_v62 = vrot.slane %v337_v42, 2  ;;  %v357_v63 = vrot.slane %v356_v43, 2  ;;  %v376_v0 = vrot.slane %v375_v44, 2 }
  0x4e   :  { %v392_v1 = vadd.f32 %v391_v57, %v390_v34  ;;  %v411_v3 = vadd.f32 %v410_v58, %v409_v35  ;;  %v430_v4 = vadd.f32 %v429_v59, %v428_v36  ;;  %v449_v5 = vadd.f32 %v448_v60, %v447_v37 }
  0x4f   :  { %v467_v6 = vsel %vm238_vm0, %v223_v45, 0.0  ;;  %v486_v7 = vsel %vm238_vm0, %v224_v50, 0.0  ;;  %v505_v10 = vsel %vm238_vm0, %v225_v51, 0.0  ;;  %v524_v11 = vsel %vm238_vm0, %v226_v56, 0.0 }
  0x50   :  { %v393_v12 = vrot.slane %v392_v1, 4  ;;  %v412_v13 = vrot.slane %v411_v3, 4  ;;  %v431_v14 = vrot.slane %v430_v4, 4  ;;  %v450_v15 = vrot.slane %v449_v5, 4 }
  0x51   :  { %v468_v16 = vadd.f32 %v467_v6, %v466_v46  ;;  %v487_v17 = vadd.f32 %v486_v7, %v485_v47  ;;  %v506_v18 = vadd.f32 %v505_v10, %v504_v48  ;;  %v525_v19 = vadd.f32 %v524_v11, %v523_v49 }
  0x52   :  { %v394_v20 = vadd.f32 %v393_v12, %v392_v1  ;;  %v413_v25 = vadd.f32 %v412_v13, %v411_v3  ;;  %v432_v26 = vadd.f32 %v431_v14, %v430_v4  ;;  %v451_v8 = vadd.f32 %v450_v15, %v449_v5 }
  0x53   :  { %v469_v21 = vrot.slane %v468_v16, 4  ;;  %v488_v22 = vrot.slane %v487_v17, 4  ;;  %v507_v23 = vrot.slane %v506_v18, 4  ;;  %v526_v27 = vrot.slane %v525_v19, 4 }
  0x54   :  { %v264_v28 = vrot.slane %v263_v52, 1  ;;  %v283_v29 = vrot.slane %v282_v53, 1  ;;  %v320_v30 = vadd.f32 %v319_v55, %v318_v33  ;;  %v395_v31 = vrot.slane %v394_v20, 2 }
  0x55   :  { %v470_v32 = vadd.f32 %v469_v21, %v468_v16  ;;  %v489_v24 = vadd.f32 %v488_v22, %v487_v17  ;;  %v508_v34 = vadd.f32 %v507_v23, %v506_v18  ;;  %v527_v35 = vadd.f32 %v526_v27, %v525_v19 }
  0x56   :  { %v302_v36 = vrot.slane %v1592_v54, 1  ;;  %v414_v37 = vrot.slane %v413_v25, 2  ;;  %v433_v38 = vrot.slane %v432_v26, 2  ;;  %v452_v39 = vrot.slane %v451_v8, 2 }
  0x57   :  { %v339_v40 = vadd.f32 %v338_v62, %v337_v42  ;;  %v471_v45 = vrot.slane %v470_v32, 2  ;;  %v490_v46 = vrot.slane %v489_v24, 2  ;;  %v509_v47 = vrot.slane %v508_v34, 2 }
  0x58   :  { %v358_v48 = vadd.f32 %v357_v63, %v356_v43  ;;  %v377_v49 = vadd.f32 %v376_v0, %v375_v44  ;;  %v396_v50 = vadd.f32 %v395_v31, %v394_v20  ;;  %v528_v51 = vrot.slane %v527_v35, 2 }
  0x59   :  { %v246_v33 = vadd.f32 %v245_v61, %v1581_v41  ;;  %v265_v55 = vadd.f32 %v264_v28, %v263_v52  ;;  %v284_v56 = vadd.f32 %v283_v29, %v282_v53  ;;  %v321_v57 = vrot.slane %v320_v30, 1 }
  0x5a   :  { %v415_v58 = vadd.f32 %v414_v37, %v413_v25  ;;  %v434_v59 = vadd.f32 %v433_v38, %v432_v26  ;;  %v453_v60 = vadd.f32 %v452_v39, %v451_v8  ;;  %v472_v1 = vadd.f32 %v471_v45, %v470_v32 }
  0x5b   :  { %v303_v3 = vadd.f32 %v302_v36, %v1592_v54  ;;  %v340_v42 = vrot.slane %v339_v40, 1  ;;  %v491_v62 = vadd.f32 %v490_v46, %v489_v24  ;;  %v510_v4 = vadd.f32 %v509_v47, %v508_v34  ;;  %v1661_v46 = vld [vmem:[%s1814_s2] sm:$0xff]  ;;  %v1666_v47 = vld [vmem:[%s1814_s2 + $0x8] sm:$0xff] }
  0x5c   :  { %v359_v5 = vrot.slane %v358_v48, 1  ;;  %v378_v43 = vrot.slane %v377_v49, 1  ;;  %v397_v44 = vrot.slane %v396_v50, 1  ;;  %v529_v63 = vadd.f32 %v528_v51, %v527_v35 }
  0x5d   :  { %v322_v0 = vadd.f32 %v321_v57, %v320_v30  ;;  %v1610_v41 = vmul.f32 %v1188_v2, %v246_v33  ;;  %v1613_v52 = vmul.f32 %v1188_v2, %v265_v55  ;;  %v1616_v53 = vmul.f32 %v1188_v2, %v284_v56 }
  0x5e   :  { %v416_v61 = vrot.slane %v415_v58, 1  ;;  %v435_v6 = vrot.slane %v434_v59, 1  ;;  %v454_v54 = vrot.slane %v453_v60, 1  ;;  %v473_v7 = vrot.slane %v472_v1, 1 }
  0x5f   :  { %v341_v10 = vadd.f32 %v340_v42, %v339_v40  ;;  %v492_v11 = vrot.slane %v491_v62, 1  ;;  %v511_v12 = vrot.slane %v510_v4, 1  ;;  %v1619_v13 = vmul.f32 %v1188_v2, %v303_v3 }
  0x60   :  { %v360_v14 = vadd.f32 %v359_v5, %v358_v48  ;;  %v379_v15 = vadd.f32 %v378_v43, %v377_v49  ;;  %v398_v16 = vadd.f32 %v397_v44, %v396_v50  ;;  %v530_v17 = vrot.slane %v529_v63, 1 }
  0x61   :  { %v1622_v18 = vmul.f32 %v1188_v2, %v322_v0  ;;  %v692_v19 = vmul.f32 %v1610_v41, %v1610_v41  ;;  %v693_v20 = vmul.f32 %v1613_v52, %v1613_v52  ;;  %v694_v25 = vmul.f32 %v1616_v53, %v1616_v53 }
  0x62   :  { %v417_v26 = vadd.f32 %v416_v61, %v415_v58  ;;  %v436_v8 = vadd.f32 %v435_v6, %v434_v59  ;;  %v455_v21 = vadd.f32 %v454_v54, %v453_v60  ;;  %v474_v22 = vadd.f32 %v473_v7, %v472_v1  ;;  %v1710_v54 = vld [vmem:[%s1814_s2 + $0x10] sm:$0xff] }
  0x63   :  { %v493_v23 = vadd.f32 %v492_v11, %v491_v62  ;;  %v512_v27 = vadd.f32 %v511_v12, %v510_v4  ;;  %v1631_v28 = vmul.f32 %v1188_v2, %v341_v10  ;;  %v695_v29 = vmul.f32 %v1619_v13, %v1619_v13 }
  0x64   :  { %v531_v30 = vadd.f32 %v530_v17, %v529_v63  ;;  %v1636_v31 = vmul.f32 %v1188_v2, %v360_v14  ;;  %v1639_v32 = vmul.f32 %v1188_v2, %v379_v15  ;;  %v1642_v24 = vmul.f32 %v1188_v2, %v398_v16 }
  0x65   :  { %v696_v34 = vmul.f32 %v1622_v18, %v1622_v18  ;;  %v709_v35 = vsel %vm708_vm1, %v692_v19, 0.0  ;;  %v710_v36 = vsel %vm708_vm1, %v693_v20, 0.0  ;;  %v712_v37 = vsel %vm708_vm1, %v694_v25, 0.0 }
  0x66   :  { %v1650_v38 = vmul.f32 %v1188_v2, %v417_v26  ;;  %v1653_v39 = vmul.f32 %v1188_v2, %v436_v8  ;;  %v1656_v40 = vmul.f32 %v1188_v2, %v455_v21  ;;  %v711_v45 = vadd.f32 %v710_v36, %v709_v35 }
  0x67   :  { %v1669_v48 = vmul.f32 %v1188_v2, %v474_v22  ;;  %v1672_v49 = vmul.f32 %v1188_v2, %v493_v23  ;;  %v697_v50 = vmul.f32 %v1631_v28, %v1631_v28  ;;  %v714_v51 = vsel %vm708_vm1, %v695_v29, 0.0 }
  0x68   :  { %v1678_v33 = vmul.f32 %v1188_v2, %v512_v27  ;;  %v1681_v55 = vmul.f32 %v1188_v2, %v531_v30  ;;  %v698_v56 = vmul.f32 %v1636_v31, %v1636_v31  ;;  %v713_v57 = vadd.f32 %v712_v37, %v711_v45  ;;  %v1729_v27 = vld [vmem:[%s1814_s2 + $0x18] sm:$0xff] }
  0x69   :  { %v699_v58 = vmul.f32 %v1639_v32, %v1639_v32  ;;  %v716_v59 = vsel %vm708_vm1, %v696_v34, 0.0  ;;  %v758_v60 = vmul.f32 %v1661_v46, %v1661_v46  ;;  %v759_v1 = vmul.f32 %v1666_v47, %v1666_v47 }
  0x6a   :  { %v700_v3 = vmul.f32 %v1642_v24, %v1642_v24  ;;  %v701_v2 = vmul.f32 %v1650_v38, %v1650_v38  ;;  %v702_v42 = vmul.f32 %v1653_v39, %v1653_v39  ;;  %v715_v62 = vadd.f32 %v714_v51, %v713_v57 }
  0x6b   :  { %v703_v4 = vmul.f32 %v1656_v40, %v1656_v40  ;;  %v718_v5 = vsel %vm708_vm1, %v697_v50, 0.0  ;;  %v766_v43 = vcombine.high %v758_v60, %v758_v60  ;;  %v773_v44 = vrot.slane %v758_v60, %v1199_v9 }
  0x6c   :  { %v704_v63 = vmul.f32 %v1669_v48, %v1669_v48  ;;  %v705_v0 = vmul.f32 %v1672_v49, %v1672_v49  ;;  %v717_v61 = vadd.f32 %v716_v59, %v715_v62  ;;  %v720_v6 = vsel %vm708_vm1, %v698_v56, 0.0 }
  0x6d   :  { %v780_v7 = vrot.slane %v766_v43, %v1199_v9  ;;  %v781_v10 = vcombine.high %v773_v44, %v773_v44  ;;  %v783_v11 = vcombine.high %v759_v1, %v759_v1  ;;  %v790_v12 = vrot.slane %v759_v1, %v1199_v9 }
  0x6e   :  { %v706_v14 = vmul.f32 %v1678_v33, %v1678_v33  ;;  %v707_v15 = vmul.f32 %v1681_v55, %v1681_v55  ;;  %v719_v16 = vadd.f32 %v718_v5, %v717_v61  ;;  %v722_v17 = vsel %vm708_vm1, %v699_v58, 0.0 }
  0x6f   :  { %v724_v19 = vsel %vm708_vm1, %v700_v3, 0.0  ;;  %v726_v20 = vsel %vm708_vm1, %v701_v2, 0.0  ;;  %v782_v25 = vcombine.high %v780_v7, %v780_v7  ;;  %v850_v26 = vsel %vm658_vm2, %v773_v44, 0.0 }
  0x70   :  { %v721_v8 = vadd.f32 %v720_v6, %v719_v16  ;;  %v728_v21 = vsel %vm708_vm1, %v702_v42, 0.0  ;;  %v760_v22 = vmul.f32 %v1710_v54, %v1710_v54  ;;  %v851_v23 = vsel %vm658_vm2, %v781_v10, 0.0 }
  0x71   :  { %v797_v29 = vrot.slane %v783_v11, %v1199_v9  ;;  %v798_v30 = vcombine.high %v790_v12, %v790_v12  ;;  %v852_v34 = vadd.f32 %v851_v23, %v850_v26  ;;  %v853_v35 = vsel %vm658_vm2, %v780_v7, 0.0 }
  0x72   :  { %v723_v36 = vadd.f32 %v722_v17, %v721_v8  ;;  %v730_v37 = vsel %vm708_vm1, %v703_v4, 0.0  ;;  %v732_v45 = vsel %vm708_vm1, %v704_v63, 0.0  ;;  %v855_v50 = vsel %vm658_vm2, %v782_v25, 0.0 }
  0x73   :  { %v734_v51 = vsel %vm708_vm1, %v705_v0, 0.0  ;;  %v736_v56 = vsel %vm708_vm1, %v706_v14, 0.0  ;;  %v800_v57 = vcombine.high %v760_v22, %v760_v22  ;;  %v854_v58 = vadd.f32 %v853_v35, %v852_v34 }
  0x74   :  { %v725_v59 = vadd.f32 %v724_v19, %v723_v36  ;;  %v738_v60 = vsel %vm708_vm1, %v707_v15, 0.0  ;;  %v761_v1 = vmul.f32 %v1729_v27, %v1729_v27  ;;  %v857_v3 = vsel %vm658_vm2, %v790_v12, 0.0 }
  0x75   :  { %v799_v2 = vcombine.high %v797_v29, %v797_v29  ;;  %v807_v42 = vrot.slane %v760_v22, %v1199_v9  ;;  %v856_v62 = vadd.f32 %v855_v50, %v854_v58  ;;  %v859_v4 = vsel %vm658_vm2, %v798_v30, 0.0 }
  0x76   :  { %v727_v5 = vadd.f32 %v726_v20, %v725_v59  ;;  %v558_v43 = vcombine.high %v1661_v46, %v1661_v46  ;;  %v565_v44 = vrot.slane %v1661_v46, %v1199_v9  ;;  %v582_v63 = vrot.slane %v1666_v47, %v1199_v9 }
  0x77   :  { %v814_v0 = vrot.slane %v800_v57, %v1199_v9  ;;  %v817_v61 = vcombine.high %v761_v1, %v761_v1  ;;  %v858_v6 = vadd.f32 %v857_v3, %v856_v62  ;;  %v861_v7 = vsel %vm658_vm2, %v797_v29, 0.0 }
  0x78   :  { %v729_v10 = vadd.f32 %v728_v21, %v727_v5  ;;  %v572_v11 = vrot.slane %v558_v43, %v1199_v9  ;;  %v573_v12 = vcombine.high %v565_v44, %v565_v44  ;;  %v575_v14 = vcombine.high %v1666_v47, %v1666_v47 }
  0x79   :  { %v815_v15 = vcombine.high %v807_v42, %v807_v42  ;;  %v860_v16 = vadd.f32 %v859_v4, %v858_v6  ;;  %v863_v46 = vsel %vm658_vm2, %v799_v2, 0.0  ;;  %v642_v17 = vmul.f32 %v565_v44, %v1610_v41 }
  0x7a   :  { %v731_v19 = vadd.f32 %v730_v37, %v729_v10  ;;  %v574_v20 = vcombine.high %v572_v11, %v572_v11  ;;  %v590_v25 = vcombine.high %v582_v63, %v582_v63  ;;  %v643_v26 = vmul.f32 %v573_v12, %v1613_v52 }
  0x7b   :  { %v862_v8 = vadd.f32 %v861_v7, %v860_v16  ;;  %v589_v21 = vrot.slane %v575_v14, %v1199_v9  ;;  %v644_v22 = vmul.f32 %v572_v11, %v1616_v53  ;;  %v659_v23 = vsel %vm658_vm2, %v642_v17, 0.0 }
  0x7c   :  { %v733_v29 = vadd.f32 %v732_v45, %v731_v19  ;;  %v824_v47 = vrot.slane %v761_v1, %v1199_v9  ;;  %v865_v30 = vsel %vm658_vm2, %v807_v42, 0.0  ;;  %v645_v34 = vmul.f32 %v574_v20, %v1619_v13 }
  0x7d   :  { %v816_v41 = vcombine.high %v814_v0, %v814_v0  ;;  %v864_v35 = vadd.f32 %v863_v46, %v862_v8  ;;  %v867_v36 = vsel %vm658_vm2, %v815_v15, 0.0  ;;  %v660_v52 = vsel %vm658_vm2, %v643_v26, 0.0 }
  0x7e   :  { %v735_v37 = vadd.f32 %v734_v51, %v733_v29  ;;  %v646_v50 = vmul.f32 %v582_v63, %v1622_v18  ;;  %v661_v57 = vadd.f32 %v660_v52, %v659_v23  ;;  %v662_v53 = vsel %vm658_vm2, %v644_v22, 0.0 }
  0x7f   :  { %v866_v58 = vadd.f32 %v865_v30, %v864_v35  ;;  %v869_v45 = vsel %vm658_vm2, %v814_v0, 0.0  ;;  %v591_v59 = vcombine.high %v589_v21, %v589_v21  ;;  %v647_v1 = vmul.f32 %v590_v25, %v1631_v28 }
  0x80   :  { %v737_v3 = vadd.f32 %v736_v56, %v735_v37  ;;  %v592_v13 = vcombine.high %v1710_v54, %v1710_v54  ;;  %v599_v2 = vrot.slane %v1710_v54, %v1199_v9  ;;  %v664_v51 = vsel %vm658_vm2, %v645_v34, 0.0 }
  0x81   :  { %v831_v18 = vrot.slane %v817_v61, %v1199_v9  ;;  %v832_v42 = vcombine.high %v824_v47, %v824_v47  ;;  %v868_v62 = vadd.f32 %v867_v36, %v866_v58  ;;  %v663_v4 = vadd.f32 %v662_v53, %v661_v57 }
  0x82   :  { %v739_v5 = vadd.f32 %v738_v60, %v737_v3  ;;  %v871_v43 = vsel %vm658_vm2, %v816_v41, 0.0  ;;  %v648_v44 = vmul.f32 %v589_v21, %v1636_v31  ;;  %v666_v28 = vsel %vm658_vm2, %v646_v50, 0.0 }
  0x83   :  { %v870_v56 = vadd.f32 %v869_v45, %v868_v62  ;;  %v649_v63 = vmul.f32 %v591_v59, %v1639_v32  ;;  %v665_v0 = vadd.f32 %v664_v51, %v663_v4  ;;  %v873_v54 = vsel %vm658_vm2, %v824_v47, 0.0 }
  0x84   :  { %740 = vadd.xlane.f32.xlu0 %v739_v5  ;;  %v606_v6 = vrot.slane %v592_v13, %v1199_v9  ;;  %v607_v61 = vcombine.high %v599_v2, %v599_v2  ;;  %v668_v7 = vsel %vm658_vm2, %v647_v1, 0.0  ;;  %v833_v11 = vcombine.high %v831_v18, %v831_v18 }
  0x85   :  { %v872_v10 = vadd.f32 %v871_v43, %v870_v56  ;;  %v667_v60 = vadd.f32 %v666_v28, %v665_v0  ;;  %v875_v12 = vsel %vm658_vm2, %v832_v42, 0.0  ;;  %v650_v31 = vmul.f32 %v599_v2, %v1642_v24 }
  0x86   :  { %v670_v14 = vsel %vm658_vm2, %v648_v44, 0.0  ;;  %v877_v32 = vsel %vm658_vm2, %v831_v18, 0.0  ;;  %v672_v46 = vsel %vm658_vm2, %v649_v63, 0.0  ;;  %v608_v17 = vcombine.high %v606_v6, %v606_v6 }
  0x87   :  { %v874_v15 = vadd.f32 %v873_v54, %v872_v10  ;;  %v669_v16 = vadd.f32 %v668_v7, %v667_v60  ;;  %v609_v19 = vcombine.high %v1729_v27, %v1729_v27  ;;  %v616_v20 = vrot.slane %v1729_v27, %v1199_v9 }
  0x88   :  { %v651_v25 = vmul.f32 %v607_v61, %v1650_v38  ;;  %v879_v24 = vsel %vm658_vm2, %v833_v11, 0.0  ;;  %v652_v21 = vmul.f32 %v606_v6, %v1653_v39  ;;  %v674_v22 = vsel %vm658_vm2, %v650_v31, 0.0 }
  0x89   :  { %v876_v26 = vadd.f32 %v875_v12, %v874_v15  ;;  %v671_v8 = vadd.f32 %v670_v14, %v669_v16  ;;  %v623_v47 = vrot.slane %v609_v19, %v1199_v9  ;;  %v624_v30 = vcombine.high %v616_v20, %v616_v20 }
  0x8a   :  { %v653_v34 = vmul.f32 %v608_v17, %v1656_v40  ;;  %v676_v41 = vsel %vm658_vm2, %v651_v25, 0.0  ;;  %v654_v38 = vmul.f32 %v616_v20, %v1669_v48  ;;  %v678_v36 = vsel %vm658_vm2, %v652_v21, 0.0 }
  0x8b   :  { %v878_v23 = vadd.f32 %v877_v32, %v876_v26  ;;  %v673_v29 = vadd.f32 %v672_v46, %v671_v8  ;;  %v625_v39 = vcombine.high %v623_v47, %v623_v47  ;;  %v655_v37 = vmul.f32 %v624_v30, %v1672_v49 }
  0x8c   :  { %v680_v50 = vsel %vm658_vm2, %v653_v34, 0.0  ;;  %v656_v9 = vmul.f32 %v623_v47, %v1678_v33  ;;  %v682_v40 = vsel %vm658_vm2, %v654_v38, 0.0 }
  0x8d   :  { %v880_v27 = vadd.f32 %v879_v24, %v878_v23  ;;  %v675_v35 = vadd.f32 %v674_v22, %v673_v29  ;;  %v657_v58 = vmul.f32 %v625_v39, %v1681_v55  ;;  %v684_v45 = vsel %vm658_vm2, %v655_v37, 0.0 }
  0x8e   :  { %v686_v59 = vsel %vm658_vm2, %v656_v9, 0.0 }
  0x8f   :  { %881 = vadd.xlane.f32.xlu0 %v880_v27  ;;  %v677_v52 = vadd.f32 %v676_v41, %v675_v35  ;;  %v688_v3 = vsel %vm658_vm2, %v657_v58, 0.0 }
  0x91   :  { %v679_v57 = vadd.f32 %v678_v36, %v677_v52 }
  0x93   :  { %v681_v53 = vadd.f32 %v680_v50, %v679_v57 }
  0x95   :  { %v683_v48 = vadd.f32 %v682_v40, %v681_v53 }
  0x97   :  { %v685_v1 = vadd.f32 %v684_v45, %v683_v48 }
  0x99   :  { %v687_v13 = vadd.f32 %v686_v59, %v685_v1 }
  0x9b   :  { %v689_v49 = vadd.f32 %v688_v3, %v687_v13 }
  0x9d   :  { %690 = vadd.xlane.f32.xlu1 %v689_v49 }
 0x111   :  { %v741_v2 = vpop.xlane.xlu0 %740 }
 0x112   :  { %v742_v51 = vrot.slane %v741_v2, 4 }
 0x114   :  { %v743_v18 = vadd.f32 %v742_v51, %v741_v2 }
 0x116   :  { %v744_v33 = vrot.slane %v743_v18, 2 }
 0x118   :  { %v745_v42 = vadd.f32 %v744_v33, %v743_v18 }
 0x11a   :  { %v746_v62 = vrot.slane %v745_v42, 1 }
 0x11c   :  { %v747_v4 = vadd.f32 %v746_v62, %v745_v42  ;;  %v882_v63 = vpop.xlane.xlu0 %881 }
 0x11d   :  { %vm885_vm5 = vcmp.eq.f32.partialorder %v882_v63, inf  ;;  %v888_v6 = vand.u32 2147483648, %v882_v63  ;;  %vm887_vm6 = vcmp.eq.f32.partialorder %v882_v63, 0.0 }
 0x11e   :  { %902 = vpush %v747_v4 }
 0x12a   :  { %v691_v12 = vpop.xlane.xlu1 %690 }
 0x14f   :  { %s903_s2 = spop %902 }
 0x150   :  { %v749_v55 = vstv %s903_s2 }
 0x151   :  { %914 = vrsqrt.f32 %v749_v55  ;;  %vm752_vm3 = vcmp.eq.f32.partialorder %v749_v55, inf  ;;  %v755_v44 = vand.u32 2147483648, %v749_v55  ;;  %vm754_vm4 = vcmp.eq.f32.partialorder %v749_v55, 0.0 }
 0x152   :  { %916 = vrsqrt.f32 %v882_v63 }
 0x15b   :  { %v915_v5 = vpop.eup %914 }
 0x15c   :  { %v751_v43 = vmul.f32 %v915_v5, %v749_v55  ;;  %v917_v0 = vpop.eup %916 }
 0x15d   :  { %v884_v54 = vmul.f32 %v917_v0, %v882_v63 }
 0x15e   :  { %v753_v28 = vsel %vm752_vm3, %v749_v55, %v751_v43 }
 0x15f   :  { %v756_v56 = vsel %vm754_vm4, %v755_v44, %v753_v28  ;;  %v886_v61 = vsel %vm885_vm5, %v882_v63, %v884_v54 }
 0x160   :  { %904 = vpush %v756_v56  ;;  %v889_v7 = vsel %vm887_vm6, %v888_v6, %v886_v61 }
 0x161   :  { %v891_v10 = vmax.f32 %v889_v7, 1e-08 }
 0x191   :  { %s905_s20 = spop %904 }
 0x192   :  { %s890_s22 = smax.f32 %s921_s21, %s905_s20 }
 0x193   :  { %v892_v60 = vstv %s890_s22 }
 0x194   :  { %v893_v11 = vmul.f32 %v892_v60, %v891_v10 }
 0x196   :  { %918 = vrcp.f32 %v893_v11 }
 0x1a0   :  { %v919_v31 = vpop.eup %918 }
 0x1a1   :  { %v895_v14 = vmul.f32 %v919_v31, %v691_v12 }
 0x1a3   :  { %897 = vst.msk [vmem:[%s1815_s3] sm:$0x3] %vm896_vm7, %v895_v14 }

</bundles_post_ra>
